<compile_context>
chip_gen: v5e
topology: v5e:2x2
jax: 0.10.0
libtpu: 0.0.40
codegen_flags: <defaults>
</compile_context>

<pallas_src>
import math
import functools

import jax
import jax.numpy as jnp
from jax import lax
from jax.experimental import pallas as pl
from jax.experimental.pallas import tpu as pltpu

# ---------------- model dims ----------------
N_VOCAB = 28
EMBED_DIM = 64          # hidden_dim = embed_dim = 64 (module default)
NHEAD = 8
HEAD_DIM = EMBED_DIM // NHEAD
DIM_FF = 128            # dim_feedforward (kept small instead of 2048)
NUM_LAYERS = 2
PAD_IDX = 0
LN_EPS = 1e-5
LM_PAD = 128            # lane-dense padded lm_head output width

BATCH = 2
SEQ = 8                 # target sequence length
MEM_SEQ = 8             # memory sequence length

NEG = -1e30             # finite "-inf" (avoids exp(-inf - -inf) NaN edge case)

# per-layer parameter ordering passed to the fused kernel
LAYER_PARAM_KEYS = (
    "sa_wqkv", "sa_bqkv", "sa_wo", "sa_bo",
    "ca_wq", "ca_bq", "ca_wkv", "ca_bkv", "ca_wo", "ca_bo",
    "w1", "b1", "w2", "b2",
    "g1", "be1", "g2", "be2", "g3", "be3",
)
N_GLOBAL_INPUTS = 7     # tok, emb_table, pos_enc, mask, memory_flat, lm_w_pad, lm_b_pad


# ============================== in-kernel helpers ==============================

def _linear(t, w, bias):
    """t: (..., in), w: (in, out), bias: (1, out)."""
    tf = t.reshape(-1, t.shape[-1])
    y = jnp.dot(tf, w, preferred_element_type=jnp.float32) + bias
    return y.reshape(t.shape[:-1] + (w.shape[-1],))


def _layernorm(t, g, b):
    mu = jnp.mean(t, axis=-1, keepdims=True)
    var = jnp.mean((t - mu) ** 2, axis=-1, keepdims=True)
    return (t - mu) * lax.rsqrt(var + LN_EPS) * g + b


def _heads_from_flat(t_flat, b, s, offset):
    """t_flat: (b*s, >=offset+E). Returns heads stacked head-major: (H*b, s, D)."""
    return jnp.concatenate(
        [t_flat[:, offset + h * HEAD_DIM: offset + (h + 1) * HEAD_DIM]
         .reshape(b, s, HEAD_DIM) for h in range(NHEAD)],
        axis=0)


def _merge_heads(o, b):
    """o: (H*b, s, D) head-major -> (b, s, H*D)."""
    return jnp.concatenate([o[h * b:(h + 1) * b] for h in range(NHEAD)], axis=-1)


def _attention(qh, kh, vh, mask, wo, bo, b):
    """qh/kh/vh: (H*b, s, D).  mask: (H*b, sq, sk) additive or None.
    Q-scale (1/sqrt(D)) is already folded into the Q projection weights."""
    s = jnp.einsum("nqd,nkd->nqk", qh, kh, preferred_element_type=jnp.float32)
    if mask is not None:
        s = s + mask
    s = s - jnp.max(s, axis=-1, keepdims=True)
    p = jnp.exp(s)
    p = p * pl.reciprocal(jnp.sum(p, axis=-1, keepdims=True), approx=True)
    o = jnp.einsum("nqk,nkd->nqd", p, vh, preferred_element_type=jnp.float32)
    return _linear(_merge_heads(o, b), wo, bo)


def _decoder_layer(x, memf, mask_hb, p):
    """One nn.TransformerDecoderLayer (post-norm, ReLU, dropout=identity).
    x: (b, s, E); memf: (b*sm, E); mask_hb: (H*b, s, s)."""
    b, s, e = x.shape
    sm = memf.shape[0] // b

    # --- self attention: fused QKV projection ---
    xf = x.reshape(b * s, e)
    qkv = jnp.dot(xf, p["sa_wqkv"], preferred_element_type=jnp.float32) + p["sa_bqkv"]
    qh = _heads_from_flat(qkv, b, s, 0)
    kh = _heads_from_flat(qkv, b, s, e)
    vh = _heads_from_flat(qkv, b, s, 2 * e)
    sa = _attention(qh, kh, vh, mask_hb, p["sa_wo"], p["sa_bo"], b)
    x = _layernorm(x + sa, p["g1"], p["be1"])

    # --- cross attention: Q dot + fused KV dot (no mask) ---
    xf = x.reshape(b * s, e)
    q = jnp.dot(xf, p["ca_wq"], preferred_element_type=jnp.float32) + p["ca_bq"]
    kv = jnp.dot(memf, p["ca_wkv"], preferred_element_type=jnp.float32) + p["ca_bkv"]
    qh = _heads_from_flat(q, b, s, 0)
    kh = _heads_from_flat(kv, b, sm, 0)
    vh = _heads_from_flat(kv, b, sm, e)
    ca = _attention(qh, kh, vh, None, p["ca_wo"], p["ca_bo"], b)
    x = _layernorm(x + ca, p["g2"], p["be2"])

    # --- feed-forward ---
    xf = x.reshape(b * s, e)
    h = jnp.maximum(jnp.dot(xf, p["w1"], preferred_element_type=jnp.float32) + p["b1"], 0.0)
    ff = jnp.dot(h, p["w2"], preferred_element_type=jnp.float32) + p["b2"]
    x = _layernorm(x + ff.reshape(x.shape), p["g3"], p["be3"])
    return x


# ============================== fused kernel ==============================

def fused_decoder_kernel(*refs):
    """One pallas_call for the whole forward pass.
    refs = [tok, emb_table, pos, mask_hb, mem_flat, lm_w_pad, lm_b_pad,
            <20 params for layer 0>, <20 params for layer 1>, out_ref]."""
    out_ref = refs[-1]
    tok_ref, emb_ref, pos_ref, mask_ref, mem_ref, lmw_ref, lmb_ref = refs[:N_GLOBAL_INPUTS]
    layer_refs = refs[N_GLOBAL_INPUTS:-1]

    s, e = pos_ref.shape
    bs = tok_ref.shape[0]
    b = bs // s
    v = emb_ref.shape[0]

    # embedding lookup as a one-hot MXU matmul (row PAD_IDX of the table is zero),
    # plus positional encoding
    ids = tok_ref[...]                                               # (b*s, 1) int32
    onehot = (ids == lax.broadcasted_iota(jnp.int32, (bs, v), 1)).astype(jnp.float32)
    x = jnp.dot(onehot, emb_ref[...], preferred_element_type=jnp.float32)  # (b*s, E)
    x = x.reshape(b, s, e) + pos_ref[...][None, :, :]

    memf = mem_ref[...]                                              # (b*sm, E)
    mask_hb = mask_ref[...]                                          # (H*b, s, s)

    npl = len(LAYER_PARAM_KEYS)
    for li in range(NUM_LAYERS):
        p = {k: layer_refs[li * npl + j][...] for j, k in enumerate(LAYER_PARAM_KEYS)}
        x = _decoder_layer(x, memf, mask_hb, p)

    # lane-dense lm_head (output columns padded to 128)
    xf = x.reshape(b * s, e)
    logits = jnp.dot(xf, lmw_ref[...], preferred_element_type=jnp.float32) + lmb_ref[...]
    out_ref[...] = logits.reshape(b, s, -1)


# ============================== wrapper (plain JAX glue) ==============================

def positional_encoding(seq_len, embed_dim):
    pos = jnp.arange(seq_len, dtype=jnp.float32)[:, None]
    div = jnp.exp(jnp.arange(0, embed_dim, 2, dtype=jnp.float32)
                  * (-jnp.log(jnp.float32(10000.0)) / embed_dim))
    pe = jnp.zeros((seq_len, embed_dim), dtype=jnp.float32)
    pe = pe.at[:, 0::2].set(jnp.sin(pos * div))
    pe = pe.at[:, 1::2].set(jnp.cos(pos * div))
    return pe


def causal_mask(sz):
    return jnp.triu(jnp.ones((sz, sz), dtype=jnp.float32), k=1) * NEG


def transformer_decoder_forward(params, input_seq, memory):
    """input_seq: (B, S) int32, memory: (S_mem, B, E) float32 (PyTorch seq-first).
    Returns logits (B, S, N_VOCAB)."""
    B, S = input_seq.shape
    Sm = memory.shape[0]

    tok = input_seq.reshape(B * S, 1).astype(jnp.int32)
    memf = jnp.transpose(memory, (1, 0, 2)).reshape(B * Sm, EMBED_DIM)
    pos = positional_encoding(S, EMBED_DIM)

    # combined additive self-attn mask (causal + key padding), pre-broadcast per head
    cmask = causal_mask(S)                                         # (S, S)
    pmask = jnp.where(input_seq == PAD_IDX, NEG, 0.0).astype(jnp.float32)  # (B, S)
    sa_mask = cmask[None, :, :] + pmask[:, None, :]                # (B, S, S)
    mask_hb = jnp.tile(sa_mask, (NHEAD, 1, 1))                     # (H*B, S, S)

    flat = [tok, params["embedding"], pos, mask_hb, memf,
            params["lm_w_pad"], params["lm_b_pad"]]
    for lp in params["layers"]:
        flat.extend(lp[k] for k in LAYER_PARAM_KEYS)

    out = pl.pallas_call(
        fused_decoder_kernel,
        out_shape=jax.ShapeDtypeStruct((B, S, LM_PAD), jnp.float32),
        in_specs=[pl.BlockSpec(memory_space=pltpu.MemorySpace.VMEM)] * len(flat),
        out_specs=pl.BlockSpec(memory_space=pltpu.MemorySpace.VMEM),
    )(*flat)
    return out[..., :N_VOCAB]


# ============================== parameters ==============================

def init_params(key):
    """Raw parameters in PyTorch-style layout (wqkv = [Wq^T | Wk^T | Wv^T])."""
    ks = iter(jax.random.split(key, 64))

    def w(shape, scale=0.05):
        return (scale * jax.random.normal(next(ks), shape)).astype(jnp.float32)

    emb = w((N_VOCAB, EMBED_DIM), scale=0.5).at[PAD_IDX].set(0.0)

    layers = []
    for _ in range(NUM_LAYERS):
        layers.append(dict(
            sa_wqkv=w((EMBED_DIM, 3 * EMBED_DIM)),
            sa_bqkv=w((1, 3 * EMBED_DIM), scale=0.01),
            sa_wo=w((EMBED_DIM, EMBED_DIM)),
            sa_bo=w((1, EMBED_DIM), scale=0.01),
            ca_wqkv=w((EMBED_DIM, 3 * EMBED_DIM)),
            ca_bqkv=w((1, 3 * EMBED_DIM), scale=0.01),
            ca_wo=w((EMBED_DIM, EMBED_DIM)),
            ca_bo=w((1, EMBED_DIM), scale=0.01),
            w1=w((EMBED_DIM, DIM_FF)),
            b1=w((1, DIM_FF), scale=0.01),
            w2=w((DIM_FF, EMBED_DIM)),
            b2=w((1, EMBED_DIM), scale=0.01),
            g1=jnp.ones((1, EMBED_DIM), jnp.float32),
            be1=jnp.zeros((1, EMBED_DIM), jnp.float32),
            g2=jnp.ones((1, EMBED_DIM), jnp.float32),
            be2=jnp.zeros((1, EMBED_DIM), jnp.float32),
            g3=jnp.ones((1, EMBED_DIM), jnp.float32),
            be3=jnp.zeros((1, EMBED_DIM), jnp.float32),
        ))

    lm_w = w((EMBED_DIM, N_VOCAB))
    lm_b = w((1, N_VOCAB), scale=0.01)
    return dict(embedding=emb, layers=layers, lm_w=lm_w, lm_b=lm_b)


def prepare_params(raw):
    """Kernel-friendly layout: fold 1/sqrt(head_dim) into Q weights/bias, split the
    cross-attn projection into Q and fused-KV blocks, pad lm_head to 128 columns."""
    scale = 1.0 / math.sqrt(HEAD_DIM)
    layers = []
    for lp in raw["layers"]:
        layers.append(dict(
            sa_wqkv=lp["sa_wqkv"].at[:, :EMBED_DIM].multiply(scale),
            sa_bqkv=lp["sa_bqkv"].at[:, :EMBED_DIM].multiply(scale),
            sa_wo=lp["sa_wo"], sa_bo=lp["sa_bo"],
            ca_wq=lp["ca_wqkv"][:, :EMBED_DIM] * scale,
            ca_bq=lp["ca_bqkv"][:, :EMBED_DIM] * scale,
            ca_wkv=lp["ca_wqkv"][:, EMBED_DIM:],
            ca_bkv=lp["ca_bqkv"][:, EMBED_DIM:],
            ca_wo=lp["ca_wo"], ca_bo=lp["ca_bo"],
            w1=lp["w1"], b1=lp["b1"], w2=lp["w2"], b2=lp["b2"],
            g1=lp["g1"], be1=lp["be1"], g2=lp["g2"], be2=lp["be2"],
            g3=lp["g3"], be3=lp["be3"],
        ))
    lm_w_pad = jnp.zeros((EMBED_DIM, LM_PAD), jnp.float32).at[:, :N_VOCAB].set(raw["lm_w"])
    lm_b_pad = jnp.zeros((1, LM_PAD), jnp.float32).at[:, :N_VOCAB].set(raw["lm_b"])
    return dict(embedding=raw["embedding"], layers=layers,
                lm_w_pad=lm_w_pad, lm_b_pad=lm_b_pad)


# ============================== pure-JAX reference (for verification) ==============================

def reference_forward(raw, input_seq, memory):
    B, S = input_seq.shape
    x = raw["embedding"][input_seq] + positional_encoding(S, EMBED_DIM)[None]
    mem = jnp.transpose(memory, (1, 0, 2))
    mask = causal_mask(S)[None] + jnp.where(input_seq == PAD_IDX, NEG, 0.0)[:, None, :]
    scale = 1.0 / math.sqrt(HEAD_DIM)

    def split(t):
        b_, s_, _ = t.shape
        return t.reshape(b_, s_, NHEAD, HEAD_DIM).transpose(0, 2, 1, 3)

    def mha(qin, kvin, wqkv, bqkv, wo, bo, msk):
        q = qin @ wqkv[:, :EMBED_DIM] + bqkv[:, :EMBED_DIM]
        k = kvin @ wqkv[:, EMBED_DIM:2 * EMBED_DIM] + bqkv[:, EMBED_DIM:2 * EMBED_DIM]
        v = kvin @ wqkv[:, 2 * EMBED_DIM:] + bqkv[:, 2 * EMBED_DIM:]
        qh, kh, vh = split(q) * scale, split(k), split(v)
        sc = jnp.einsum("bhqd,bhkd->bhqk", qh, kh)
        if msk is not None:
            sc = sc + msk[:, None]
        p = jax.nn.softmax(sc, axis=-1)
        o = jnp.einsum("bhqk,bhkd->bhqd", p, vh)
        o = o.transpose(0, 2, 1, 3).reshape(qin.shape[0], qin.shape[1], EMBED_DIM)
        return o @ wo + bo

    def ln(t, g, b_):
        mu = t.mean(-1, keepdims=True)
        var = ((t - mu) ** 2).mean(-1, keepdims=True)
        return (t - mu) / jnp.sqrt(var + LN_EPS) * g + b_

    for lp in raw["layers"]:
        x = ln(x + mha(x, x, lp["sa_wqkv"], lp["sa_bqkv"], lp["sa_wo"], lp["sa_bo"], mask),
               lp["g1"], lp["be1"])
        x = ln(x + mha(x, mem, lp["ca_wqkv"], lp["ca_bqkv"], lp["ca_wo"], lp["ca_bo"], None),
               lp["g2"], lp["be2"])
        h = jax.nn.relu(x @ lp["w1"] + lp["b1"])
        x = ln(x + h @ lp["w2"] + lp["b2"], lp["g3"], lp["be3"])
    return x @ raw["lm_w"] + raw["lm_b"]


# ============================== main ==============================

if __name__ == "__main__":
    root = jax.random.PRNGKey(0)
    k_param, k_tok, k_mem = jax.random.split(root, 3)

    raw_params = init_params(k_param)
    params = prepare_params(raw_params)

    # tokens in [1, n_vocab); last position is PAD (exercises the padding mask)
    input_seq = jax.random.randint(k_tok, (BATCH, SEQ), 1, N_VOCAB, dtype=jnp.int32)
    input_seq = input_seq.at[:, -1].set(PAD_IDX)

    # memory in PyTorch convention (S_mem, B, E)
    memory = jax.random.normal(k_mem, (MEM_SEQ, BATCH, EMBED_DIM), dtype=jnp.float32)

    fwd = jax.jit(functools.partial(transformer_decoder_forward, params))
    logits = fwd(input_seq, memory)
    jax.block_until_ready(logits)

    assert logits.shape == (BATCH, SEQ, N_VOCAB), logits.shape
    assert logits.dtype == jnp.float32
    assert bool(jnp.all(jnp.isfinite(logits)))

    # numerical check against a plain-JAX reference of the original module math
    ref = reference_forward(raw_params, input_seq, memory)
    max_err = float(jnp.max(jnp.abs(logits - ref)))
    assert jnp.allclose(logits, ref, atol=5e-2, rtol=5e-2), max_err

    print("KERNEL_OK")
</pallas_src>

<mosaic_0001>
module attributes {stable_mosaic.version = 11 : i64} {
  func.func @fused_decoder_kernel(%arg0: memref<16x1xi32, #tpu.memory_space<vmem>>, %arg1: memref<28x64xf32, #tpu.memory_space<vmem>>, %arg2: memref<8x64xf32, #tpu.memory_space<vmem>>, %arg3: memref<16x8x8xf32, #tpu.memory_space<vmem>>, %arg4: memref<16x64xf32, #tpu.memory_space<vmem>>, %arg5: memref<64x128xf32, #tpu.memory_space<vmem>>, %arg6: memref<1x128xf32, #tpu.memory_space<vmem>>, %arg7: memref<64x192xf32, #tpu.memory_space<vmem>>, %arg8: memref<1x192xf32, #tpu.memory_space<vmem>>, %arg9: memref<64x64xf32, #tpu.memory_space<vmem>>, %arg10: memref<1x64xf32, #tpu.memory_space<vmem>>, %arg11: memref<64x64xf32, #tpu.memory_space<vmem>>, %arg12: memref<1x64xf32, #tpu.memory_space<vmem>>, %arg13: memref<64x128xf32, #tpu.memory_space<vmem>>, %arg14: memref<1x128xf32, #tpu.memory_space<vmem>>, %arg15: memref<64x64xf32, #tpu.memory_space<vmem>>, %arg16: memref<1x64xf32, #tpu.memory_space<vmem>>, %arg17: memref<64x128xf32, #tpu.memory_space<vmem>>, %arg18: memref<1x128xf32, #tpu.memory_space<vmem>>, %arg19: memref<128x64xf32, #tpu.memory_space<vmem>>, %arg20: memref<1x64xf32, #tpu.memory_space<vmem>>, %arg21: memref<1x64xf32, #tpu.memory_space<vmem>>, %arg22: memref<1x64xf32, #tpu.memory_space<vmem>>, %arg23: memref<1x64xf32, #tpu.memory_space<vmem>>, %arg24: memref<1x64xf32, #tpu.memory_space<vmem>>, %arg25: memref<1x64xf32, #tpu.memory_space<vmem>>, %arg26: memref<1x64xf32, #tpu.memory_space<vmem>>, %arg27: memref<64x192xf32, #tpu.memory_space<vmem>>, %arg28: memref<1x192xf32, #tpu.memory_space<vmem>>, %arg29: memref<64x64xf32, #tpu.memory_space<vmem>>, %arg30: memref<1x64xf32, #tpu.memory_space<vmem>>, %arg31: memref<64x64xf32, #tpu.memory_space<vmem>>, %arg32: memref<1x64xf32, #tpu.memory_space<vmem>>, %arg33: memref<64x128xf32, #tpu.memory_space<vmem>>, %arg34: memref<1x128xf32, #tpu.memory_space<vmem>>, %arg35: memref<64x64xf32, #tpu.memory_space<vmem>>, %arg36: memref<1x64xf32, #tpu.memory_space<vmem>>, %arg37: memref<64x128xf32, #tpu.memory_space<vmem>>, %arg38: memref<1x128xf32, #tpu.memory_space<vmem>>, %arg39: memref<128x64xf32, #tpu.memory_space<vmem>>, %arg40: memref<1x64xf32, #tpu.memory_space<vmem>>, %arg41: memref<1x64xf32, #tpu.memory_space<vmem>>, %arg42: memref<1x64xf32, #tpu.memory_space<vmem>>, %arg43: memref<1x64xf32, #tpu.memory_space<vmem>>, %arg44: memref<1x64xf32, #tpu.memory_space<vmem>>, %arg45: memref<1x64xf32, #tpu.memory_space<vmem>>, %arg46: memref<1x64xf32, #tpu.memory_space<vmem>>, %arg47: memref<2x8x128xf32, #tpu.memory_space<vmem>>) attributes {dimension_semantics = [], scalar_prefetch = 0 : i64, scratch_operands = 0 : i64, tpu.core_type = #tpu.core_type<tc>} {
    %c0 = arith.constant 0 : index
    %c0_0 = arith.constant 0 : index
    %0 = vector.load %arg0[%c0, %c0_0] : memref<16x1xi32, #tpu.memory_space<vmem>>, vector<16x1xi32>
    %1 = tpu.iota {dimensions = array<i32: 1>} : vector<16x28xi32>
    %2 = vector.broadcast %0 : vector<16x1xi32> to vector<16x28xi32>
    %3 = arith.cmpi eq, %2, %1 : vector<16x28xi32>
    %4 = arith.extui %3 : vector<16x28xi1> to vector<16x28xi32>
    %5 = arith.sitofp %4 : vector<16x28xi32> to vector<16x28xf32>
    %c0_1 = arith.constant 0 : index
    %c0_2 = arith.constant 0 : index
    %6 = vector.load %arg1[%c0_1, %c0_2] : memref<28x64xf32, #tpu.memory_space<vmem>>, vector<28x64xf32>
    %cst = arith.constant dense<0.000000e+00> : vector<16x64xf32>
    %7 = tpu.matmul %5, %6, %cst {dimension_numbers = #tpu.dot_dimension_numbers<[1], [0], [0], [1], [0, 0, 1, 1], [], []>} : vector<16x28xf32>, vector<28x64xf32>, vector<16x64xf32> -> vector<16x64xf32>
    %8 = vector.shape_cast %7 : vector<16x64xf32> to vector<2x8x64xf32>
    %c0_3 = arith.constant 0 : index
    %c0_4 = arith.constant 0 : index
    %9 = vector.load %arg2[%c0_3, %c0_4] : memref<8x64xf32, #tpu.memory_space<vmem>>, vector<8x64xf32>
    %10 = vector.shape_cast %9 : vector<8x64xf32> to vector<1x8x64xf32>
    %11 = vector.broadcast %10 : vector<1x8x64xf32> to vector<2x8x64xf32>
    %12 = arith.addf %8, %11 : vector<2x8x64xf32>
    %c0_5 = arith.constant 0 : index
    %c0_6 = arith.constant 0 : index
    %13 = vector.load %arg4[%c0_5, %c0_6] : memref<16x64xf32, #tpu.memory_space<vmem>>, vector<16x64xf32>
    %c0_7 = arith.constant 0 : index
    %c0_8 = arith.constant 0 : index
    %c0_9 = arith.constant 0 : index
    %14 = vector.load %arg3[%c0_7, %c0_8, %c0_9] : memref<16x8x8xf32, #tpu.memory_space<vmem>>, vector<16x8x8xf32>
    %c0_10 = arith.constant 0 : index
    %c0_11 = arith.constant 0 : index
    %15 = vector.load %arg7[%c0_10, %c0_11] : memref<64x192xf32, #tpu.memory_space<vmem>>, vector<64x192xf32>
    %c0_12 = arith.constant 0 : index
    %c0_13 = arith.constant 0 : index
    %16 = vector.load %arg8[%c0_12, %c0_13] : memref<1x192xf32, #tpu.memory_space<vmem>>, vector<1x192xf32>
    %c0_14 = arith.constant 0 : index
    %c0_15 = arith.constant 0 : index
    %17 = vector.load %arg9[%c0_14, %c0_15] : memref<64x64xf32, #tpu.memory_space<vmem>>, vector<64x64xf32>
    %c0_16 = arith.constant 0 : index
    %c0_17 = arith.constant 0 : index
    %18 = vector.load %arg10[%c0_16, %c0_17] : memref<1x64xf32, #tpu.memory_space<vmem>>, vector<1x64xf32>
    %c0_18 = arith.constant 0 : index
    %c0_19 = arith.constant 0 : index
    %19 = vector.load %arg11[%c0_18, %c0_19] : memref<64x64xf32, #tpu.memory_space<vmem>>, vector<64x64xf32>
    %c0_20 = arith.constant 0 : index
    %c0_21 = arith.constant 0 : index
    %20 = vector.load %arg12[%c0_20, %c0_21] : memref<1x64xf32, #tpu.memory_space<vmem>>, vector<1x64xf32>
    %c0_22 = arith.constant 0 : index
    %c0_23 = arith.constant 0 : index
    %21 = vector.load %arg13[%c0_22, %c0_23] : memref<64x128xf32, #tpu.memory_space<vmem>>, vector<64x128xf32>
    %c0_24 = arith.constant 0 : index
    %c0_25 = arith.constant 0 : index
    %22 = vector.load %arg14[%c0_24, %c0_25] : memref<1x128xf32, #tpu.memory_space<vmem>>, vector<1x128xf32>
    %c0_26 = arith.constant 0 : index
    %c0_27 = arith.constant 0 : index
    %23 = vector.load %arg15[%c0_26, %c0_27] : memref<64x64xf32, #tpu.memory_space<vmem>>, vector<64x64xf32>
    %c0_28 = arith.constant 0 : index
    %c0_29 = arith.constant 0 : index
    %24 = vector.load %arg16[%c0_28, %c0_29] : memref<1x64xf32, #tpu.memory_space<vmem>>, vector<1x64xf32>
    %c0_30 = arith.constant 0 : index
    %c0_31 = arith.constant 0 : index
    %25 = vector.load %arg17[%c0_30, %c0_31] : memref<64x128xf32, #tpu.memory_space<vmem>>, vector<64x128xf32>
    %c0_32 = arith.constant 0 : index
    %c0_33 = arith.constant 0 : index
    %26 = vector.load %arg18[%c0_32, %c0_33] : memref<1x128xf32, #tpu.memory_space<vmem>>, vector<1x128xf32>
    %c0_34 = arith.constant 0 : index
    %c0_35 = arith.constant 0 : index
    %27 = vector.load %arg19[%c0_34, %c0_35] : memref<128x64xf32, #tpu.memory_space<vmem>>, vector<128x64xf32>
    %c0_36 = arith.constant 0 : index
    %c0_37 = arith.constant 0 : index
    %28 = vector.load %arg20[%c0_36, %c0_37] : memref<1x64xf32, #tpu.memory_space<vmem>>, vector<1x64xf32>
    %c0_38 = arith.constant 0 : index
    %c0_39 = arith.constant 0 : index
    %29 = vector.load %arg21[%c0_38, %c0_39] : memref<1x64xf32, #tpu.memory_space<vmem>>, vector<1x64xf32>
    %c0_40 = arith.constant 0 : index
    %c0_41 = arith.constant 0 : index
    %30 = vector.load %arg22[%c0_40, %c0_41] : memref<1x64xf32, #tpu.memory_space<vmem>>, vector<1x64xf32>
    %c0_42 = arith.constant 0 : index
    %c0_43 = arith.constant 0 : index
    %31 = vector.load %arg23[%c0_42, %c0_43] : memref<1x64xf32, #tpu.memory_space<vmem>>, vector<1x64xf32>
    %c0_44 = arith.constant 0 : index
    %c0_45 = arith.constant 0 : index
    %32 = vector.load %arg24[%c0_44, %c0_45] : memref<1x64xf32, #tpu.memory_space<vmem>>, vector<1x64xf32>
    %c0_46 = arith.constant 0 : index
    %c0_47 = arith.constant 0 : index
    %33 = vector.load %arg25[%c0_46, %c0_47] : memref<1x64xf32, #tpu.memory_space<vmem>>, vector<1x64xf32>
    %c0_48 = arith.constant 0 : index
    %c0_49 = arith.constant 0 : index
    %34 = vector.load %arg26[%c0_48, %c0_49] : memref<1x64xf32, #tpu.memory_space<vmem>>, vector<1x64xf32>
    %35 = vector.shape_cast %12 : vector<2x8x64xf32> to vector<16x64xf32>
    %cst_50 = arith.constant dense<0.000000e+00> : vector<16x192xf32>
    %36 = tpu.matmul %35, %15, %cst_50 {dimension_numbers = #tpu.dot_dimension_numbers<[1], [0], [0], [1], [0, 0, 1, 1], [], []>} : vector<16x64xf32>, vector<64x192xf32>, vector<16x192xf32> -> vector<16x192xf32>
    %37 = vector.broadcast %16 : vector<1x192xf32> to vector<16x192xf32>
    %38 = arith.addf %36, %37 : vector<16x192xf32>
    %39 = vector.extract_strided_slice %38 {offsets = [0, 0], sizes = [16, 8], strides = [1, 1]} : vector<16x192xf32> to vector<16x8xf32>
    %40 = vector.shape_cast %39 : vector<16x8xf32> to vector<2x8x8xf32>
    %41 = vector.extract_strided_slice %38 {offsets = [0, 8], sizes = [16, 8], strides = [1, 1]} : vector<16x192xf32> to vector<16x8xf32>
    %42 = vector.shape_cast %41 : vector<16x8xf32> to vector<2x8x8xf32>
    %43 = vector.extract_strided_slice %38 {offsets = [0, 16], sizes = [16, 8], strides = [1, 1]} : vector<16x192xf32> to vector<16x8xf32>
    %44 = vector.shape_cast %43 : vector<16x8xf32> to vector<2x8x8xf32>
    %45 = vector.extract_strided_slice %38 {offsets = [0, 24], sizes = [16, 8], strides = [1, 1]} : vector<16x192xf32> to vector<16x8xf32>
    %46 = vector.shape_cast %45 : vector<16x8xf32> to vector<2x8x8xf32>
    %47 = vector.extract_strided_slice %38 {offsets = [0, 32], sizes = [16, 8], strides = [1, 1]} : vector<16x192xf32> to vector<16x8xf32>
    %48 = vector.shape_cast %47 : vector<16x8xf32> to vector<2x8x8xf32>
    %49 = vector.extract_strided_slice %38 {offsets = [0, 40], sizes = [16, 8], strides = [1, 1]} : vector<16x192xf32> to vector<16x8xf32>
    %50 = vector.shape_cast %49 : vector<16x8xf32> to vector<2x8x8xf32>
    %51 = vector.extract_strided_slice %38 {offsets = [0, 48], sizes = [16, 8], strides = [1, 1]} : vector<16x192xf32> to vector<16x8xf32>
    %52 = vector.shape_cast %51 : vector<16x8xf32> to vector<2x8x8xf32>
    %53 = vector.extract_strided_slice %38 {offsets = [0, 56], sizes = [16, 8], strides = [1, 1]} : vector<16x192xf32> to vector<16x8xf32>
    %54 = vector.shape_cast %53 : vector<16x8xf32> to vector<2x8x8xf32>
    %55 = tpu.concatenate %40, %42, %44, %46, %48, %50, %52, %54 in 0 : vector<2x8x8xf32>, vector<2x8x8xf32>, vector<2x8x8xf32>, vector<2x8x8xf32>, vector<2x8x8xf32>, vector<2x8x8xf32>, vector<2x8x8xf32>, vector<2x8x8xf32> -> vector<16x8x8xf32>
    %56 = vector.extract_strided_slice %38 {offsets = [0, 64], sizes = [16, 8], strides = [1, 1]} : vector<16x192xf32> to vector<16x8xf32>
    %57 = vector.shape_cast %56 : vector<16x8xf32> to vector<2x8x8xf32>
    %58 = vector.extract_strided_slice %38 {offsets = [0, 72], sizes = [16, 8], strides = [1, 1]} : vector<16x192xf32> to vector<16x8xf32>
    %59 = vector.shape_cast %58 : vector<16x8xf32> to vector<2x8x8xf32>
    %60 = vector.extract_strided_slice %38 {offsets = [0, 80], sizes = [16, 8], strides = [1, 1]} : vector<16x192xf32> to vector<16x8xf32>
    %61 = vector.shape_cast %60 : vector<16x8xf32> to vector<2x8x8xf32>
    %62 = vector.extract_strided_slice %38 {offsets = [0, 88], sizes = [16, 8], strides = [1, 1]} : vector<16x192xf32> to vector<16x8xf32>
    %63 = vector.shape_cast %62 : vector<16x8xf32> to vector<2x8x8xf32>
    %64 = vector.extract_strided_slice %38 {offsets = [0, 96], sizes = [16, 8], strides = [1, 1]} : vector<16x192xf32> to vector<16x8xf32>
    %65 = vector.shape_cast %64 : vector<16x8xf32> to vector<2x8x8xf32>
    %66 = vector.extract_strided_slice %38 {offsets = [0, 104], sizes = [16, 8], strides = [1, 1]} : vector<16x192xf32> to vector<16x8xf32>
    %67 = vector.shape_cast %66 : vector<16x8xf32> to vector<2x8x8xf32>
    %68 = vector.extract_strided_slice %38 {offsets = [0, 112], sizes = [16, 8], strides = [1, 1]} : vector<16x192xf32> to vector<16x8xf32>
    %69 = vector.shape_cast %68 : vector<16x8xf32> to vector<2x8x8xf32>
    %70 = vector.extract_strided_slice %38 {offsets = [0, 120], sizes = [16, 8], strides = [1, 1]} : vector<16x192xf32> to vector<16x8xf32>
    %71 = vector.shape_cast %70 : vector<16x8xf32> to vector<2x8x8xf32>
    %72 = tpu.concatenate %57, %59, %61, %63, %65, %67, %69, %71 in 0 : vector<2x8x8xf32>, vector<2x8x8xf32>, vector<2x8x8xf32>, vector<2x8x8xf32>, vector<2x8x8xf32>, vector<2x8x8xf32>, vector<2x8x8xf32>, vector<2x8x8xf32> -> vector<16x8x8xf32>
    %73 = vector.extract_strided_slice %38 {offsets = [0, 128], sizes = [16, 8], strides = [1, 1]} : vector<16x192xf32> to vector<16x8xf32>
    %74 = vector.shape_cast %73 : vector<16x8xf32> to vector<2x8x8xf32>
    %75 = vector.extract_strided_slice %38 {offsets = [0, 136], sizes = [16, 8], strides = [1, 1]} : vector<16x192xf32> to vector<16x8xf32>
    %76 = vector.shape_cast %75 : vector<16x8xf32> to vector<2x8x8xf32>
    %77 = vector.extract_strided_slice %38 {offsets = [0, 144], sizes = [16, 8], strides = [1, 1]} : vector<16x192xf32> to vector<16x8xf32>
    %78 = vector.shape_cast %77 : vector<16x8xf32> to vector<2x8x8xf32>
    %79 = vector.extract_strided_slice %38 {offsets = [0, 152], sizes = [16, 8], strides = [1, 1]} : vector<16x192xf32> to vector<16x8xf32>
    %80 = vector.shape_cast %79 : vector<16x8xf32> to vector<2x8x8xf32>
    %81 = vector.extract_strided_slice %38 {offsets = [0, 160], sizes = [16, 8], strides = [1, 1]} : vector<16x192xf32> to vector<16x8xf32>
    %82 = vector.shape_cast %81 : vector<16x8xf32> to vector<2x8x8xf32>
    %83 = vector.extract_strided_slice %38 {offsets = [0, 168], sizes = [16, 8], strides = [1, 1]} : vector<16x192xf32> to vector<16x8xf32>
    %84 = vector.shape_cast %83 : vector<16x8xf32> to vector<2x8x8xf32>
    %85 = vector.extract_strided_slice %38 {offsets = [0, 176], sizes = [16, 8], strides = [1, 1]} : vector<16x192xf32> to vector<16x8xf32>
    %86 = vector.shape_cast %85 : vector<16x8xf32> to vector<2x8x8xf32>
    %87 = vector.extract_strided_slice %38 {offsets = [0, 184], sizes = [16, 8], strides = [1, 1]} : vector<16x192xf32> to vector<16x8xf32>
    %88 = vector.shape_cast %87 : vector<16x8xf32> to vector<2x8x8xf32>
    %89 = tpu.concatenate %74, %76, %78, %80, %82, %84, %86, %88 in 0 : vector<2x8x8xf32>, vector<2x8x8xf32>, vector<2x8x8xf32>, vector<2x8x8xf32>, vector<2x8x8xf32>, vector<2x8x8xf32>, vector<2x8x8xf32>, vector<2x8x8xf32> -> vector<16x8x8xf32>
    "tpu.trace_start"() <{level = 10 : i32, message = "nqd,nkd->nqk"}> : () -> ()
    %cst_51 = arith.constant dense<0.000000e+00> : vector<16x8x8xf32>
    %90 = tpu.matmul %55, %72, %cst_51 {dimension_numbers = #tpu.dot_dimension_numbers<[2], [2], [1], [1], [0, 0, 0, 1, 1, 1], [0], [0]>} : vector<16x8x8xf32>, vector<16x8x8xf32>, vector<16x8x8xf32> -> vector<16x8x8xf32>
    "tpu.trace_stop"() : () -> ()
    %91 = arith.addf %90, %14 : vector<16x8x8xf32>
    %cst_52 = arith.constant dense<0xFF800000> : vector<16x8xf32>
    %92 = vector.multi_reduction <maximumf>, %91, %cst_52 [2] : vector<16x8x8xf32> to vector<16x8xf32>
    %93 = vector.shape_cast %92 : vector<16x8xf32> to vector<16x8x1xf32>
    %94 = vector.broadcast %93 : vector<16x8x1xf32> to vector<16x8x8xf32>
    %95 = arith.subf %91, %94 : vector<16x8x8xf32>
    %96 = math.exp %95 : vector<16x8x8xf32>
    %cst_53 = arith.constant dense<0.000000e+00> : vector<16x8xf32>
    %97 = vector.multi_reduction <add>, %96, %cst_53 [2] : vector<16x8x8xf32> to vector<16x8xf32>
    %98 = vector.shape_cast %97 : vector<16x8xf32> to vector<16x8x1xf32>
    %99 = tpu.reciprocal %98 {approx = true} : vector<16x8x1xf32> -> vector<16x8x1xf32>
    %100 = vector.broadcast %99 : vector<16x8x1xf32> to vector<16x8x8xf32>
    %101 = arith.mulf %96, %100 : vector<16x8x8xf32>
    "tpu.trace_start"() <{level = 10 : i32, message = "nqk,nkd->nqd"}> : () -> ()
    %cst_54 = arith.constant dense<0.000000e+00> : vector<16x8x8xf32>
    %102 = tpu.matmul %101, %89, %cst_54 {dimension_numbers = #tpu.dot_dimension_numbers<[2], [1], [1], [2], [0, 0, 0, 1, 1, 2], [0], [0]>} : vector<16x8x8xf32>, vector<16x8x8xf32>, vector<16x8x8xf32> -> vector<16x8x8xf32>
    "tpu.trace_stop"() : () -> ()
    %103 = vector.extract_strided_slice %102 {offsets = [0, 0, 0], sizes = [2, 8, 8], strides = [1, 1, 1]} : vector<16x8x8xf32> to vector<2x8x8xf32>
    %104 = vector.extract_strided_slice %102 {offsets = [2, 0, 0], sizes = [2, 8, 8], strides = [1, 1, 1]} : vector<16x8x8xf32> to vector<2x8x8xf32>
    %105 = vector.extract_strided_slice %102 {offsets = [4, 0, 0], sizes = [2, 8, 8], strides = [1, 1, 1]} : vector<16x8x8xf32> to vector<2x8x8xf32>
    %106 = vector.extract_strided_slice %102 {offsets = [6, 0, 0], sizes = [2, 8, 8], strides = [1, 1, 1]} : vector<16x8x8xf32> to vector<2x8x8xf32>
    %107 = vector.extract_strided_slice %102 {offsets = [8, 0, 0], sizes = [2, 8, 8], strides = [1, 1, 1]} : vector<16x8x8xf32> to vector<2x8x8xf32>
    %108 = vector.extract_strided_slice %102 {offsets = [10, 0, 0], sizes = [2, 8, 8], strides = [1, 1, 1]} : vector<16x8x8xf32> to vector<2x8x8xf32>
    %109 = vector.extract_strided_slice %102 {offsets = [12, 0, 0], sizes = [2, 8, 8], strides = [1, 1, 1]} : vector<16x8x8xf32> to vector<2x8x8xf32>
    %110 = vector.extract_strided_slice %102 {offsets = [14, 0, 0], sizes = [2, 8, 8], strides = [1, 1, 1]} : vector<16x8x8xf32> to vector<2x8x8xf32>
    %111 = tpu.concatenate %103, %104, %105, %106, %107, %108, %109, %110 in 2 : vector<2x8x8xf32>, vector<2x8x8xf32>, vector<2x8x8xf32>, vector<2x8x8xf32>, vector<2x8x8xf32>, vector<2x8x8xf32>, vector<2x8x8xf32>, vector<2x8x8xf32> -> vector<2x8x64xf32>
    %112 = vector.shape_cast %111 : vector<2x8x64xf32> to vector<16x64xf32>
    %cst_55 = arith.constant dense<0.000000e+00> : vector<16x64xf32>
    %113 = tpu.matmul %112, %17, %cst_55 {dimension_numbers = #tpu.dot_dimension_numbers<[1], [0], [0], [1], [0, 0, 1, 1], [], []>} : vector<16x64xf32>, vector<64x64xf32>, vector<16x64xf32> -> vector<16x64xf32>
    %114 = vector.broadcast %18 : vector<1x64xf32> to vector<16x64xf32>
    %115 = arith.addf %113, %114 : vector<16x64xf32>
    %116 = vector.shape_cast %115 : vector<16x64xf32> to vector<2x8x64xf32>
    %117 = arith.addf %12, %116 : vector<2x8x64xf32>
    %cst_56 = arith.constant dense<0.000000e+00> : vector<2x8xf32>
    %118 = vector.multi_reduction <add>, %117, %cst_56 [2] : vector<2x8x64xf32> to vector<2x8xf32>
    %119 = vector.shape_cast %118 : vector<2x8xf32> to vector<2x8x1xf32>
    %cst_57 = arith.constant 6.400000e+01 : f32
    %120 = vector.broadcast %cst_57 : f32 to vector<2x8x1xf32>
    %121 = arith.divf %119, %120 : vector<2x8x1xf32>
    %122 = vector.broadcast %121 : vector<2x8x1xf32> to vector<2x8x64xf32>
    %123 = arith.subf %117, %122 : vector<2x8x64xf32>
    %124 = arith.mulf %123, %123 : vector<2x8x64xf32>
    %cst_58 = arith.constant dense<0.000000e+00> : vector<2x8xf32>
    %125 = vector.multi_reduction <add>, %124, %cst_58 [2] : vector<2x8x64xf32> to vector<2x8xf32>
    %126 = vector.shape_cast %125 : vector<2x8xf32> to vector<2x8x1xf32>
    %cst_59 = arith.constant 6.400000e+01 : f32
    %127 = vector.broadcast %cst_59 : f32 to vector<2x8x1xf32>
    %128 = arith.divf %126, %127 : vector<2x8x1xf32>
    %129 = vector.broadcast %121 : vector<2x8x1xf32> to vector<2x8x64xf32>
    %130 = arith.subf %117, %129 : vector<2x8x64xf32>
    %cst_60 = arith.constant 9.99999974E-6 : f32
    %131 = vector.broadcast %cst_60 : f32 to vector<2x8x1xf32>
    %132 = arith.addf %128, %131 : vector<2x8x1xf32>
    %133 = math.rsqrt %132 : vector<2x8x1xf32>
    %134 = vector.broadcast %133 : vector<2x8x1xf32> to vector<2x8x64xf32>
    %135 = arith.mulf %130, %134 : vector<2x8x64xf32>
    %136 = vector.shape_cast %29 : vector<1x64xf32> to vector<1x1x64xf32>
    %137 = vector.broadcast %136 : vector<1x1x64xf32> to vector<2x8x64xf32>
    %138 = arith.mulf %135, %137 : vector<2x8x64xf32>
    %139 = vector.shape_cast %30 : vector<1x64xf32> to vector<1x1x64xf32>
    %140 = vector.broadcast %139 : vector<1x1x64xf32> to vector<2x8x64xf32>
    %141 = arith.addf %138, %140 : vector<2x8x64xf32>
    %142 = vector.shape_cast %141 : vector<2x8x64xf32> to vector<16x64xf32>
    %cst_61 = arith.constant dense<0.000000e+00> : vector<16x64xf32>
    %143 = tpu.matmul %142, %19, %cst_61 {dimension_numbers = #tpu.dot_dimension_numbers<[1], [0], [0], [1], [0, 0, 1, 1], [], []>} : vector<16x64xf32>, vector<64x64xf32>, vector<16x64xf32> -> vector<16x64xf32>
    %144 = vector.broadcast %20 : vector<1x64xf32> to vector<16x64xf32>
    %145 = arith.addf %143, %144 : vector<16x64xf32>
    %cst_62 = arith.constant dense<0.000000e+00> : vector<16x128xf32>
    %146 = tpu.matmul %13, %21, %cst_62 {dimension_numbers = #tpu.dot_dimension_numbers<[1], [0], [0], [1], [0, 0, 1, 1], [], []>} : vector<16x64xf32>, vector<64x128xf32>, vector<16x128xf32> -> vector<16x128xf32>
    %147 = vector.broadcast %22 : vector<1x128xf32> to vector<16x128xf32>
    %148 = arith.addf %146, %147 : vector<16x128xf32>
    %149 = vector.extract_strided_slice %145 {offsets = [0, 0], sizes = [16, 8], strides = [1, 1]} : vector<16x64xf32> to vector<16x8xf32>
    %150 = vector.shape_cast %149 : vector<16x8xf32> to vector<2x8x8xf32>
    %151 = vector.extract_strided_slice %145 {offsets = [0, 8], sizes = [16, 8], strides = [1, 1]} : vector<16x64xf32> to vector<16x8xf32>
    %152 = vector.shape_cast %151 : vector<16x8xf32> to vector<2x8x8xf32>
    %153 = vector.extract_strided_slice %145 {offsets = [0, 16], sizes = [16, 8], strides = [1, 1]} : vector<16x64xf32> to vector<16x8xf32>
    %154 = vector.shape_cast %153 : vector<16x8xf32> to vector<2x8x8xf32>
    %155 = vector.extract_strided_slice %145 {offsets = [0, 24], sizes = [16, 8], strides = [1, 1]} : vector<16x64xf32> to vector<16x8xf32>
    %156 = vector.shape_cast %155 : vector<16x8xf32> to vector<2x8x8xf32>
    %157 = vector.extract_strided_slice %145 {offsets = [0, 32], sizes = [16, 8], strides = [1, 1]} : vector<16x64xf32> to vector<16x8xf32>
    %158 = vector.shape_cast %157 : vector<16x8xf32> to vector<2x8x8xf32>
    %159 = vector.extract_strided_slice %145 {offsets = [0, 40], sizes = [16, 8], strides = [1, 1]} : vector<16x64xf32> to vector<16x8xf32>
    %160 = vector.shape_cast %159 : vector<16x8xf32> to vector<2x8x8xf32>
    %161 = vector.extract_strided_slice %145 {offsets = [0, 48], sizes = [16, 8], strides = [1, 1]} : vector<16x64xf32> to vector<16x8xf32>
    %162 = vector.shape_cast %161 : vector<16x8xf32> to vector<2x8x8xf32>
    %163 = vector.extract_strided_slice %145 {offsets = [0, 56], sizes = [16, 8], strides = [1, 1]} : vector<16x64xf32> to vector<16x8xf32>
    %164 = vector.shape_cast %163 : vector<16x8xf32> to vector<2x8x8xf32>
    %165 = tpu.concatenate %150, %152, %154, %156, %158, %160, %162, %164 in 0 : vector<2x8x8xf32>, vector<2x8x8xf32>, vector<2x8x8xf32>, vector<2x8x8xf32>, vector<2x8x8xf32>, vector<2x8x8xf32>, vector<2x8x8xf32>, vector<2x8x8xf32> -> vector<16x8x8xf32>
    %166 = vector.extract_strided_slice %148 {offsets = [0, 0], sizes = [16, 8], strides = [1, 1]} : vector<16x128xf32> to vector<16x8xf32>
    %167 = vector.shape_cast %166 : vector<16x8xf32> to vector<2x8x8xf32>
    %168 = vector.extract_strided_slice %148 {offsets = [0, 8], sizes = [16, 8], strides = [1, 1]} : vector<16x128xf32> to vector<16x8xf32>
    %169 = vector.shape_cast %168 : vector<16x8xf32> to vector<2x8x8xf32>
    %170 = vector.extract_strided_slice %148 {offsets = [0, 16], sizes = [16, 8], strides = [1, 1]} : vector<16x128xf32> to vector<16x8xf32>
    %171 = vector.shape_cast %170 : vector<16x8xf32> to vector<2x8x8xf32>
    %172 = vector.extract_strided_slice %148 {offsets = [0, 24], sizes = [16, 8], strides = [1, 1]} : vector<16x128xf32> to vector<16x8xf32>
    %173 = vector.shape_cast %172 : vector<16x8xf32> to vector<2x8x8xf32>
    %174 = vector.extract_strided_slice %148 {offsets = [0, 32], sizes = [16, 8], strides = [1, 1]} : vector<16x128xf32> to vector<16x8xf32>
    %175 = vector.shape_cast %174 : vector<16x8xf32> to vector<2x8x8xf32>
    %176 = vector.extract_strided_slice %148 {offsets = [0, 40], sizes = [16, 8], strides = [1, 1]} : vector<16x128xf32> to vector<16x8xf32>
    %177 = vector.shape_cast %176 : vector<16x8xf32> to vector<2x8x8xf32>
    %178 = vector.extract_strided_slice %148 {offsets = [0, 48], sizes = [16, 8], strides = [1, 1]} : vector<16x128xf32> to vector<16x8xf32>
    %179 = vector.shape_cast %178 : vector<16x8xf32> to vector<2x8x8xf32>
    %180 = vector.extract_strided_slice %148 {offsets = [0, 56], sizes = [16, 8], strides = [1, 1]} : vector<16x128xf32> to vector<16x8xf32>
    %181 = vector.shape_cast %180 : vector<16x8xf32> to vector<2x8x8xf32>
    %182 = tpu.concatenate %167, %169, %171, %173, %175, %177, %179, %181 in 0 : vector<2x8x8xf32>, vector<2x8x8xf32>, vector<2x8x8xf32>, vector<2x8x8xf32>, vector<2x8x8xf32>, vector<2x8x8xf32>, vector<2x8x8xf32>, vector<2x8x8xf32> -> vector<16x8x8xf32>
    %183 = vector.extract_strided_slice %148 {offsets = [0, 64], sizes = [16, 8], strides = [1, 1]} : vector<16x128xf32> to vector<16x8xf32>
    %184 = vector.shape_cast %183 : vector<16x8xf32> to vector<2x8x8xf32>
    %185 = vector.extract_strided_slice %148 {offsets = [0, 72], sizes = [16, 8], strides = [1, 1]} : vector<16x128xf32> to vector<16x8xf32>
    %186 = vector.shape_cast %185 : vector<16x8xf32> to vector<2x8x8xf32>
    %187 = vector.extract_strided_slice %148 {offsets = [0, 80], sizes = [16, 8], strides = [1, 1]} : vector<16x128xf32> to vector<16x8xf32>
    %188 = vector.shape_cast %187 : vector<16x8xf32> to vector<2x8x8xf32>
    %189 = vector.extract_strided_slice %148 {offsets = [0, 88], sizes = [16, 8], strides = [1, 1]} : vector<16x128xf32> to vector<16x8xf32>
    %190 = vector.shape_cast %189 : vector<16x8xf32> to vector<2x8x8xf32>
    %191 = vector.extract_strided_slice %148 {offsets = [0, 96], sizes = [16, 8], strides = [1, 1]} : vector<16x128xf32> to vector<16x8xf32>
    %192 = vector.shape_cast %191 : vector<16x8xf32> to vector<2x8x8xf32>
    %193 = vector.extract_strided_slice %148 {offsets = [0, 104], sizes = [16, 8], strides = [1, 1]} : vector<16x128xf32> to vector<16x8xf32>
    %194 = vector.shape_cast %193 : vector<16x8xf32> to vector<2x8x8xf32>
    %195 = vector.extract_strided_slice %148 {offsets = [0, 112], sizes = [16, 8], strides = [1, 1]} : vector<16x128xf32> to vector<16x8xf32>
    %196 = vector.shape_cast %195 : vector<16x8xf32> to vector<2x8x8xf32>
    %197 = vector.extract_strided_slice %148 {offsets = [0, 120], sizes = [16, 8], strides = [1, 1]} : vector<16x128xf32> to vector<16x8xf32>
    %198 = vector.shape_cast %197 : vector<16x8xf32> to vector<2x8x8xf32>
    %199 = tpu.concatenate %184, %186, %188, %190, %192, %194, %196, %198 in 0 : vector<2x8x8xf32>, vector<2x8x8xf32>, vector<2x8x8xf32>, vector<2x8x8xf32>, vector<2x8x8xf32>, vector<2x8x8xf32>, vector<2x8x8xf32>, vector<2x8x8xf32> -> vector<16x8x8xf32>
    "tpu.trace_start"() <{level = 10 : i32, message = "nqd,nkd->nqk"}> : () -> ()
    %cst_63 = arith.constant dense<0.000000e+00> : vector<16x8x8xf32>
    %200 = tpu.matmul %165, %182, %cst_63 {dimension_numbers = #tpu.dot_dimension_numbers<[2], [2], [1], [1], [0, 0, 0, 1, 1, 1], [0], [0]>} : vector<16x8x8xf32>, vector<16x8x8xf32>, vector<16x8x8xf32> -> vector<16x8x8xf32>
    "tpu.trace_stop"() : () -> ()
    %cst_64 = arith.constant dense<0xFF800000> : vector<16x8xf32>
    %201 = vector.multi_reduction <maximumf>, %200, %cst_64 [2] : vector<16x8x8xf32> to vector<16x8xf32>
    %202 = vector.shape_cast %201 : vector<16x8xf32> to vector<16x8x1xf32>
    %203 = vector.broadcast %202 : vector<16x8x1xf32> to vector<16x8x8xf32>
    %204 = arith.subf %200, %203 : vector<16x8x8xf32>
    %205 = math.exp %204 : vector<16x8x8xf32>
    %cst_65 = arith.constant dense<0.000000e+00> : vector<16x8xf32>
    %206 = vector.multi_reduction <add>, %205, %cst_65 [2] : vector<16x8x8xf32> to vector<16x8xf32>
    %207 = vector.shape_cast %206 : vector<16x8xf32> to vector<16x8x1xf32>
    %208 = tpu.reciprocal %207 {approx = true} : vector<16x8x1xf32> -> vector<16x8x1xf32>
    %209 = vector.broadcast %208 : vector<16x8x1xf32> to vector<16x8x8xf32>
    %210 = arith.mulf %205, %209 : vector<16x8x8xf32>
    "tpu.trace_start"() <{level = 10 : i32, message = "nqk,nkd->nqd"}> : () -> ()
    %cst_66 = arith.constant dense<0.000000e+00> : vector<16x8x8xf32>
    %211 = tpu.matmul %210, %199, %cst_66 {dimension_numbers = #tpu.dot_dimension_numbers<[2], [1], [1], [2], [0, 0, 0, 1, 1, 2], [0], [0]>} : vector<16x8x8xf32>, vector<16x8x8xf32>, vector<16x8x8xf32> -> vector<16x8x8xf32>
    "tpu.trace_stop"() : () -> ()
    %212 = vector.extract_strided_slice %211 {offsets = [0, 0, 0], sizes = [2, 8, 8], strides = [1, 1, 1]} : vector<16x8x8xf32> to vector<2x8x8xf32>
    %213 = vector.extract_strided_slice %211 {offsets = [2, 0, 0], sizes = [2, 8, 8], strides = [1, 1, 1]} : vector<16x8x8xf32> to vector<2x8x8xf32>
    %214 = vector.extract_strided_slice %211 {offsets = [4, 0, 0], sizes = [2, 8, 8], strides = [1, 1, 1]} : vector<16x8x8xf32> to vector<2x8x8xf32>
    %215 = vector.extract_strided_slice %211 {offsets = [6, 0, 0], sizes = [2, 8, 8], strides = [1, 1, 1]} : vector<16x8x8xf32> to vector<2x8x8xf32>
    %216 = vector.extract_strided_slice %211 {offsets = [8, 0, 0], sizes = [2, 8, 8], strides = [1, 1, 1]} : vector<16x8x8xf32> to vector<2x8x8xf32>
    %217 = vector.extract_strided_slice %211 {offsets = [10, 0, 0], sizes = [2, 8, 8], strides = [1, 1, 1]} : vector<16x8x8xf32> to vector<2x8x8xf32>
    %218 = vector.extract_strided_slice %211 {offsets = [12, 0, 0], sizes = [2, 8, 8], strides = [1, 1, 1]} : vector<16x8x8xf32> to vector<2x8x8xf32>
    %219 = vector.extract_strided_slice %211 {offsets = [14, 0, 0], sizes = [2, 8, 8], strides = [1, 1, 1]} : vector<16x8x8xf32> to vector<2x8x8xf32>
    %220 = tpu.concatenate %212, %213, %214, %215, %216, %217, %218, %219 in 2 : vector<2x8x8xf32>, vector<2x8x8xf32>, vector<2x8x8xf32>, vector<2x8x8xf32>, vector<2x8x8xf32>, vector<2x8x8xf32>, vector<2x8x8xf32>, vector<2x8x8xf32> -> vector<2x8x64xf32>
    %221 = vector.shape_cast %220 : vector<2x8x64xf32> to vector<16x64xf32>
    %cst_67 = arith.constant dense<0.000000e+00> : vector<16x64xf32>
    %222 = tpu.matmul %221, %23, %cst_67 {dimension_numbers = #tpu.dot_dimension_numbers<[1], [0], [0], [1], [0, 0, 1, 1], [], []>} : vector<16x64xf32>, vector<64x64xf32>, vector<16x64xf32> -> vector<16x64xf32>
    %223 = vector.broadcast %24 : vector<1x64xf32> to vector<16x64xf32>
    %224 = arith.addf %222, %223 : vector<16x64xf32>
    %225 = vector.shape_cast %224 : vector<16x64xf32> to vector<2x8x64xf32>
    %226 = arith.addf %141, %225 : vector<2x8x64xf32>
    %cst_68 = arith.constant dense<0.000000e+00> : vector<2x8xf32>
    %227 = vector.multi_reduction <add>, %226, %cst_68 [2] : vector<2x8x64xf32> to vector<2x8xf32>
    %228 = vector.shape_cast %227 : vector<2x8xf32> to vector<2x8x1xf32>
    %cst_69 = arith.constant 6.400000e+01 : f32
    %229 = vector.broadcast %cst_69 : f32 to vector<2x8x1xf32>
    %230 = arith.divf %228, %229 : vector<2x8x1xf32>
    %231 = vector.broadcast %230 : vector<2x8x1xf32> to vector<2x8x64xf32>
    %232 = arith.subf %226, %231 : vector<2x8x64xf32>
    %233 = arith.mulf %232, %232 : vector<2x8x64xf32>
    %cst_70 = arith.constant dense<0.000000e+00> : vector<2x8xf32>
    %234 = vector.multi_reduction <add>, %233, %cst_70 [2] : vector<2x8x64xf32> to vector<2x8xf32>
    %235 = vector.shape_cast %234 : vector<2x8xf32> to vector<2x8x1xf32>
    %cst_71 = arith.constant 6.400000e+01 : f32
    %236 = vector.broadcast %cst_71 : f32 to vector<2x8x1xf32>
    %237 = arith.divf %235, %236 : vector<2x8x1xf32>
    %238 = vector.broadcast %230 : vector<2x8x1xf32> to vector<2x8x64xf32>
    %239 = arith.subf %226, %238 : vector<2x8x64xf32>
    %cst_72 = arith.constant 9.99999974E-6 : f32
    %240 = vector.broadcast %cst_72 : f32 to vector<2x8x1xf32>
    %241 = arith.addf %237, %240 : vector<2x8x1xf32>
    %242 = math.rsqrt %241 : vector<2x8x1xf32>
    %243 = vector.broadcast %242 : vector<2x8x1xf32> to vector<2x8x64xf32>
    %244 = arith.mulf %239, %243 : vector<2x8x64xf32>
    %245 = vector.shape_cast %31 : vector<1x64xf32> to vector<1x1x64xf32>
    %246 = vector.broadcast %245 : vector<1x1x64xf32> to vector<2x8x64xf32>
    %247 = arith.mulf %244, %246 : vector<2x8x64xf32>
    %248 = vector.shape_cast %32 : vector<1x64xf32> to vector<1x1x64xf32>
    %249 = vector.broadcast %248 : vector<1x1x64xf32> to vector<2x8x64xf32>
    %250 = arith.addf %247, %249 : vector<2x8x64xf32>
    %251 = vector.shape_cast %250 : vector<2x8x64xf32> to vector<16x64xf32>
    %cst_73 = arith.constant dense<0.000000e+00> : vector<16x128xf32>
    %252 = tpu.matmul %251, %25, %cst_73 {dimension_numbers = #tpu.dot_dimension_numbers<[1], [0], [0], [1], [0, 0, 1, 1], [], []>} : vector<16x64xf32>, vector<64x128xf32>, vector<16x128xf32> -> vector<16x128xf32>
    %253 = vector.broadcast %26 : vector<1x128xf32> to vector<16x128xf32>
    %254 = arith.addf %252, %253 : vector<16x128xf32>
    %cst_74 = arith.constant 0.000000e+00 : f32
    %255 = vector.broadcast %cst_74 : f32 to vector<16x128xf32>
    %256 = arith.maximumf %254, %255 : vector<16x128xf32>
    %cst_75 = arith.constant dense<0.000000e+00> : vector<16x64xf32>
    %257 = tpu.matmul %256, %27, %cst_75 {dimension_numbers = #tpu.dot_dimension_numbers<[1], [0], [0], [1], [0, 0, 1, 1], [], []>} : vector<16x128xf32>, vector<128x64xf32>, vector<16x64xf32> -> vector<16x64xf32>
    %258 = vector.broadcast %28 : vector<1x64xf32> to vector<16x64xf32>
    %259 = arith.addf %257, %258 : vector<16x64xf32>
    %260 = vector.shape_cast %259 : vector<16x64xf32> to vector<2x8x64xf32>
    %261 = arith.addf %250, %260 : vector<2x8x64xf32>
    %cst_76 = arith.constant dense<0.000000e+00> : vector<2x8xf32>
    %262 = vector.multi_reduction <add>, %261, %cst_76 [2] : vector<2x8x64xf32> to vector<2x8xf32>
    %263 = vector.shape_cast %262 : vector<2x8xf32> to vector<2x8x1xf32>
    %cst_77 = arith.constant 6.400000e+01 : f32
    %264 = vector.broadcast %cst_77 : f32 to vector<2x8x1xf32>
    %265 = arith.divf %263, %264 : vector<2x8x1xf32>
    %266 = vector.broadcast %265 : vector<2x8x1xf32> to vector<2x8x64xf32>
    %267 = arith.subf %261, %266 : vector<2x8x64xf32>
    %268 = arith.mulf %267, %267 : vector<2x8x64xf32>
    %cst_78 = arith.constant dense<0.000000e+00> : vector<2x8xf32>
    %269 = vector.multi_reduction <add>, %268, %cst_78 [2] : vector<2x8x64xf32> to vector<2x8xf32>
    %270 = vector.shape_cast %269 : vector<2x8xf32> to vector<2x8x1xf32>
    %cst_79 = arith.constant 6.400000e+01 : f32
    %271 = vector.broadcast %cst_79 : f32 to vector<2x8x1xf32>
    %272 = arith.divf %270, %271 : vector<2x8x1xf32>
    %273 = vector.broadcast %265 : vector<2x8x1xf32> to vector<2x8x64xf32>
    %274 = arith.subf %261, %273 : vector<2x8x64xf32>
    %cst_80 = arith.constant 9.99999974E-6 : f32
    %275 = vector.broadcast %cst_80 : f32 to vector<2x8x1xf32>
    %276 = arith.addf %272, %275 : vector<2x8x1xf32>
    %277 = math.rsqrt %276 : vector<2x8x1xf32>
    %278 = vector.broadcast %277 : vector<2x8x1xf32> to vector<2x8x64xf32>
    %279 = arith.mulf %274, %278 : vector<2x8x64xf32>
    %280 = vector.shape_cast %33 : vector<1x64xf32> to vector<1x1x64xf32>
    %281 = vector.broadcast %280 : vector<1x1x64xf32> to vector<2x8x64xf32>
    %282 = arith.mulf %279, %281 : vector<2x8x64xf32>
    %283 = vector.shape_cast %34 : vector<1x64xf32> to vector<1x1x64xf32>
    %284 = vector.broadcast %283 : vector<1x1x64xf32> to vector<2x8x64xf32>
    %285 = arith.addf %282, %284 : vector<2x8x64xf32>
    %c0_81 = arith.constant 0 : index
    %c0_82 = arith.constant 0 : index
    %286 = vector.load %arg27[%c0_81, %c0_82] : memref<64x192xf32, #tpu.memory_space<vmem>>, vector<64x192xf32>
    %c0_83 = arith.constant 0 : index
    %c0_84 = arith.constant 0 : index
    %287 = vector.load %arg28[%c0_83, %c0_84] : memref<1x192xf32, #tpu.memory_space<vmem>>, vector<1x192xf32>
    %c0_85 = arith.constant 0 : index
    %c0_86 = arith.constant 0 : index
    %288 = vector.load %arg29[%c0_85, %c0_86] : memref<64x64xf32, #tpu.memory_space<vmem>>, vector<64x64xf32>
    %c0_87 = arith.constant 0 : index
    %c0_88 = arith.constant 0 : index
    %289 = vector.load %arg30[%c0_87, %c0_88] : memref<1x64xf32, #tpu.memory_space<vmem>>, vector<1x64xf32>
    %c0_89 = arith.constant 0 : index
    %c0_90 = arith.constant 0 : index
    %290 = vector.load %arg31[%c0_89, %c0_90] : memref<64x64xf32, #tpu.memory_space<vmem>>, vector<64x64xf32>
    %c0_91 = arith.constant 0 : index
    %c0_92 = arith.constant 0 : index
    %291 = vector.load %arg32[%c0_91, %c0_92] : memref<1x64xf32, #tpu.memory_space<vmem>>, vector<1x64xf32>
    %c0_93 = arith.constant 0 : index
    %c0_94 = arith.constant 0 : index
    %292 = vector.load %arg33[%c0_93, %c0_94] : memref<64x128xf32, #tpu.memory_space<vmem>>, vector<64x128xf32>
    %c0_95 = arith.constant 0 : index
    %c0_96 = arith.constant 0 : index
    %293 = vector.load %arg34[%c0_95, %c0_96] : memref<1x128xf32, #tpu.memory_space<vmem>>, vector<1x128xf32>
    %c0_97 = arith.constant 0 : index
    %c0_98 = arith.constant 0 : index
    %294 = vector.load %arg35[%c0_97, %c0_98] : memref<64x64xf32, #tpu.memory_space<vmem>>, vector<64x64xf32>
    %c0_99 = arith.constant 0 : index
    %c0_100 = arith.constant 0 : index
    %295 = vector.load %arg36[%c0_99, %c0_100] : memref<1x64xf32, #tpu.memory_space<vmem>>, vector<1x64xf32>
    %c0_101 = arith.constant 0 : index
    %c0_102 = arith.constant 0 : index
    %296 = vector.load %arg37[%c0_101, %c0_102] : memref<64x128xf32, #tpu.memory_space<vmem>>, vector<64x128xf32>
    %c0_103 = arith.constant 0 : index
    %c0_104 = arith.constant 0 : index
    %297 = vector.load %arg38[%c0_103, %c0_104] : memref<1x128xf32, #tpu.memory_space<vmem>>, vector<1x128xf32>
    %c0_105 = arith.constant 0 : index
    %c0_106 = arith.constant 0 : index
    %298 = vector.load %arg39[%c0_105, %c0_106] : memref<128x64xf32, #tpu.memory_space<vmem>>, vector<128x64xf32>
    %c0_107 = arith.constant 0 : index
    %c0_108 = arith.constant 0 : index
    %299 = vector.load %arg40[%c0_107, %c0_108] : memref<1x64xf32, #tpu.memory_space<vmem>>, vector<1x64xf32>
    %c0_109 = arith.constant 0 : index
    %c0_110 = arith.constant 0 : index
    %300 = vector.load %arg41[%c0_109, %c0_110] : memref<1x64xf32, #tpu.memory_space<vmem>>, vector<1x64xf32>
    %c0_111 = arith.constant 0 : index
    %c0_112 = arith.constant 0 : index
    %301 = vector.load %arg42[%c0_111, %c0_112] : memref<1x64xf32, #tpu.memory_space<vmem>>, vector<1x64xf32>
    %c0_113 = arith.constant 0 : index
    %c0_114 = arith.constant 0 : index
    %302 = vector.load %arg43[%c0_113, %c0_114] : memref<1x64xf32, #tpu.memory_space<vmem>>, vector<1x64xf32>
    %c0_115 = arith.constant 0 : index
    %c0_116 = arith.constant 0 : index
    %303 = vector.load %arg44[%c0_115, %c0_116] : memref<1x64xf32, #tpu.memory_space<vmem>>, vector<1x64xf32>
    %c0_117 = arith.constant 0 : index
    %c0_118 = arith.constant 0 : index
    %304 = vector.load %arg45[%c0_117, %c0_118] : memref<1x64xf32, #tpu.memory_space<vmem>>, vector<1x64xf32>
    %c0_119 = arith.constant 0 : index
    %c0_120 = arith.constant 0 : index
    %305 = vector.load %arg46[%c0_119, %c0_120] : memref<1x64xf32, #tpu.memory_space<vmem>>, vector<1x64xf32>
    %306 = vector.shape_cast %285 : vector<2x8x64xf32> to vector<16x64xf32>
    %cst_121 = arith.constant dense<0.000000e+00> : vector<16x192xf32>
    %307 = tpu.matmul %306, %286, %cst_121 {dimension_numbers = #tpu.dot_dimension_numbers<[1], [0], [0], [1], [0, 0, 1, 1], [], []>} : vector<16x64xf32>, vector<64x192xf32>, vector<16x192xf32> -> vector<16x192xf32>
    %308 = vector.broadcast %287 : vector<1x192xf32> to vector<16x192xf32>
    %309 = arith.addf %307, %308 : vector<16x192xf32>
    %310 = vector.extract_strided_slice %309 {offsets = [0, 0], sizes = [16, 8], strides = [1, 1]} : vector<16x192xf32> to vector<16x8xf32>
    %311 = vector.shape_cast %310 : vector<16x8xf32> to vector<2x8x8xf32>
    %312 = vector.extract_strided_slice %309 {offsets = [0, 8], sizes = [16, 8], strides = [1, 1]} : vector<16x192xf32> to vector<16x8xf32>
    %313 = vector.shape_cast %312 : vector<16x8xf32> to vector<2x8x8xf32>
    %314 = vector.extract_strided_slice %309 {offsets = [0, 16], sizes = [16, 8], strides = [1, 1]} : vector<16x192xf32> to vector<16x8xf32>
    %315 = vector.shape_cast %314 : vector<16x8xf32> to vector<2x8x8xf32>
    %316 = vector.extract_strided_slice %309 {offsets = [0, 24], sizes = [16, 8], strides = [1, 1]} : vector<16x192xf32> to vector<16x8xf32>
    %317 = vector.shape_cast %316 : vector<16x8xf32> to vector<2x8x8xf32>
    %318 = vector.extract_strided_slice %309 {offsets = [0, 32], sizes = [16, 8], strides = [1, 1]} : vector<16x192xf32> to vector<16x8xf32>
    %319 = vector.shape_cast %318 : vector<16x8xf32> to vector<2x8x8xf32>
    %320 = vector.extract_strided_slice %309 {offsets = [0, 40], sizes = [16, 8], strides = [1, 1]} : vector<16x192xf32> to vector<16x8xf32>
    %321 = vector.shape_cast %320 : vector<16x8xf32> to vector<2x8x8xf32>
    %322 = vector.extract_strided_slice %309 {offsets = [0, 48], sizes = [16, 8], strides = [1, 1]} : vector<16x192xf32> to vector<16x8xf32>
    %323 = vector.shape_cast %322 : vector<16x8xf32> to vector<2x8x8xf32>
    %324 = vector.extract_strided_slice %309 {offsets = [0, 56], sizes = [16, 8], strides = [1, 1]} : vector<16x192xf32> to vector<16x8xf32>
    %325 = vector.shape_cast %324 : vector<16x8xf32> to vector<2x8x8xf32>
    %326 = tpu.concatenate %311, %313, %315, %317, %319, %321, %323, %325 in 0 : vector<2x8x8xf32>, vector<2x8x8xf32>, vector<2x8x8xf32>, vector<2x8x8xf32>, vector<2x8x8xf32>, vector<2x8x8xf32>, vector<2x8x8xf32>, vector<2x8x8xf32> -> vector<16x8x8xf32>
    %327 = vector.extract_strided_slice %309 {offsets = [0, 64], sizes = [16, 8], strides = [1, 1]} : vector<16x192xf32> to vector<16x8xf32>
    %328 = vector.shape_cast %327 : vector<16x8xf32> to vector<2x8x8xf32>
    %329 = vector.extract_strided_slice %309 {offsets = [0, 72], sizes = [16, 8], strides = [1, 1]} : vector<16x192xf32> to vector<16x8xf32>
    %330 = vector.shape_cast %329 : vector<16x8xf32> to vector<2x8x8xf32>
    %331 = vector.extract_strided_slice %309 {offsets = [0, 80], sizes = [16, 8], strides = [1, 1]} : vector<16x192xf32> to vector<16x8xf32>
    %332 = vector.shape_cast %331 : vector<16x8xf32> to vector<2x8x8xf32>
    %333 = vector.extract_strided_slice %309 {offsets = [0, 88], sizes = [16, 8], strides = [1, 1]} : vector<16x192xf32> to vector<16x8xf32>
    %334 = vector.shape_cast %333 : vector<16x8xf32> to vector<2x8x8xf32>
    %335 = vector.extract_strided_slice %309 {offsets = [0, 96], sizes = [16, 8], strides = [1, 1]} : vector<16x192xf32> to vector<16x8xf32>
    %336 = vector.shape_cast %335 : vector<16x8xf32> to vector<2x8x8xf32>
    %337 = vector.extract_strided_slice %309 {offsets = [0, 104], sizes = [16, 8], strides = [1, 1]} : vector<16x192xf32> to vector<16x8xf32>
    %338 = vector.shape_cast %337 : vector<16x8xf32> to vector<2x8x8xf32>
    %339 = vector.extract_strided_slice %309 {offsets = [0, 112], sizes = [16, 8], strides = [1, 1]} : vector<16x192xf32> to vector<16x8xf32>
    %340 = vector.shape_cast %339 : vector<16x8xf32> to vector<2x8x8xf32>
    %341 = vector.extract_strided_slice %309 {offsets = [0, 120], sizes = [16, 8], strides = [1, 1]} : vector<16x192xf32> to vector<16x8xf32>
    %342 = vector.shape_cast %341 : vector<16x8xf32> to vector<2x8x8xf32>
    %343 = tpu.concatenate %328, %330, %332, %334, %336, %338, %340, %342 in 0 : vector<2x8x8xf32>, vector<2x8x8xf32>, vector<2x8x8xf32>, vector<2x8x8xf32>, vector<2x8x8xf32>, vector<2x8x8xf32>, vector<2x8x8xf32>, vector<2x8x8xf32> -> vector<16x8x8xf32>
    %344 = vector.extract_strided_slice %309 {offsets = [0, 128], sizes = [16, 8], strides = [1, 1]} : vector<16x192xf32> to vector<16x8xf32>
    %345 = vector.shape_cast %344 : vector<16x8xf32> to vector<2x8x8xf32>
    %346 = vector.extract_strided_slice %309 {offsets = [0, 136], sizes = [16, 8], strides = [1, 1]} : vector<16x192xf32> to vector<16x8xf32>
    %347 = vector.shape_cast %346 : vector<16x8xf32> to vector<2x8x8xf32>
    %348 = vector.extract_strided_slice %309 {offsets = [0, 144], sizes = [16, 8], strides = [1, 1]} : vector<16x192xf32> to vector<16x8xf32>
    %349 = vector.shape_cast %348 : vector<16x8xf32> to vector<2x8x8xf32>
    %350 = vector.extract_strided_slice %309 {offsets = [0, 152], sizes = [16, 8], strides = [1, 1]} : vector<16x192xf32> to vector<16x8xf32>
    %351 = vector.shape_cast %350 : vector<16x8xf32> to vector<2x8x8xf32>
    %352 = vector.extract_strided_slice %309 {offsets = [0, 160], sizes = [16, 8], strides = [1, 1]} : vector<16x192xf32> to vector<16x8xf32>
    %353 = vector.shape_cast %352 : vector<16x8xf32> to vector<2x8x8xf32>
    %354 = vector.extract_strided_slice %309 {offsets = [0, 168], sizes = [16, 8], strides = [1, 1]} : vector<16x192xf32> to vector<16x8xf32>
    %355 = vector.shape_cast %354 : vector<16x8xf32> to vector<2x8x8xf32>
    %356 = vector.extract_strided_slice %309 {offsets = [0, 176], sizes = [16, 8], strides = [1, 1]} : vector<16x192xf32> to vector<16x8xf32>
    %357 = vector.shape_cast %356 : vector<16x8xf32> to vector<2x8x8xf32>
    %358 = vector.extract_strided_slice %309 {offsets = [0, 184], sizes = [16, 8], strides = [1, 1]} : vector<16x192xf32> to vector<16x8xf32>
    %359 = vector.shape_cast %358 : vector<16x8xf32> to vector<2x8x8xf32>
    %360 = tpu.concatenate %345, %347, %349, %351, %353, %355, %357, %359 in 0 : vector<2x8x8xf32>, vector<2x8x8xf32>, vector<2x8x8xf32>, vector<2x8x8xf32>, vector<2x8x8xf32>, vector<2x8x8xf32>, vector<2x8x8xf32>, vector<2x8x8xf32> -> vector<16x8x8xf32>
    "tpu.trace_start"() <{level = 10 : i32, message = "nqd,nkd->nqk"}> : () -> ()
    %cst_122 = arith.constant dense<0.000000e+00> : vector<16x8x8xf32>
    %361 = tpu.matmul %326, %343, %cst_122 {dimension_numbers = #tpu.dot_dimension_numbers<[2], [2], [1], [1], [0, 0, 0, 1, 1, 1], [0], [0]>} : vector<16x8x8xf32>, vector<16x8x8xf32>, vector<16x8x8xf32> -> vector<16x8x8xf32>
    "tpu.trace_stop"() : () -> ()
    %362 = arith.addf %361, %14 : vector<16x8x8xf32>
    %cst_123 = arith.constant dense<0xFF800000> : vector<16x8xf32>
    %363 = vector.multi_reduction <maximumf>, %362, %cst_123 [2] : vector<16x8x8xf32> to vector<16x8xf32>
    %364 = vector.shape_cast %363 : vector<16x8xf32> to vector<16x8x1xf32>
    %365 = vector.broadcast %364 : vector<16x8x1xf32> to vector<16x8x8xf32>
    %366 = arith.subf %362, %365 : vector<16x8x8xf32>
    %367 = math.exp %366 : vector<16x8x8xf32>
    %cst_124 = arith.constant dense<0.000000e+00> : vector<16x8xf32>
    %368 = vector.multi_reduction <add>, %367, %cst_124 [2] : vector<16x8x8xf32> to vector<16x8xf32>
    %369 = vector.shape_cast %368 : vector<16x8xf32> to vector<16x8x1xf32>
    %370 = tpu.reciprocal %369 {approx = true} : vector<16x8x1xf32> -> vector<16x8x1xf32>
    %371 = vector.broadcast %370 : vector<16x8x1xf32> to vector<16x8x8xf32>
    %372 = arith.mulf %367, %371 : vector<16x8x8xf32>
    "tpu.trace_start"() <{level = 10 : i32, message = "nqk,nkd->nqd"}> : () -> ()
    %cst_125 = arith.constant dense<0.000000e+00> : vector<16x8x8xf32>
    %373 = tpu.matmul %372, %360, %cst_125 {dimension_numbers = #tpu.dot_dimension_numbers<[2], [1], [1], [2], [0, 0, 0, 1, 1, 2], [0], [0]>} : vector<16x8x8xf32>, vector<16x8x8xf32>, vector<16x8x8xf32> -> vector<16x8x8xf32>
    "tpu.trace_stop"() : () -> ()
    %374 = vector.extract_strided_slice %373 {offsets = [0, 0, 0], sizes = [2, 8, 8], strides = [1, 1, 1]} : vector<16x8x8xf32> to vector<2x8x8xf32>
    %375 = vector.extract_strided_slice %373 {offsets = [2, 0, 0], sizes = [2, 8, 8], strides = [1, 1, 1]} : vector<16x8x8xf32> to vector<2x8x8xf32>
    %376 = vector.extract_strided_slice %373 {offsets = [4, 0, 0], sizes = [2, 8, 8], strides = [1, 1, 1]} : vector<16x8x8xf32> to vector<2x8x8xf32>
    %377 = vector.extract_strided_slice %373 {offsets = [6, 0, 0], sizes = [2, 8, 8], strides = [1, 1, 1]} : vector<16x8x8xf32> to vector<2x8x8xf32>
    %378 = vector.extract_strided_slice %373 {offsets = [8, 0, 0], sizes = [2, 8, 8], strides = [1, 1, 1]} : vector<16x8x8xf32> to vector<2x8x8xf32>
    %379 = vector.extract_strided_slice %373 {offsets = [10, 0, 0], sizes = [2, 8, 8], strides = [1, 1, 1]} : vector<16x8x8xf32> to vector<2x8x8xf32>
    %380 = vector.extract_strided_slice %373 {offsets = [12, 0, 0], sizes = [2, 8, 8], strides = [1, 1, 1]} : vector<16x8x8xf32> to vector<2x8x8xf32>
    %381 = vector.extract_strided_slice %373 {offsets = [14, 0, 0], sizes = [2, 8, 8], strides = [1, 1, 1]} : vector<16x8x8xf32> to vector<2x8x8xf32>
    %382 = tpu.concatenate %374, %375, %376, %377, %378, %379, %380, %381 in 2 : vector<2x8x8xf32>, vector<2x8x8xf32>, vector<2x8x8xf32>, vector<2x8x8xf32>, vector<2x8x8xf32>, vector<2x8x8xf32>, vector<2x8x8xf32>, vector<2x8x8xf32> -> vector<2x8x64xf32>
    %383 = vector.shape_cast %382 : vector<2x8x64xf32> to vector<16x64xf32>
    %cst_126 = arith.constant dense<0.000000e+00> : vector<16x64xf32>
    %384 = tpu.matmul %383, %288, %cst_126 {dimension_numbers = #tpu.dot_dimension_numbers<[1], [0], [0], [1], [0, 0, 1, 1], [], []>} : vector<16x64xf32>, vector<64x64xf32>, vector<16x64xf32> -> vector<16x64xf32>
    %385 = vector.broadcast %289 : vector<1x64xf32> to vector<16x64xf32>
    %386 = arith.addf %384, %385 : vector<16x64xf32>
    %387 = vector.shape_cast %386 : vector<16x64xf32> to vector<2x8x64xf32>
    %388 = arith.addf %285, %387 : vector<2x8x64xf32>
    %cst_127 = arith.constant dense<0.000000e+00> : vector<2x8xf32>
    %389 = vector.multi_reduction <add>, %388, %cst_127 [2] : vector<2x8x64xf32> to vector<2x8xf32>
    %390 = vector.shape_cast %389 : vector<2x8xf32> to vector<2x8x1xf32>
    %cst_128 = arith.constant 6.400000e+01 : f32
    %391 = vector.broadcast %cst_128 : f32 to vector<2x8x1xf32>
    %392 = arith.divf %390, %391 : vector<2x8x1xf32>
    %393 = vector.broadcast %392 : vector<2x8x1xf32> to vector<2x8x64xf32>
    %394 = arith.subf %388, %393 : vector<2x8x64xf32>
    %395 = arith.mulf %394, %394 : vector<2x8x64xf32>
    %cst_129 = arith.constant dense<0.000000e+00> : vector<2x8xf32>
    %396 = vector.multi_reduction <add>, %395, %cst_129 [2] : vector<2x8x64xf32> to vector<2x8xf32>
    %397 = vector.shape_cast %396 : vector<2x8xf32> to vector<2x8x1xf32>
    %cst_130 = arith.constant 6.400000e+01 : f32
    %398 = vector.broadcast %cst_130 : f32 to vector<2x8x1xf32>
    %399 = arith.divf %397, %398 : vector<2x8x1xf32>
    %400 = vector.broadcast %392 : vector<2x8x1xf32> to vector<2x8x64xf32>
    %401 = arith.subf %388, %400 : vector<2x8x64xf32>
    %cst_131 = arith.constant 9.99999974E-6 : f32
    %402 = vector.broadcast %cst_131 : f32 to vector<2x8x1xf32>
    %403 = arith.addf %399, %402 : vector<2x8x1xf32>
    %404 = math.rsqrt %403 : vector<2x8x1xf32>
    %405 = vector.broadcast %404 : vector<2x8x1xf32> to vector<2x8x64xf32>
    %406 = arith.mulf %401, %405 : vector<2x8x64xf32>
    %407 = vector.shape_cast %300 : vector<1x64xf32> to vector<1x1x64xf32>
    %408 = vector.broadcast %407 : vector<1x1x64xf32> to vector<2x8x64xf32>
    %409 = arith.mulf %406, %408 : vector<2x8x64xf32>
    %410 = vector.shape_cast %301 : vector<1x64xf32> to vector<1x1x64xf32>
    %411 = vector.broadcast %410 : vector<1x1x64xf32> to vector<2x8x64xf32>
    %412 = arith.addf %409, %411 : vector<2x8x64xf32>
    %413 = vector.shape_cast %412 : vector<2x8x64xf32> to vector<16x64xf32>
    %cst_132 = arith.constant dense<0.000000e+00> : vector<16x64xf32>
    %414 = tpu.matmul %413, %290, %cst_132 {dimension_numbers = #tpu.dot_dimension_numbers<[1], [0], [0], [1], [0, 0, 1, 1], [], []>} : vector<16x64xf32>, vector<64x64xf32>, vector<16x64xf32> -> vector<16x64xf32>
    %415 = vector.broadcast %291 : vector<1x64xf32> to vector<16x64xf32>
    %416 = arith.addf %414, %415 : vector<16x64xf32>
    %cst_133 = arith.constant dense<0.000000e+00> : vector<16x128xf32>
    %417 = tpu.matmul %13, %292, %cst_133 {dimension_numbers = #tpu.dot_dimension_numbers<[1], [0], [0], [1], [0, 0, 1, 1], [], []>} : vector<16x64xf32>, vector<64x128xf32>, vector<16x128xf32> -> vector<16x128xf32>
    %418 = vector.broadcast %293 : vector<1x128xf32> to vector<16x128xf32>
    %419 = arith.addf %417, %418 : vector<16x128xf32>
    %420 = vector.extract_strided_slice %416 {offsets = [0, 0], sizes = [16, 8], strides = [1, 1]} : vector<16x64xf32> to vector<16x8xf32>
    %421 = vector.shape_cast %420 : vector<16x8xf32> to vector<2x8x8xf32>
    %422 = vector.extract_strided_slice %416 {offsets = [0, 8], sizes = [16, 8], strides = [1, 1]} : vector<16x64xf32> to vector<16x8xf32>
    %423 = vector.shape_cast %422 : vector<16x8xf32> to vector<2x8x8xf32>
    %424 = vector.extract_strided_slice %416 {offsets = [0, 16], sizes = [16, 8], strides = [1, 1]} : vector<16x64xf32> to vector<16x8xf32>
    %425 = vector.shape_cast %424 : vector<16x8xf32> to vector<2x8x8xf32>
    %426 = vector.extract_strided_slice %416 {offsets = [0, 24], sizes = [16, 8], strides = [1, 1]} : vector<16x64xf32> to vector<16x8xf32>
    %427 = vector.shape_cast %426 : vector<16x8xf32> to vector<2x8x8xf32>
    %428 = vector.extract_strided_slice %416 {offsets = [0, 32], sizes = [16, 8], strides = [1, 1]} : vector<16x64xf32> to vector<16x8xf32>
    %429 = vector.shape_cast %428 : vector<16x8xf32> to vector<2x8x8xf32>
    %430 = vector.extract_strided_slice %416 {offsets = [0, 40], sizes = [16, 8], strides = [1, 1]} : vector<16x64xf32> to vector<16x8xf32>
    %431 = vector.shape_cast %430 : vector<16x8xf32> to vector<2x8x8xf32>
    %432 = vector.extract_strided_slice %416 {offsets = [0, 48], sizes = [16, 8], strides = [1, 1]} : vector<16x64xf32> to vector<16x8xf32>
    %433 = vector.shape_cast %432 : vector<16x8xf32> to vector<2x8x8xf32>
    %434 = vector.extract_strided_slice %416 {offsets = [0, 56], sizes = [16, 8], strides = [1, 1]} : vector<16x64xf32> to vector<16x8xf32>
    %435 = vector.shape_cast %434 : vector<16x8xf32> to vector<2x8x8xf32>
    %436 = tpu.concatenate %421, %423, %425, %427, %429, %431, %433, %435 in 0 : vector<2x8x8xf32>, vector<2x8x8xf32>, vector<2x8x8xf32>, vector<2x8x8xf32>, vector<2x8x8xf32>, vector<2x8x8xf32>, vector<2x8x8xf32>, vector<2x8x8xf32> -> vector<16x8x8xf32>
    %437 = vector.extract_strided_slice %419 {offsets = [0, 0], sizes = [16, 8], strides = [1, 1]} : vector<16x128xf32> to vector<16x8xf32>
    %438 = vector.shape_cast %437 : vector<16x8xf32> to vector<2x8x8xf32>
    %439 = vector.extract_strided_slice %419 {offsets = [0, 8], sizes = [16, 8], strides = [1, 1]} : vector<16x128xf32> to vector<16x8xf32>
    %440 = vector.shape_cast %439 : vector<16x8xf32> to vector<2x8x8xf32>
    %441 = vector.extract_strided_slice %419 {offsets = [0, 16], sizes = [16, 8], strides = [1, 1]} : vector<16x128xf32> to vector<16x8xf32>
    %442 = vector.shape_cast %441 : vector<16x8xf32> to vector<2x8x8xf32>
    %443 = vector.extract_strided_slice %419 {offsets = [0, 24], sizes = [16, 8], strides = [1, 1]} : vector<16x128xf32> to vector<16x8xf32>
    %444 = vector.shape_cast %443 : vector<16x8xf32> to vector<2x8x8xf32>
    %445 = vector.extract_strided_slice %419 {offsets = [0, 32], sizes = [16, 8], strides = [1, 1]} : vector<16x128xf32> to vector<16x8xf32>
    %446 = vector.shape_cast %445 : vector<16x8xf32> to vector<2x8x8xf32>
    %447 = vector.extract_strided_slice %419 {offsets = [0, 40], sizes = [16, 8], strides = [1, 1]} : vector<16x128xf32> to vector<16x8xf32>
    %448 = vector.shape_cast %447 : vector<16x8xf32> to vector<2x8x8xf32>
    %449 = vector.extract_strided_slice %419 {offsets = [0, 48], sizes = [16, 8], strides = [1, 1]} : vector<16x128xf32> to vector<16x8xf32>
    %450 = vector.shape_cast %449 : vector<16x8xf32> to vector<2x8x8xf32>
    %451 = vector.extract_strided_slice %419 {offsets = [0, 56], sizes = [16, 8], strides = [1, 1]} : vector<16x128xf32> to vector<16x8xf32>
    %452 = vector.shape_cast %451 : vector<16x8xf32> to vector<2x8x8xf32>
    %453 = tpu.concatenate %438, %440, %442, %444, %446, %448, %450, %452 in 0 : vector<2x8x8xf32>, vector<2x8x8xf32>, vector<2x8x8xf32>, vector<2x8x8xf32>, vector<2x8x8xf32>, vector<2x8x8xf32>, vector<2x8x8xf32>, vector<2x8x8xf32> -> vector<16x8x8xf32>
    %454 = vector.extract_strided_slice %419 {offsets = [0, 64], sizes = [16, 8], strides = [1, 1]} : vector<16x128xf32> to vector<16x8xf32>
    %455 = vector.shape_cast %454 : vector<16x8xf32> to vector<2x8x8xf32>
    %456 = vector.extract_strided_slice %419 {offsets = [0, 72], sizes = [16, 8], strides = [1, 1]} : vector<16x128xf32> to vector<16x8xf32>
    %457 = vector.shape_cast %456 : vector<16x8xf32> to vector<2x8x8xf32>
    %458 = vector.extract_strided_slice %419 {offsets = [0, 80], sizes = [16, 8], strides = [1, 1]} : vector<16x128xf32> to vector<16x8xf32>
    %459 = vector.shape_cast %458 : vector<16x8xf32> to vector<2x8x8xf32>
    %460 = vector.extract_strided_slice %419 {offsets = [0, 88], sizes = [16, 8], strides = [1, 1]} : vector<16x128xf32> to vector<16x8xf32>
    %461 = vector.shape_cast %460 : vector<16x8xf32> to vector<2x8x8xf32>
    %462 = vector.extract_strided_slice %419 {offsets = [0, 96], sizes = [16, 8], strides = [1, 1]} : vector<16x128xf32> to vector<16x8xf32>
    %463 = vector.shape_cast %462 : vector<16x8xf32> to vector<2x8x8xf32>
    %464 = vector.extract_strided_slice %419 {offsets = [0, 104], sizes = [16, 8], strides = [1, 1]} : vector<16x128xf32> to vector<16x8xf32>
    %465 = vector.shape_cast %464 : vector<16x8xf32> to vector<2x8x8xf32>
    %466 = vector.extract_strided_slice %419 {offsets = [0, 112], sizes = [16, 8], strides = [1, 1]} : vector<16x128xf32> to vector<16x8xf32>
    %467 = vector.shape_cast %466 : vector<16x8xf32> to vector<2x8x8xf32>
    %468 = vector.extract_strided_slice %419 {offsets = [0, 120], sizes = [16, 8], strides = [1, 1]} : vector<16x128xf32> to vector<16x8xf32>
    %469 = vector.shape_cast %468 : vector<16x8xf32> to vector<2x8x8xf32>
    %470 = tpu.concatenate %455, %457, %459, %461, %463, %465, %467, %469 in 0 : vector<2x8x8xf32>, vector<2x8x8xf32>, vector<2x8x8xf32>, vector<2x8x8xf32>, vector<2x8x8xf32>, vector<2x8x8xf32>, vector<2x8x8xf32>, vector<2x8x8xf32> -> vector<16x8x8xf32>
    "tpu.trace_start"() <{level = 10 : i32, message = "nqd,nkd->nqk"}> : () -> ()
    %cst_134 = arith.constant dense<0.000000e+00> : vector<16x8x8xf32>
    %471 = tpu.matmul %436, %453, %cst_134 {dimension_numbers = #tpu.dot_dimension_numbers<[2], [2], [1], [1], [0, 0, 0, 1, 1, 1], [0], [0]>} : vector<16x8x8xf32>, vector<16x8x8xf32>, vector<16x8x8xf32> -> vector<16x8x8xf32>
    "tpu.trace_stop"() : () -> ()
    %cst_135 = arith.constant dense<0xFF800000> : vector<16x8xf32>
    %472 = vector.multi_reduction <maximumf>, %471, %cst_135 [2] : vector<16x8x8xf32> to vector<16x8xf32>
    %473 = vector.shape_cast %472 : vector<16x8xf32> to vector<16x8x1xf32>
    %474 = vector.broadcast %473 : vector<16x8x1xf32> to vector<16x8x8xf32>
    %475 = arith.subf %471, %474 : vector<16x8x8xf32>
    %476 = math.exp %475 : vector<16x8x8xf32>
    %cst_136 = arith.constant dense<0.000000e+00> : vector<16x8xf32>
    %477 = vector.multi_reduction <add>, %476, %cst_136 [2] : vector<16x8x8xf32> to vector<16x8xf32>
    %478 = vector.shape_cast %477 : vector<16x8xf32> to vector<16x8x1xf32>
    %479 = tpu.reciprocal %478 {approx = true} : vector<16x8x1xf32> -> vector<16x8x1xf32>
    %480 = vector.broadcast %479 : vector<16x8x1xf32> to vector<16x8x8xf32>
    %481 = arith.mulf %476, %480 : vector<16x8x8xf32>
    "tpu.trace_start"() <{level = 10 : i32, message = "nqk,nkd->nqd"}> : () -> ()
    %cst_137 = arith.constant dense<0.000000e+00> : vector<16x8x8xf32>
    %482 = tpu.matmul %481, %470, %cst_137 {dimension_numbers = #tpu.dot_dimension_numbers<[2], [1], [1], [2], [0, 0, 0, 1, 1, 2], [0], [0]>} : vector<16x8x8xf32>, vector<16x8x8xf32>, vector<16x8x8xf32> -> vector<16x8x8xf32>
    "tpu.trace_stop"() : () -> ()
    %483 = vector.extract_strided_slice %482 {offsets = [0, 0, 0], sizes = [2, 8, 8], strides = [1, 1, 1]} : vector<16x8x8xf32> to vector<2x8x8xf32>
    %484 = vector.extract_strided_slice %482 {offsets = [2, 0, 0], sizes = [2, 8, 8], strides = [1, 1, 1]} : vector<16x8x8xf32> to vector<2x8x8xf32>
    %485 = vector.extract_strided_slice %482 {offsets = [4, 0, 0], sizes = [2, 8, 8], strides = [1, 1, 1]} : vector<16x8x8xf32> to vector<2x8x8xf32>
    %486 = vector.extract_strided_slice %482 {offsets = [6, 0, 0], sizes = [2, 8, 8], strides = [1, 1, 1]} : vector<16x8x8xf32> to vector<2x8x8xf32>
    %487 = vector.extract_strided_slice %482 {offsets = [8, 0, 0], sizes = [2, 8, 8], strides = [1, 1, 1]} : vector<16x8x8xf32> to vector<2x8x8xf32>
    %488 = vector.extract_strided_slice %482 {offsets = [10, 0, 0], sizes = [2, 8, 8], strides = [1, 1, 1]} : vector<16x8x8xf32> to vector<2x8x8xf32>
    %489 = vector.extract_strided_slice %482 {offsets = [12, 0, 0], sizes = [2, 8, 8], strides = [1, 1, 1]} : vector<16x8x8xf32> to vector<2x8x8xf32>
    %490 = vector.extract_strided_slice %482 {offsets = [14, 0, 0], sizes = [2, 8, 8], strides = [1, 1, 1]} : vector<16x8x8xf32> to vector<2x8x8xf32>
    %491 = tpu.concatenate %483, %484, %485, %486, %487, %488, %489, %490 in 2 : vector<2x8x8xf32>, vector<2x8x8xf32>, vector<2x8x8xf32>, vector<2x8x8xf32>, vector<2x8x8xf32>, vector<2x8x8xf32>, vector<2x8x8xf32>, vector<2x8x8xf32> -> vector<2x8x64xf32>
    %492 = vector.shape_cast %491 : vector<2x8x64xf32> to vector<16x64xf32>
    %cst_138 = arith.constant dense<0.000000e+00> : vector<16x64xf32>
    %493 = tpu.matmul %492, %294, %cst_138 {dimension_numbers = #tpu.dot_dimension_numbers<[1], [0], [0], [1], [0, 0, 1, 1], [], []>} : vector<16x64xf32>, vector<64x64xf32>, vector<16x64xf32> -> vector<16x64xf32>
    %494 = vector.broadcast %295 : vector<1x64xf32> to vector<16x64xf32>
    %495 = arith.addf %493, %494 : vector<16x64xf32>
    %496 = vector.shape_cast %495 : vector<16x64xf32> to vector<2x8x64xf32>
    %497 = arith.addf %412, %496 : vector<2x8x64xf32>
    %cst_139 = arith.constant dense<0.000000e+00> : vector<2x8xf32>
    %498 = vector.multi_reduction <add>, %497, %cst_139 [2] : vector<2x8x64xf32> to vector<2x8xf32>
    %499 = vector.shape_cast %498 : vector<2x8xf32> to vector<2x8x1xf32>
    %cst_140 = arith.constant 6.400000e+01 : f32
    %500 = vector.broadcast %cst_140 : f32 to vector<2x8x1xf32>
    %501 = arith.divf %499, %500 : vector<2x8x1xf32>
    %502 = vector.broadcast %501 : vector<2x8x1xf32> to vector<2x8x64xf32>
    %503 = arith.subf %497, %502 : vector<2x8x64xf32>
    %504 = arith.mulf %503, %503 : vector<2x8x64xf32>
    %cst_141 = arith.constant dense<0.000000e+00> : vector<2x8xf32>
    %505 = vector.multi_reduction <add>, %504, %cst_141 [2] : vector<2x8x64xf32> to vector<2x8xf32>
    %506 = vector.shape_cast %505 : vector<2x8xf32> to vector<2x8x1xf32>
    %cst_142 = arith.constant 6.400000e+01 : f32
    %507 = vector.broadcast %cst_142 : f32 to vector<2x8x1xf32>
    %508 = arith.divf %506, %507 : vector<2x8x1xf32>
    %509 = vector.broadcast %501 : vector<2x8x1xf32> to vector<2x8x64xf32>
    %510 = arith.subf %497, %509 : vector<2x8x64xf32>
    %cst_143 = arith.constant 9.99999974E-6 : f32
    %511 = vector.broadcast %cst_143 : f32 to vector<2x8x1xf32>
    %512 = arith.addf %508, %511 : vector<2x8x1xf32>
    %513 = math.rsqrt %512 : vector<2x8x1xf32>
    %514 = vector.broadcast %513 : vector<2x8x1xf32> to vector<2x8x64xf32>
    %515 = arith.mulf %510, %514 : vector<2x8x64xf32>
    %516 = vector.shape_cast %302 : vector<1x64xf32> to vector<1x1x64xf32>
    %517 = vector.broadcast %516 : vector<1x1x64xf32> to vector<2x8x64xf32>
    %518 = arith.mulf %515, %517 : vector<2x8x64xf32>
    %519 = vector.shape_cast %303 : vector<1x64xf32> to vector<1x1x64xf32>
    %520 = vector.broadcast %519 : vector<1x1x64xf32> to vector<2x8x64xf32>
    %521 = arith.addf %518, %520 : vector<2x8x64xf32>
    %522 = vector.shape_cast %521 : vector<2x8x64xf32> to vector<16x64xf32>
    %cst_144 = arith.constant dense<0.000000e+00> : vector<16x128xf32>
    %523 = tpu.matmul %522, %296, %cst_144 {dimension_numbers = #tpu.dot_dimension_numbers<[1], [0], [0], [1], [0, 0, 1, 1], [], []>} : vector<16x64xf32>, vector<64x128xf32>, vector<16x128xf32> -> vector<16x128xf32>
    %524 = vector.broadcast %297 : vector<1x128xf32> to vector<16x128xf32>
    %525 = arith.addf %523, %524 : vector<16x128xf32>
    %cst_145 = arith.constant 0.000000e+00 : f32
    %526 = vector.broadcast %cst_145 : f32 to vector<16x128xf32>
    %527 = arith.maximumf %525, %526 : vector<16x128xf32>
    %cst_146 = arith.constant dense<0.000000e+00> : vector<16x64xf32>
    %528 = tpu.matmul %527, %298, %cst_146 {dimension_numbers = #tpu.dot_dimension_numbers<[1], [0], [0], [1], [0, 0, 1, 1], [], []>} : vector<16x128xf32>, vector<128x64xf32>, vector<16x64xf32> -> vector<16x64xf32>
    %529 = vector.broadcast %299 : vector<1x64xf32> to vector<16x64xf32>
    %530 = arith.addf %528, %529 : vector<16x64xf32>
    %531 = vector.shape_cast %530 : vector<16x64xf32> to vector<2x8x64xf32>
    %532 = arith.addf %521, %531 : vector<2x8x64xf32>
    %cst_147 = arith.constant dense<0.000000e+00> : vector<2x8xf32>
    %533 = vector.multi_reduction <add>, %532, %cst_147 [2] : vector<2x8x64xf32> to vector<2x8xf32>
    %534 = vector.shape_cast %533 : vector<2x8xf32> to vector<2x8x1xf32>
    %cst_148 = arith.constant 6.400000e+01 : f32
    %535 = vector.broadcast %cst_148 : f32 to vector<2x8x1xf32>
    %536 = arith.divf %534, %535 : vector<2x8x1xf32>
    %537 = vector.broadcast %536 : vector<2x8x1xf32> to vector<2x8x64xf32>
    %538 = arith.subf %532, %537 : vector<2x8x64xf32>
    %539 = arith.mulf %538, %538 : vector<2x8x64xf32>
    %cst_149 = arith.constant dense<0.000000e+00> : vector<2x8xf32>
    %540 = vector.multi_reduction <add>, %539, %cst_149 [2] : vector<2x8x64xf32> to vector<2x8xf32>
    %541 = vector.shape_cast %540 : vector<2x8xf32> to vector<2x8x1xf32>
    %cst_150 = arith.constant 6.400000e+01 : f32
    %542 = vector.broadcast %cst_150 : f32 to vector<2x8x1xf32>
    %543 = arith.divf %541, %542 : vector<2x8x1xf32>
    %544 = vector.broadcast %536 : vector<2x8x1xf32> to vector<2x8x64xf32>
    %545 = arith.subf %532, %544 : vector<2x8x64xf32>
    %cst_151 = arith.constant 9.99999974E-6 : f32
    %546 = vector.broadcast %cst_151 : f32 to vector<2x8x1xf32>
    %547 = arith.addf %543, %546 : vector<2x8x1xf32>
    %548 = math.rsqrt %547 : vector<2x8x1xf32>
    %549 = vector.broadcast %548 : vector<2x8x1xf32> to vector<2x8x64xf32>
    %550 = arith.mulf %545, %549 : vector<2x8x64xf32>
    %551 = vector.shape_cast %304 : vector<1x64xf32> to vector<1x1x64xf32>
    %552 = vector.broadcast %551 : vector<1x1x64xf32> to vector<2x8x64xf32>
    %553 = arith.mulf %550, %552 : vector<2x8x64xf32>
    %554 = vector.shape_cast %305 : vector<1x64xf32> to vector<1x1x64xf32>
    %555 = vector.broadcast %554 : vector<1x1x64xf32> to vector<2x8x64xf32>
    %556 = arith.addf %553, %555 : vector<2x8x64xf32>
    %557 = vector.shape_cast %556 : vector<2x8x64xf32> to vector<16x64xf32>
    %c0_152 = arith.constant 0 : index
    %c0_153 = arith.constant 0 : index
    %558 = vector.load %arg5[%c0_152, %c0_153] : memref<64x128xf32, #tpu.memory_space<vmem>>, vector<64x128xf32>
    %cst_154 = arith.constant dense<0.000000e+00> : vector<16x128xf32>
    %559 = tpu.matmul %557, %558, %cst_154 {dimension_numbers = #tpu.dot_dimension_numbers<[1], [0], [0], [1], [0, 0, 1, 1], [], []>} : vector<16x64xf32>, vector<64x128xf32>, vector<16x128xf32> -> vector<16x128xf32>
    %c0_155 = arith.constant 0 : index
    %c0_156 = arith.constant 0 : index
    %560 = vector.load %arg6[%c0_155, %c0_156] : memref<1x128xf32, #tpu.memory_space<vmem>>, vector<1x128xf32>
    %561 = vector.broadcast %560 : vector<1x128xf32> to vector<16x128xf32>
    %562 = arith.addf %559, %561 : vector<16x128xf32>
    %563 = vector.shape_cast %562 : vector<16x128xf32> to vector<2x8x128xf32>
    %c0_157 = arith.constant 0 : index
    %c0_158 = arith.constant 0 : index
    %c0_159 = arith.constant 0 : index
    %564 = vector.load %arg47[%c0_157, %c0_158, %c0_159] : memref<2x8x128xf32, #tpu.memory_space<vmem>>, vector<2x8x128xf32>
    tpu.vector_store %arg47[%c0_157, %c0_158, %c0_159], %563 {strides = array<i32>} : memref<2x8x128xf32, #tpu.memory_space<vmem>>, vector<2x8x128xf32>,
    return
  }
}

</mosaic_0001>

<bundles_post_ra>
// kernel: transformer_decoder_forward.1
= control target key start
LH: loop header
LB: loop body
LE: loop exit
PB: predicated region body
PF: predicated region fallthrough
CT: control target
= control target key end

     0   :  { %s7106_s6 = smov 1   ;;  %s7107_s10 = smov 2   ;;  %s9088_s0 = inlined_call_operand.smem [shape: u32[48], index: -1, kind: input, shape index: {}] }
   0x1   :  { %s7195_s5 = sld [smem:[%s9088_s0]]   ;;  %s7108_s14 = smov 3  }
   0x2   :  { %s7200_s9 = sld [smem:[%s9088_s0 + %s7106_s6]]   ;;  %s7109_s18 = smov 4  }
   0x3   :  { %s7205_s13 = sld [smem:[%s9088_s0 + %s7107_s10]]   ;;  %s7110_s22 = smov 5  }
   0x4   :  { %s7210_s17 = sld [smem:[%s9088_s0 + %s7108_s14]]   ;;  %s7111_s26 = smov 6  }
   0x5   :  { %s7215_s21 = sld [smem:[%s9088_s0 + %s7109_s18]]   ;;  %s7112_s30 = smov 7  }
   0x6   :  { %s7220_s25 = sld [smem:[%s9088_s0 + %s7110_s22]]   ;;  %s7113_s4 = smov 8  }
   0x7   :  { %s7225_s29 = sld [smem:[%s9088_s0 + %s7111_s26]]   ;;  %s7114_s10 = smov 9  }
   0x8   :  { %9095 = sst [smem:[#allocation32_spill]] %s7200_s9  ;;  %s7115_s15 = smov 10  }
   0x9   :  { %9096 = sst [smem:[#allocation33_spill]] %s7205_s13  ;;  %s7116_s20 = smov 11  }
   0xa   :  { %9097 = sst [smem:[#allocation34_spill]] %s7210_s17  ;;  %s7117_s26 = smov 12  }
   0xb   :  { %9098 = sst [smem:[#allocation35_spill]] %s7215_s21  ;;  %s7118_s1 = smov 13  }
   0xc   :  { %s7230_s3 = sld [smem:[%s9088_s0 + %s7112_s30]]   ;;  %s7119_s7 = smov 14  }
   0xd   :  { %s7235_s8 = sld [smem:[%s9088_s0 + %s7113_s4]]   ;;  %s7121_s22 = smov 16  }
   0xe   :  { %s7240_s14 = sld [smem:[%s9088_s0 + %s7114_s10]]   ;;  %s7122_s28 = smov 17  }
   0xf   :  { %s7245_s19 = sld [smem:[%s9088_s0 + %s7115_s15]]   ;;  %s7120_s15 = smov 15  }
  0x10   :  { %s7250_s24 = sld [smem:[%s9088_s0 + %s7116_s20]]  }
  0x11   :  { %s7255_s30 = sld [smem:[%s9088_s0 + %s7117_s26]]  }
  0x12   :  { %s7260_s6 = sld [smem:[%s9088_s0 + %s7118_s1]]  }
  0x13   :  { %9099 = sst [smem:[#allocation36_spill]] %s7235_s8 }
  0x14   :  { %s7265_s12 = sld [smem:[%s9088_s0 + %s7119_s7]]   ;;  %s7123_s7 = smov 18  }
  0x15   :  { %9100 = sst [smem:[#allocation37_spill]] %s7245_s19 }
  0x16   :  { %s7270_s20 = sld [smem:[%s9088_s0 + %s7120_s15]]   ;;  %s7124_s15 = smov 19  }
  0x17   :  { %9101 = sst [smem:[#allocation38_spill]] %s7255_s30 }
  0x18   :  { %s7275_s27 = sld [smem:[%s9088_s0 + %s7121_s22]]   ;;  %s7125_s22 = smov 20  }
  0x19   :  { %s7280_s4 = sld [smem:[%s9088_s0 + %s7122_s28]]   ;;  %s7126_s28 = smov 21  }
  0x1a   :  { %9102 = sst [smem:[#allocation39_spill]] %s7265_s12 }
  0x1b   :  { %s7285_s30 = sld [smem:[%s9088_s0 + %s7123_s7]]   ;;  %s7127_s7 = smov 22  }
  0x1c   :  { %s7290_s12 = sld [smem:[%s9088_s0 + %s7124_s15]]   ;;  %s7128_s15 = smov 23  }
  0x1d   :  { %s7300_s21 = sld [smem:[%s9088_s0 + %s7126_s28]]   ;;  %s7130_s28 = smov 25  }
  0x1e   :  { %9103 = sst [smem:[#allocation40_spill]] %s7275_s27 }
  0x1f   :  { %s7295_s27 = sld [smem:[%s9088_s0 + %s7125_s22]]   ;;  %s7129_s22 = smov 24  }
  0x21   :  { %9104 = sst [smem:[#allocation41_spill]] %s7285_s30 }
  0x22   :  { %9105 = sst [smem:[#allocation42_spill]] %s7290_s12 }
  0x23   :  { %9107 = sst [smem:[#allocation44_spill]] %s7300_s21 }
  0x24   :  { %s7305_s30 = sld [smem:[%s9088_s0 + %s7127_s7]]   ;;  %s7131_s7 = smov 26  }
  0x25   :  { %9106 = sst [smem:[#allocation43_spill]] %s7295_s27 }
  0x26   :  { %s7310_s12 = sld [smem:[%s9088_s0 + %s7128_s15]]   ;;  %s7132_s15 = smov 27  }
  0x27   :  { %s7315_s27 = sld [smem:[%s9088_s0 + %s7129_s22]]   ;;  %s7133_s22 = smov 28  }
  0x28   :  { %s7320_s21 = sld [smem:[%s9088_s0 + %s7130_s28]]   ;;  %s7134_s28 = smov 29  }
  0x2a   :  { %9108 = sst [smem:[#allocation45_spill]] %s7305_s30 }
  0x2b   :  { %s7325_s30 = sld [smem:[%s9088_s0 + %s7131_s7]]   ;;  %s7135_s7 = smov 30  }
  0x2c   :  { %9109 = sst [smem:[#allocation46_spill]] %s7310_s12 }
  0x2d   :  { %9110 = sst [smem:[#allocation47_spill]] %s7315_s27 }
  0x2e   :  { %9111 = sst [smem:[#allocation48_spill]] %s7320_s21 }
  0x2f   :  { %s7330_s12 = sld [smem:[%s9088_s0 + %s7132_s15]]   ;;  %s7136_s15 = smov 31  }
  0x30   :  { %s7335_s27 = sld [smem:[%s9088_s0 + %s7133_s22]]   ;;  %s7137_s22 = smov 32  }
  0x31   :  { %9112 = sst [smem:[#allocation49_spill]] %s7325_s30 }
  0x32   :  { %s7340_s21 = sld [smem:[%s9088_s0 + %s7134_s28]]   ;;  %s7138_s28 = smov 33  }
  0x33   :  { %s7345_s30 = sld [smem:[%s9088_s0 + %s7135_s7]]   ;;  %s7139_s7 = smov 34  }
  0x34   :  { %s7360_s19 = sld [smem:[%s9088_s0 + %s7138_s28]]   ;;  %s7142_s28 = smov 37  }
  0x35   :  { %9113 = sst [smem:[#allocation50_spill]] %s7330_s12 }
  0x36   :  { %9114 = sst [smem:[#allocation51_spill]] %s7335_s27 }
  0x37   :  { %s7350_s12 = sld [smem:[%s9088_s0 + %s7136_s15]]   ;;  %s7140_s15 = smov 35  }
  0x38   :  { %s7355_s27 = sld [smem:[%s9088_s0 + %s7137_s22]]   ;;  %s7141_s22 = smov 36  }
  0x39   :  { %9115 = sst [smem:[#allocation52_spill]] %s7345_s30 }
  0x3a   :  { %s7365_s30 = sld [smem:[%s9088_s0 + %s7139_s7]]   ;;  %s7143_s7 = smov 38  }
  0x3b   :  { %s7370_s17 = sld [smem:[%s9088_s0 + %s7140_s15]]   ;;  %s7144_s15 = smov 39  }
  0x3c   :  { %s7380_s8 = sld [smem:[%s9088_s0 + %s7142_s28]]   ;;  %s7146_s28 = smov 41  }
  0x3d   :  { %s7390_s13 = sld [smem:[%s9088_s0 + %s7144_s15]]   ;;  %s7148_s15 = smov 43  }
  0x3e   :  { %9116 = sst [smem:[#allocation53_spill]] %s7355_s27 }
  0x3f   :  { %s7375_s27 = sld [smem:[%s9088_s0 + %s7141_s22]]   ;;  %s7145_s22 = smov 40  }
  0x40   :  { %9117 = sst [smem:[#allocation54_spill]] %s7365_s30 }
  0x41   :  { %s7385_s30 = sld [smem:[%s9088_s0 + %s7143_s7]]   ;;  %s7147_s7 = smov 42  }
  0x42   :  { %s7400_s9 = sld [smem:[%s9088_s0 + %s7146_s28]]   ;;  %s7150_s28 = smov 45  }
  0x43   :  { %9120 = sst [smem:[#allocation57_spill]] %s7390_s13 }
  0x44   :  { %s7410_s13 = sld [smem:[%s9088_s0 + %s7148_s15]]   ;;  %s7152_s15 = smov 47  }
  0x45   :  { %9118 = sst [smem:[#allocation55_spill]] %s7375_s27 }
  0x46   :  { %s7395_s27 = sld [smem:[%s9088_s0 + %s7145_s22]]   ;;  %s7149_s22 = smov 44  }
  0x47   :  { %9119 = sst [smem:[#allocation56_spill]] %s7385_s30 }
  0x48   :  { %9122 = sst [smem:[#allocation59_spill]] %s7400_s9 }
  0x49   :  { %s7405_s30 = sld [smem:[%s9088_s0 + %s7147_s7]]   ;;  %s7151_s7 = smov 46  }
  0x4a   :  { %9124 = sst [smem:[#allocation61_spill]] %s7410_s13 }
  0x4b   :  { %s7420_s9 = sld [smem:[%s9088_s0 + %s7150_s28]]  }
  0x4c   :  { %9121 = sst [smem:[#allocation58_spill]] %s7395_s27 }
  0x4d   :  { %s7415_s27 = sld [smem:[%s9088_s0 + %s7149_s22]]  }
  0x4e   :  { %s7430_s13 = sld [smem:[%s9088_s0 + %s7152_s15]]  }
  0x4f   :  { %9123 = sst [smem:[#allocation60_spill]] %s7405_s30 }
  0x50   :  { %s7425_s30 = sld [smem:[%s9088_s0 + %s7151_s7]]  }
  0x51   :  { %100 = vsyncpa [#allocation3], 0 }
  0x52   :  { %101 = vsyncpa [#allocation6], 0 }
  0x53   :  { %102 = vsyncpa [#allocation9], 0 }
  0x54   :  { %103 = vsyncpa [#allocation12], 0 }
  0x55   :  { %104 = vsyncpa [#allocation15], 0 }
  0x56   :  { %105 = vsyncpa [#allocation18], 0 }
  0x57   :  { %106 = vsyncpa [#allocation21], 0  ;;  %s136_s22 = sshll.u32 %s7225_s29, 4  ;;  %s137_s22 = int_to_ptr.hbm [resolvable:$true] %s136_s22 }
  0x58   :  { %107 = vsyncpa [#allocation4], 0  ;;  %s7153_s23 = smov [#allocation5]   ;;  %s6754_s28 = sshra.s32 %s137_s22, 4  ;;  %s6755_s28 = int_to_ptr.hbm [resolvable:$true] %s6754_s28 }
  0x59   :  { %s138_s26 = sshll.u32 %s7153_s23, 4  ;;  %s6756_s0 = scalar_lea.hbm %s6755_s28, 1  ;;  %s139_s26 = int_to_ptr.vmem [resolvable:$true] %s138_s26 }
  0x5a   :  { %p6757_p0 = scmp.ne.s32.totalorder %s6755_s28, %s6756_s0  ;;  %s6758_s1 = scalar_lea.hbm %s7225_s29, 1 }
  0x5b   :  { %p6759_p1 = scmp.lt.s32.totalorder %s6755_s28, %s7225_s29  ;;  %p6760_p2 = scmp.lt.s32.totalorder %s6758_s1, %s6756_s0 }
  0x5d   :  { %p6761_p3 = por %p6760_p2, %p6759_p1 }
  0x5f   :  { %p6762_p4 = pnand %p6761_p3, %p6757_p0 }
  0x61   :  { %6765 = shalt.err (!%p6762_p4)
}
  0x62   :  { %141 = dma.hbm_to_vmem [thread:$0]  %s137_s22, 16, %s139_s26, [#allocation6]  }
  0x63   :  { %s161_s2 = sshll.u32 %s7240_s14, 4  ;;  %s7154_s7 = smov [#allocation8]   ;;  %s162_s2 = int_to_ptr.hbm [resolvable:$true] %s161_s2 }
  0x64   :  { %s163_s10 = sshll.u32 %s7154_s7, 4  ;;  %s191_s11 = sshll.u32 %s7260_s6, 4  ;;  %s164_s10 = int_to_ptr.vmem [resolvable:$true] %s163_s10  ;;  %s7437_s11 = int_to_ptr.hbm [resolvable:$true] %s191_s11 }
  0x65   :  { %s6778_s15 = sshra.s32 %s162_s2, 4  ;;  %s6782_s16 = scalar_lea.hbm %s7240_s14, 64  ;;  %s6779_s15 = int_to_ptr.hbm [resolvable:$true] %s6778_s15 }
  0x66   :  { %s6780_s29 = scalar_lea.hbm %s6779_s15, 64  ;;  %p6783_p6 = scmp.lt.s32.totalorder %s6779_s15, %s7240_s14 }
  0x67   :  { %p6781_p5 = scmp.ne.s32.totalorder %s6779_s15, %s6780_s29  ;;  %p6784_p7 = scmp.lt.s32.totalorder %s6782_s16, %s6780_s29 }
  0x69   :  { %p6785_p8 = por %p6784_p7, %p6783_p6 }
  0x6b   :  { %p6786_p9 = pnand %p6785_p8, %p6781_p5 }
  0x6d   :  { %6789 = shalt.err (!%p6786_p9)
}
  0x6e   :  { %s7155_s18 = smov 128   ;;  %s7156_s22 = smov 8  }
  0x6f   :  { %169 = dma.hbm_to_vmem [thread:$0]  %s162_s2, 1024, %s164_s10, [#allocation9], %s7155_s18, %s7155_s18, %s7156_s22  }
  0x70   :  { %s221_s23 = sshll.u32 %s7280_s4, 4  ;;  %s7157_s26 = smov [#allocation11]   ;;  %s7445_s23 = int_to_ptr.hbm [resolvable:$true] %s221_s23 }
  0x71   :  { %s193_s28 = sshll.u32 %s7157_s26, 4  ;;  %s6802_s14 = sshra.s32 %s7437_s11, 4  ;;  %s194_s28 = int_to_ptr.vmem [resolvable:$true] %s193_s28  ;;  %s6803_s14 = int_to_ptr.hbm [resolvable:$true] %s6802_s14 }
  0x72   :  { %s6804_s0 = scalar_lea.hbm %s6803_s14, 64  ;;  %s6806_s1 = scalar_lea.hbm %s7260_s6, 64 }
  0x73   :  { %p6805_p10 = scmp.ne.s32.totalorder %s6803_s14, %s6804_s0  ;;  %p6807_p11 = scmp.lt.s32.totalorder %s6803_s14, %s7260_s6 }
  0x74   :  { %p6808_p12 = scmp.lt.s32.totalorder %s6806_s1, %s6804_s0 }
  0x76   :  { %p6809_p13 = por %p6808_p12, %p6807_p11 }
  0x78   :  { %p6810_p0 = pnand %p6809_p13, %p6805_p10 }
  0x7a   :  { %6813 = shalt.err (!%p6810_p0)
}
  0x7b   :  { %199 = dma.hbm_to_vmem [thread:$0]  %s7437_s11, 1024, %s194_s28, [#allocation12], %s7155_s18, %s7155_s18, %s7156_s22  }
  0x7c   :  { %s7158_s2 = smov [#allocation14]   ;;  %s271_s10 = sshll.u32 %s7350_s12, 4  ;;  %s7455_s10 = int_to_ptr.hbm [resolvable:$true] %s271_s10 }
  0x7d   :  { %s223_s7 = sshll.u32 %s7158_s2, 4  ;;  %s6826_s6 = sshra.s32 %s7445_s23, 4  ;;  %s224_s7 = int_to_ptr.vmem [resolvable:$true] %s223_s7  ;;  %s6827_s6 = int_to_ptr.hbm [resolvable:$true] %s6826_s6 }
  0x7e   :  { %s6828_s15 = scalar_lea.hbm %s6827_s6, 64  ;;  %s6830_s29 = scalar_lea.hbm %s7280_s4, 64 }
  0x7f   :  { %p6829_p1 = scmp.ne.s32.totalorder %s6827_s6, %s6828_s15  ;;  %p6831_p2 = scmp.lt.s32.totalorder %s6827_s6, %s7280_s4 }
  0x80   :  { %p6832_p3 = scmp.lt.s32.totalorder %s6830_s29, %s6828_s15 }
  0x82   :  { %p6833_p4 = por %p6832_p3, %p6831_p2 }
  0x84   :  { %p6834_p5 = pnand %p6833_p4, %p6829_p1 }
  0x86   :  { %6837 = shalt.err (!%p6834_p5)
}
  0x87   :  { %229 = dma.hbm_to_vmem [thread:$0]  %s7445_s23, 1024, %s224_s7, [#allocation15], %s7155_s18, %s7155_s18, %s7156_s22  }
  0x88   :  { %s301_s11 = sshll.u32 %s7370_s17, 4  ;;  %s7159_s16 = smov [#allocation17]   ;;  %s7465_s11 = int_to_ptr.hbm [resolvable:$true] %s301_s11 }
  0x89   :  { %s273_s26 = sshll.u32 %s7159_s16, 4  ;;  %s6850_s4 = sshra.s32 %s7455_s10, 4  ;;  %s274_s26 = int_to_ptr.vmem [resolvable:$true] %s273_s26  ;;  %s6851_s4 = int_to_ptr.hbm [resolvable:$true] %s6850_s4 }
  0x8a   :  { %s6852_s28 = scalar_lea.hbm %s6851_s4, 64  ;;  %s6854_s14 = scalar_lea.hbm %s7350_s12, 64 }
  0x8b   :  { %p6853_p6 = scmp.ne.s32.totalorder %s6851_s4, %s6852_s28  ;;  %p6855_p7 = scmp.lt.s32.totalorder %s6851_s4, %s7350_s12 }
  0x8c   :  { %p6856_p8 = scmp.lt.s32.totalorder %s6854_s14, %s6852_s28 }
  0x8e   :  { %p6857_p9 = por %p6856_p8, %p6855_p7 }
  0x90   :  { %p6858_p10 = pnand %p6857_p9, %p6853_p6 }
  0x92   :  { %6861 = shalt.err (!%p6858_p10)
}
  0x93   :  { %279 = dma.hbm_to_vmem [thread:$0]  %s7455_s10, 1024, %s274_s26, [#allocation18], %s7155_s18, %s7155_s18, %s7156_s22  }
  0x94   :  { %s7160_s23 = smov [#allocation20]   ;;  %s122_s1 = sshll.u32 %s7220_s25, 4  ;;  %s7475_s1 = int_to_ptr.hbm [resolvable:$true] %s122_s1 }
  0x95   :  { %s303_s0 = sshll.u32 %s7160_s23, 4  ;;  %s6874_s12 = sshra.s32 %s7465_s11, 4  ;;  %s304_s0 = int_to_ptr.vmem [resolvable:$true] %s303_s0  ;;  %s6875_s12 = int_to_ptr.hbm [resolvable:$true] %s6874_s12 }
  0x96   :  { %s6876_s2 = scalar_lea.hbm %s6875_s12, 64  ;;  %s6878_s7 = scalar_lea.hbm %s7370_s17, 64 }
  0x97   :  { %p6877_p11 = scmp.ne.s32.totalorder %s6875_s12, %s6876_s2  ;;  %p6879_p12 = scmp.lt.s32.totalorder %s6875_s12, %s7370_s17 }
  0x98   :  { %p6880_p13 = scmp.lt.s32.totalorder %s6878_s7, %s6876_s2 }
  0x9a   :  { %p6881_p0 = por %p6880_p13, %p6879_p12 }
  0x9c   :  { %p6882_p1 = pnand %p6881_p0, %p6877_p11 }
  0x9e   :  { %6885 = shalt.err (!%p6882_p1)
}
  0x9f   :  { %309 = dma.hbm_to_vmem [thread:$0]  %s7465_s11, 1024, %s304_s0, [#allocation21], %s7155_s18, %s7155_s18, %s7156_s22  }
  0xa0   :  { %s146_s10 = sshll.u32 %s7230_s3, 4  ;;  %s7161_s6 = smov [#allocation2]   ;;  %s7485_s10 = int_to_ptr.hbm [resolvable:$true] %s146_s10 }
  0xa1   :  { %s124_s15 = sshll.u32 %s7161_s6, 4  ;;  %s6898_s17 = sshra.s32 %s7475_s1, 4  ;;  %s125_s15 = int_to_ptr.vmem [resolvable:$true] %s124_s15  ;;  %s6899_s17 = int_to_ptr.hbm [resolvable:$true] %s6898_s17 }
  0xa2   :  { %s6900_s29 = scalar_lea.hbm %s6899_s17, 64  ;;  %s6902_s16 = scalar_lea.hbm %s7220_s25, 64 }
  0xa3   :  { %p6901_p2 = scmp.ne.s32.totalorder %s6899_s17, %s6900_s29  ;;  %p6903_p3 = scmp.lt.s32.totalorder %s6899_s17, %s7220_s25 }
  0xa4   :  { %p6904_p4 = scmp.lt.s32.totalorder %s6902_s16, %s6900_s29 }
  0xa6   :  { %p6905_p5 = por %p6904_p4, %p6903_p3 }
  0xa8   :  { %p6906_p6 = pnand %p6905_p5, %p6901_p2 }
  0xaa   :  { %6909 = shalt.err (!%p6906_p6)
}
  0xab   :  { %130 = dma.hbm_to_vmem [thread:$0]  %s7475_s1, 1024, %s125_s15, [#allocation3], %s7155_s18, %s7155_s18, %s7156_s22  }
  0xac   :  { %s7162_s11 = smov [#allocation7]   ;;  %s6922_s4 = sshra.s32 %s7485_s10, 4  ;;  %s6923_s4 = int_to_ptr.hbm [resolvable:$true] %s6922_s4 }
  0xad   :  { %s148_s26 = sshll.u32 %s7162_s11, 4  ;;  %s6924_s28 = scalar_lea.hbm %s6923_s4, 128  ;;  %s149_s26 = int_to_ptr.vmem [resolvable:$true] %s148_s26 }
  0xae   :  { %p6925_p7 = scmp.ne.s32.totalorder %s6923_s4, %s6924_s28  ;;  %s6926_s25 = scalar_lea.hbm %s7230_s3, 128 }
  0xaf   :  { %p6927_p8 = scmp.lt.s32.totalorder %s6923_s4, %s7230_s3  ;;  %p6928_p9 = scmp.lt.s32.totalorder %s6926_s25, %s6924_s28 }
  0xb1   :  { %p6929_p10 = por %p6928_p9, %p6927_p8 }
  0xb3   :  { %p6930_p11 = pnand %p6929_p10, %p6925_p7 }
  0xb5   :  { %6933 = shalt.err (!%p6930_p11)
}
  0xb6   :  { %s7163_s14 = smov 256   ;;  %s7164_s23 = smov 16  }
  0xb7   :  { %154 = dma.hbm_to_vmem [thread:$0]  %s7485_s10, 2048, %s149_s26, [#allocation6], %s7163_s14, %s7163_s14, %s7164_s23  }
  0xb8   :  { %s176_s0 = sshll.u32 %s7250_s24, 4  ;;  %s7165_s1 = smov [#allocation10]   ;;  %s177_s0 = int_to_ptr.hbm [resolvable:$true] %s176_s0 }
  0xb9   :  { %s178_s12 = sshll.u32 %s7165_s1, 4  ;;  %s206_s2 = sshll.u32 %s7270_s20, 4  ;;  %s179_s12 = int_to_ptr.vmem [resolvable:$true] %s178_s12  ;;  %s207_s2 = int_to_ptr.hbm [resolvable:$true] %s206_s2 }
  0xba   :  { %s6946_s3 = sshra.s32 %s177_s0, 4  ;;  %s6950_s6 = scalar_lea.hbm %s7250_s24, 64  ;;  %s6947_s3 = int_to_ptr.hbm [resolvable:$true] %s6946_s3 }
  0xbb   :  { %s6948_s7 = scalar_lea.hbm %s6947_s3, 64  ;;  %p6951_p13 = scmp.lt.s32.totalorder %s6947_s3, %s7250_s24 }
  0xbc   :  { %p6949_p12 = scmp.ne.s32.totalorder %s6947_s3, %s6948_s7  ;;  %p6952_p0 = scmp.lt.s32.totalorder %s6950_s6, %s6948_s7 }
  0xbe   :  { %p6953_p1 = por %p6952_p0, %p6951_p13 }
  0xc0   :  { %p6954_p2 = pnand %p6953_p1, %p6949_p12 }
  0xc2   :  { %6957 = shalt.err (!%p6954_p2)
}
  0xc3   :  { %184 = dma.hbm_to_vmem [thread:$0]  %s177_s0, 1024, %s179_s12, [#allocation9], %s7155_s18, %s7155_s18, %s7156_s22  }
  0xc4   :  { %s7166_s10 = smov [#allocation13]   ;;  %s256_s17 = sshll.u32 %s7340_s21, 4  ;;  %s7507_s17 = int_to_ptr.hbm [resolvable:$true] %s256_s17 }
  0xc5   :  { %s208_s15 = sshll.u32 %s7166_s10, 4  ;;  %s6970_s29 = sshra.s32 %s207_s2, 4  ;;  %s209_s15 = int_to_ptr.vmem [resolvable:$true] %s208_s15  ;;  %s6971_s29 = int_to_ptr.hbm [resolvable:$true] %s6970_s29 }
  0xc6   :  { %s6972_s24 = scalar_lea.hbm %s6971_s29, 64  ;;  %s6974_s16 = scalar_lea.hbm %s7270_s20, 64 }
  0xc7   :  { %p6973_p3 = scmp.ne.s32.totalorder %s6971_s29, %s6972_s24  ;;  %p6975_p4 = scmp.lt.s32.totalorder %s6971_s29, %s7270_s20 }
  0xc8   :  { %p6976_p5 = scmp.lt.s32.totalorder %s6974_s16, %s6972_s24 }
  0xca   :  { %p6977_p6 = por %p6976_p5, %p6975_p4 }
  0xcc   :  { %p6978_p7 = pnand %p6977_p6, %p6973_p3 }
  0xce   :  { %6981 = shalt.err (!%p6978_p7)
}
  0xcf   :  { %214 = dma.hbm_to_vmem [thread:$0]  %s207_s2, 1024, %s209_s15, [#allocation12], %s7155_s18, %s7155_s18, %s7156_s22  }
  0xd0   :  { %s286_s11 = sshll.u32 %s7360_s19, 4  ;;  %s7167_s26 = smov [#allocation16]   ;;  %s7515_s11 = int_to_ptr.hbm [resolvable:$true] %s286_s11 }
  0xd1   :  { %s258_s4 = sshll.u32 %s7167_s26, 4  ;;  %s6994_s28 = sshra.s32 %s7507_s17, 4  ;;  %s259_s4 = int_to_ptr.vmem [resolvable:$true] %s258_s4  ;;  %s6995_s28 = int_to_ptr.hbm [resolvable:$true] %s6994_s28 }
  0xd2   :  { %s6996_s20 = scalar_lea.hbm %s6995_s28, 64  ;;  %s6998_s25 = scalar_lea.hbm %s7340_s21, 64 }
  0xd3   :  { %p6997_p8 = scmp.ne.s32.totalorder %s6995_s28, %s6996_s20  ;;  %p6999_p9 = scmp.lt.s32.totalorder %s6995_s28, %s7340_s21 }
  0xd4   :  { %p7000_p10 = scmp.lt.s32.totalorder %s6998_s25, %s6996_s20 }
  0xd6   :  { %p7001_p11 = por %p7000_p10, %p6999_p9 }
  0xd8   :  { %p7002_p12 = pnand %p7001_p11, %p6997_p8 }
  0xda   :  { %7005 = shalt.err (!%p7002_p12)
}
  0xdb   :  { %264 = dma.hbm_to_vmem [thread:$0]  %s7507_s17, 1024, %s259_s4, [#allocation15], %s7155_s18, %s7155_s18, %s7156_s22  }
  0xdc   :  { %s7168_s14 = smov [#allocation19]   ;;  %s316_s1 = sshll.u32 %s7380_s8, 4  ;;  %s317_s1 = int_to_ptr.hbm [resolvable:$true] %s316_s1 }
  0xdd   :  { %s288_s0 = sshll.u32 %s7168_s14, 4  ;;  %s7018_s12 = sshra.s32 %s7515_s11, 4  ;;  %s289_s0 = int_to_ptr.vmem [resolvable:$true] %s288_s0  ;;  %s7019_s12 = int_to_ptr.hbm [resolvable:$true] %s7018_s12 }
  0xde   :  { %s7020_s21 = scalar_lea.hbm %s7019_s12, 64  ;;  %s7022_s2 = scalar_lea.hbm %s7360_s19, 64 }
  0xdf   :  { %p7021_p13 = scmp.ne.s32.totalorder %s7019_s12, %s7020_s21  ;;  %p7023_p0 = scmp.lt.s32.totalorder %s7019_s12, %s7360_s19 }
  0xe0   :  { %p7024_p1 = scmp.lt.s32.totalorder %s7022_s2, %s7020_s21 }
  0xe2   :  { %p7025_p2 = por %p7024_p1, %p7023_p0 }
  0xe4   :  { %p7026_p3 = pnand %p7025_p2, %p7021_p13 }
  0xe6   :  { %7029 = shalt.err (!%p7026_p3)
}
  0xe7   :  { %294 = dma.hbm_to_vmem [thread:$0]  %s7515_s11, 1024, %s289_s0, [#allocation18], %s7155_s18, %s7155_s18, %s7156_s22  }
  0xe8   :  { %s7169_s3 = smov [#allocation22]   ;;  %s7042_s6 = sshra.s32 %s317_s1, 4  ;;  %s7043_s6 = int_to_ptr.hbm [resolvable:$true] %s7042_s6 }
  0xe9   :  { %s318_s7 = sshll.u32 %s7169_s3, 4  ;;  %s7044_s10 = scalar_lea.hbm %s7043_s6, 64  ;;  %s319_s7 = int_to_ptr.vmem [resolvable:$true] %s318_s7 }
  0xea   :  { %p7045_p4 = scmp.ne.s32.totalorder %s7043_s6, %s7044_s10  ;;  %s7046_s19 = scalar_lea.hbm %s7380_s8, 64 }
  0xeb   :  { %p7047_p5 = scmp.lt.s32.totalorder %s7043_s6, %s7380_s8  ;;  %p7048_p6 = scmp.lt.s32.totalorder %s7046_s19, %s7044_s10 }
  0xed   :  { %p7049_p7 = por %p7048_p6, %p7047_p5 }
  0xef   :  { %p7050_p8 = pnand %p7049_p7, %p7045_p4 }
  0xf1   :  { %7053 = shalt.err (!%p7050_p8)
}
  0xf2   :  { %324 = dma.hbm_to_vmem [thread:$0]  %s317_s1, 1024, %s319_s7, [#allocation21], %s7155_s18, %s7155_s18, %s7156_s22  }
  0xf3   :  { %7090 = dma.done.wait [#allocation3], 1024  }
  0xf4   :  { %7091 = vsyncadd [#allocation3], 4294966272 }
  0xf5   :  { %7092 = dma.done.wait [#allocation6], 2064  }
  0xf6   :  { %7093 = vsyncadd [#allocation6], 4294965232 }
  0xf7   :  { %7094 = dma.done.wait [#allocation9], 2048  }
  0xf8   :  { %7095 = vsyncadd [#allocation9], 4294965248 }
  0xf9   :  { %7096 = dma.done.wait [#allocation12], 2048  }
  0xfa   :  { %7097 = vsyncadd [#allocation12], 4294965248 }
  0xfb   :  { %7098 = dma.done.wait [#allocation15], 2048  }
  0xfc   :  { %7099 = vsyncadd [#allocation15], 4294965248 }
  0xfd   :  { %7100 = dma.done.wait [#allocation18], 2048  }
  0xfe   :  { %7101 = vsyncadd [#allocation18], 4294965248 }
  0xff   :  { %7102 = dma.done.wait [#allocation21], 2048  }
 0x100   :  { %7103 = vsyncadd [#allocation21], 4294965248  ;;  %s9125_s8 = sld [smem:[#allocation32_spill]]  ;;  %v7170_v0 = vmov 0   ;;  %vm422_vm0 = vcmask 1043456   ;;  %v395_v1 = vld [vmem:[%s7195_s5] sm:$0xff]  ;;  %v397_v19 = vlaneseq }
 0x101   :  { %6318 = vset.pattern.permute.xlu0 %v7170_v0  ;;  %v396_v5 = vld [vmem:[%s7195_s5 + $0x8] sm:$0xff]  ;;  %v484_v7 = vld [vmem:[#allocation7 + $0x70] sm:$0xff]  ;;  %v485_v8 = vld [vmem:[#allocation7 + $0x78] sm:$0xff]  ;;  %vm415_vm1 = vcmask 228352   ;;  %s9126_s5 = sld [smem:[#allocation33_spill]]  ;;  %v7171_v22 = vmov 0.0  }
 0x102   :  { %400 = vperm.xlu0 %6318, %v395_v1   ;;  %v482_v9 = vld [vmem:[#allocation7 + $0x60] sm:$0xff]  ;;  %575 = vmatpush.msra.mxu1 %v484_v7  ;;  %v483_v10 = vld [vmem:[#allocation7 + $0x68] sm:$0xff]  ;;  %v480_v11 = vld [vmem:[#allocation7 + $0x50] sm:$0xff]  ;;  %v398_v20 = vand.u32 127, %v397_v19  ;;  %s9127_s15 = sld [smem:[#allocation36_spill]]  ;;  %vm560_vm4 = vcmask 523264  }
 0x103   :  { %598 = vmatpush.msra.mxu2 %v485_v8  ;;  %v481_v12 = vld [vmem:[#allocation7 + $0x58] sm:$0xff]  ;;  %v478_v13 = vld [vmem:[#allocation7 + $0x40] sm:$0xff]  ;;  %v479_v14 = vld [vmem:[#allocation7 + $0x48] sm:$0xff]  ;;  %s7172_s17 = smov 96   ;;  %s7173_s29 = smov 120   ;;  %vm689_vm5 = vcmask 64512  }
 0x104   :  { %576 = vmatpush.msra.mxu1 %v482_v9  ;;  %v476_v15 = vld [vmem:[#allocation7 + $0x30] sm:$0xff]  ;;  %v477_v16 = vld [vmem:[#allocation7 + $0x38] sm:$0xff]  ;;  %v474_v17 = vld [vmem:[#allocation7 + $0x20] sm:$0xff]  ;;  %s7174_s24 = smov 112   ;;  %s7175_s16 = smov 104   ;;  %vm1706_vm6 = vcmask 130048  }
 0x105   :  { %599 = vmatpush.msra.mxu2 %v483_v10  ;;  %v475_v18 = vld [vmem:[#allocation7 + $0x28] sm:$0xff]  ;;  %v472_v26 = vld [vmem:[#allocation7 + $0x10] sm:$0xff]  ;;  %v473_v27 = vld [vmem:[#allocation7 + $0x18] sm:$0xff]  ;;  %s7176_s11 = smov 88   ;;  %s7177_s26 = smov 80   ;;  %vm1709_vm7 = vcmask 195584  }
 0x106   :  { %v414_v2 = vld [vmem:[%s9125_s8 + $0x18] sm:$0xf]  ;;  %v413_v3 = vld [vmem:[%s9125_s8 + $0x10] sm:$0xff]  ;;  %v412_v4 = vld [vmem:[%s9125_s8 + $0x8] sm:$0xff]  ;;  %577 = vmatpush.msra.mxu1 %v480_v11  ;;  %s7178_s4 = smov 72   ;;  %s7179_s28 = smov 64  }
 0x107   :  { %6012 = vmatpush.msk.msra.mxu0 %vm422_vm0, %v414_v2  ;;  %v411_v6 = vld [vmem:[%s9125_s8] sm:$0xff]  ;;  %600 = vmatpush.msra.mxu2 %v481_v12  ;;  %v471_v29 = vld [vmem:[#allocation7 + $0x8] sm:$0xff]  ;;  %s9128_s20 = sld [smem:[#allocation34_spill]]  ;;  %s7180_s25 = smov 24   ;;  %vm1712_vm8 = vcmask 261120   ;;  %vm1715_vm9 = vcmask 326656  }
 0x108   :  { %578 = vmatpush.msra.mxu1 %v478_v13  ;;  %v470_v28 = vld [vmem:[#allocation7] sm:$0xff]  ;;  %v7557_v35 = vld [vmem:[%s9127_s15] sm:$0x3]  ;;  %s7181_s14 = smov 40   ;;  %s7182_s0 = smov 32   ;;  %vm1718_vm10 = vcmask 392192  }
 0x109   :  { %439 = vmatpush.msra.mxu0 %v413_v3  ;;  %601 = vmatpush.msra.mxu2 %v479_v14  ;;  %v449_v30 = vld [vmem:[%s9126_s5] sm:$0xff]  ;;  %v556_v36 = vperm.slane %v7557_v35, 0  ;;  %v557_v57 = vperm.slane %v7557_v35, 1  ;;  %s7183_s1 = smov 48   ;;  %s7184_s12 = smov 56   ;;  %vm1721_vm11 = vcmask 457728  }
 0x10a   :  { %403 = vperm.xlu0 %6318, %v396_v5   ;;  %579 = vmatpush.msra.mxu1 %v476_v15  ;;  %s9129_s21 = sld [smem:[#allocation37_spill]] }
 0x10b   :  { %440 = vmatpush.msra.mxu0 %v412_v4  ;;  %602 = vmatpush.msra.mxu2 %v477_v16  ;;  %s9130_s2 = sld [smem:[#allocation35_spill]] }
 0x10c   :  { %580 = vmatpush.msra.mxu1 %v474_v17  ;;  %s9131_s3 = sld [smem:[#allocation39_spill]] }
 0x10d   :  { %441 = vmatpush.msra.mxu0 %v411_v6  ;;  %603 = vmatpush.msra.mxu2 %v475_v18  ;;  %v454_v12 = vld [vmem:[%s9128_s20] sm:$0xff]  ;;  %s9132_s7 = sld [smem:[#allocation44_spill]] }
 0x10e   :  { %581 = vmatpush.msra.mxu1 %v472_v26  ;;  %v455_v26 = vld [vmem:[%s9128_s20 + $0x8] sm:$0xff]  ;;  %s9133_s6 = sld [smem:[#allocation45_spill]] }
 0x10f   :  { %604 = vmatpush.msra.mxu2 %v473_v27  ;;  %s9134_s10 = sld [smem:[#allocation38_spill]] }
 0x110   :  { %582 = vmatpush.msra.mxu1 %v470_v28  ;;  %s9135_s19 = sld [smem:[#allocation40_spill]] }
 0x111   :  { %605 = vmatpush.msra.mxu2 %v471_v29  ;;  %s9136_s8 = sld [smem:[#allocation46_spill]] }
 0x112   :  { %s9137_s5 = sld [smem:[#allocation47_spill]] }
 0x113   :  { %s9138_s15 = sld [smem:[#allocation42_spill]] }
 0x174   :  { %v401_v21 = vpop.permute.xlu0 %400 }
 0x175   :  { %vm405_vm2 = vcmp.eq.s32.totalorder %v401_v21, %v398_v20 }
 0x176   :  { %v6010_v23 = vsel %vm405_vm2, 1.0, %v7171_v22 }
 0x177   :  { %6013 = vmatmul.msk.f32.vlgmr.msra.gmra.mxu0 %vm415_vm1, %v6010_v23 }
 0x17c   :  { %v404_v24 = vpop.permute.xlu0 %403 }
 0x17d   :  { %vm406_vm3 = vcmp.eq.s32.totalorder %v404_v24, %v398_v20 }
 0x17e   :  { %v6011_v25 = vsel %vm406_vm3, 1.0, %v7171_v22 }
 0x17f   :  { %6014 = vmatmul.msk.f32.gmra.mxu0 %vm415_vm1, %v6011_v25 }
 0x1f4   :  { %v443_v31 = vpop.f32.mrf.mxu0 }
 0x1f5   :  { %v7544_v32 = vadd.f32 %v449_v30, %v443_v31 }
 0x1f7   :  { %6015 = vmatmul.msk.f32.vlgmr.msra.gmra.mxu1 %vm560_vm4, %v7544_v32  ;;  %6017 = vmatmul.msk.f32.vlgmr.msra.gmra.mxu2 %vm560_vm4, %v7544_v32 }
 0x1fc   :  { %v446_v33 = vpop.f32.mrf.mxu0 }
 0x1fd   :  { %v7550_v34 = vadd.f32 %v449_v30, %v446_v33  ;;  %v457_v30 = vld [vmem:[%s9128_s20 + $0x18] sm:$0xff] }
 0x1ff   :  { %6016 = vmatmul.msk.f32.gmra.mxu1 %vm560_vm4, %v7550_v34  ;;  %6018 = vmatmul.msk.f32.gmra.mxu2 %vm560_vm4, %v7550_v34 }
 0x274   :  { %v584_v37 = vpop.f32.mrf.mxu1 }
 0x275   :  { %v585_v38 = vadd.f32 %v584_v37, %v556_v36 }
 0x277   :  { %627 = vrot.lane.b32.xlu2 %v585_v38, %s7172_s17  ;;  %615 = vrot.lane.b32.xlu1 %v585_v38, %s7173_s29 }
 0x27a   :  { %v607_v52 = vpop.f32.mrf.mxu2 }
 0x27b   :  { %v7614_v59 = vadd.f32 %v607_v52, %v557_v57 }
 0x27c   :  { %v587_v39 = vpop.f32.mrf.mxu1 }
 0x27d   :  { %v7562_v40 = vadd.f32 %v587_v39, %v556_v36  ;;  %v460_v36 = vld [vmem:[%s9128_s20 + $0x30] sm:$0xff] }
 0x27f   :  { %619 = vrot.lane.b32.xlu1 %v585_v38, %s7174_s24  ;;  %625 = vrot.lane.b32.xlu0 %v7562_v40, %s7175_s16 }
 0x280   :  { %617 = vrot.lane.b32.xlu2 %v7562_v40, %s7173_s29 }
 0x282   :  { %v610_v56 = vpop.f32.mrf.mxu2 }
 0x283   :  { %v7612_v58 = vadd.f32 %v610_v56, %v557_v57  ;;  %v464_v57 = vld [vmem:[%s9128_s20 + $0x50] sm:$0xff] }
 0x285   :  { %v7620_v61 = vpack.i.bf16 %v7612_v58, %v7614_v59 }
 0x287   :  { %623 = vrot.lane.b32.xlu1 %v585_v38, %s7175_s16  ;;  %633 = vrot.lane.b32.xlu0 %v7562_v40, %s7176_s11 }
 0x288   :  { %635 = vrot.lane.b32.xlu2 %v585_v38, %s7177_s26 }
 0x28f   :  { %621 = vrot.lane.b32.xlu1 %v7562_v40, %s7174_s24  ;;  %641 = vrot.lane.b32.xlu0 %v7562_v40, %s7178_s4 }
 0x290   :  { %631 = vrot.lane.b32.xlu2 %v585_v38, %s7176_s11 }
 0x297   :  { %629 = vrot.lane.b32.xlu1 %v7562_v40, %s7172_s17 }
 0x298   :  { %639 = vrot.lane.b32.xlu2 %v585_v38, %s7178_s4 }
 0x29f   :  { %637 = vrot.lane.b32.xlu1 %v7562_v40, %s7177_s26 }
 0x2a0   :  { %687 = vrot.lane.b32.xlu2 %v585_v38, %s7179_s28 }
 0x2a7   :  { %714 = vrot.lane.b32.xlu1 %v7562_v40, %s7179_s28 }
 0x2d1   :  { %v7586_v41 = vpop.permute.xlu2 %627 }
 0x2da   :  { %v618_v42 = vpop.permute.xlu2 %617 }
 0x2db   :  { %766 = vrot.lane.b32.xlu2 %v618_v42, %s7179_s28 }
 0x2e2   :  { %v7589_v43 = vpop.permute.xlu2 %635 }
 0x2e9   :  { %v616_v44 = vpop.permute.xlu1 %615 }
 0x2ea   :  { %v7591_v45 = vpop.permute.xlu2 %631  ;;  %740 = vrot.lane.b32.xlu0 %v616_v44, %s7179_s28 }
 0x2f1   :  { %v620_v46 = vpop.permute.xlu1 %619  ;;  %v626_v47 = vpop.permute.xlu0 %625 }
 0x2f2   :  { %v7594_v48 = vpop.permute.xlu2 %639  ;;  %792 = vrot.lane.b32.xlu0 %v620_v46, %s7179_s28  ;;  %870 = vrot.lane.b32.xlu1 %v626_v47, %s7179_s28 }
 0x2f9   :  { %v624_v49 = vpop.permute.xlu1 %623  ;;  %v634_v50 = vpop.permute.xlu0 %633 }
 0x2fa   :  { %v688_v51 = vpop.permute.xlu2 %687  ;;  %896 = vrot.lane.b32.xlu0 %v7586_v41, %s7179_s28  ;;  %974 = vrot.lane.b32.xlu1 %v634_v50, %s7179_s28 }
 0x2fb   :  { %844 = vrot.lane.b32.xlu2 %v624_v49, %s7179_s28  ;;  %6019 = vmatpush.xpose.msk.msrb.mxu1 %vm689_vm5, %v688_v51 }
 0x2fe   :  { %6020 = vmatmul.msk.f32.vlgmr.msrb.gmra.mxu1 %vm689_vm5, %v585_v38 }
 0x301   :  { %v622_v53 = vpop.permute.xlu1 %621  ;;  %v642_v54 = vpop.permute.xlu0 %641 }
 0x302   :  { %1078 = vrot.lane.b32.xlu1 %v642_v54, %s7179_s28  ;;  %1000 = vrot.lane.b32.xlu0 %v7589_v43, %s7179_s28 }
 0x303   :  { %818 = vrot.lane.b32.xlu2 %v622_v53, %s7179_s28 }
 0x309   :  { %v630_v55 = vpop.permute.xlu1 %629 }
 0x30a   :  { %948 = vrot.lane.b32.xlu0 %v7591_v45, %s7179_s28 }
 0x30b   :  { %922 = vrot.lane.b32.xlu2 %v630_v55, %s7179_s28 }
 0x311   :  { %v7616_v60 = vpop.permute.xlu1 %637 }
 0x312   :  { %1026 = vrot.lane.b32.xlu1 %v7616_v60, %s7179_s28  ;;  %1052 = vrot.lane.b32.xlu0 %v7594_v48, %s7179_s28 }
 0x313   :  { %6320 = vrot.lane.b32.xlu2 %v7620_v61, %s7173_s29 }
 0x319   :  { %v715_v62 = vpop.permute.xlu1 %714 }
 0x31a   :  { %6021 = vmatpush.xpose.msk.msrb.mxu2 %vm689_vm5, %v715_v62  ;;  %6325 = vrot.lane.b32.xlu1 %v7620_v61, %s7174_s24 }
 0x31b   :  { %6330 = vrot.lane.b32.xlu0 %v7620_v61, %s7175_s16 }
 0x31d   :  { %6022 = vmatmul.msk.f32.vlgmr.msrb.gmra.mxu2 %vm689_vm5, %v7562_v40  ;;  %v456_v40 = vld [vmem:[%s9128_s20 + $0x10] sm:$0xff] }
 0x323   :  { %663 = vrot.lane.b32.xlu0 %v7614_v59, %s7172_s17 }
 0x335   :  { %v767_v63 = vpop.permute.xlu2 %766 }
 0x336   :  { %6025 = vmatpush.xpose.msk.msrb.mxu0 %vm689_vm5, %v767_v63 }
 0x339   :  { %6026 = vmatmul.msk.f32.vlgmr.msrb.gmra.mxu0 %vm689_vm5, %v618_v42 }
 0x355   :  { %v845_v0 = vpop.permute.xlu2 %844 }
 0x356   :  { %6031 = vmatpush.xpose.msk.msra.mxu1 %vm689_vm5, %v845_v0 }
 0x359   :  { %6032 = vmatmul.msk.f32.vlgmr.msra.gmra.mxu1 %vm689_vm5, %v624_v49  ;;  %v465_v49 = vld [vmem:[%s9128_s20 + $0x58] sm:$0xff] }
 0x35c   :  { %v741_v1 = vpop.permute.xlu0 %740 }
 0x35d   :  { %v819_v2 = vpop.permute.xlu2 %818  ;;  %6023 = vmatpush.xpose.msk.msra.mxu3 %vm689_vm5, %v741_v1  ;;  %v461_v1 = vld [vmem:[%s9128_s20 + $0x38] sm:$0xff] }
 0x35e   :  { %6029 = vmatpush.xpose.msk.msra.mxu0 %vm689_vm5, %v819_v2 }
 0x360   :  { %6024 = vmatmul.msk.f32.vlgmr.msra.gmra.mxu3 %vm689_vm5, %v616_v44  ;;  %v459_v44 = vld [vmem:[%s9128_s20 + $0x28] sm:$0xff] }
 0x361   :  { %6030 = vmatmul.msk.f32.vlgmr.msra.gmra.mxu0 %vm689_vm5, %v622_v53 }
 0x364   :  { %v871_v3 = vpop.permute.xlu1 %870  ;;  %v793_v4 = vpop.permute.xlu0 %792 }
 0x365   :  { %v923_v5 = vpop.permute.xlu2 %922  ;;  %6027 = vmatpush.xpose.msk.msrb.mxu3 %vm689_vm5, %v793_v4  ;;  %6033 = vmatpush.xpose.msk.msra.mxu2 %vm689_vm5, %v871_v3  ;;  %v458_v3 = vld [vmem:[%s9128_s20 + $0x20] sm:$0xff] }
 0x366   :  { %6037 = vmatpush.xpose.msk.msrb.mxu0 %vm689_vm5, %v923_v5 }
 0x368   :  { %6028 = vmatmul.msk.f32.vlgmr.msrb.gmra.mxu3 %vm689_vm5, %v620_v46  ;;  %6034 = vmatmul.msk.f32.vlgmr.msra.gmra.mxu2 %vm689_vm5, %v626_v47 }
 0x369   :  { %6038 = vmatmul.msk.f32.vlgmr.msrb.gmra.mxu0 %vm689_vm5, %v630_v55 }
 0x36c   :  { %v975_v6 = vpop.permute.xlu1 %974  ;;  %v897_v7 = vpop.permute.xlu0 %896 }
 0x36d   :  { %6035 = vmatpush.xpose.msk.msra.mxu3 %vm689_vm5, %v897_v7  ;;  %6041 = vmatpush.xpose.msk.msrb.mxu2 %vm689_vm5, %v975_v6  ;;  %v6321_v8 = vpop.permute.xlu2 %6320 }
 0x36e   :  { %v6323_v9 = vunpack.i.h.bf16 %v6321_v8  ;;  %v6322_v17 = vunpack.i.l.bf16 %v6321_v8  ;;  %v468_v8 = vld [vmem:[%s9128_s20 + $0x70] sm:$0xff] }
 0x370   :  { %6036 = vmatmul.msk.f32.vlgmr.msra.gmra.mxu3 %vm689_vm5, %v7586_v41  ;;  %6042 = vmatmul.msk.f32.vlgmr.msrb.gmra.mxu2 %vm689_vm5, %v634_v50 }
 0x374   :  { %v1079_v10 = vpop.permute.xlu1 %1078  ;;  %v1001_v11 = vpop.permute.xlu0 %1000 }
 0x375   :  { %6043 = vmatpush.xpose.msk.msrb.mxu3 %vm689_vm5, %v1001_v11  ;;  %6049 = vmatpush.xpose.msk.msra.mxu2 %vm689_vm5, %v1079_v10  ;;  %v462_v11 = vld [vmem:[%s9128_s20 + $0x40] sm:$0xff] }
 0x378   :  { %6044 = vmatmul.msk.f32.vlgmr.msrb.gmra.mxu3 %vm689_vm5, %v7589_v43  ;;  %6050 = vmatmul.msk.f32.vlgmr.msra.gmra.mxu2 %vm689_vm5, %v642_v54 }
 0x379   :  { %1298 = vmatpush.msra.mxu3 %v7614_v59  ;;  %1367 = vmatpush.msrb.mxu2 %v6323_v9 }
 0x37b   :  { %v711_v13 = vpop.f32.mrf.mxu1 }
 0x37c   :  { %v712_v14 = vadd.f32 %v711_v13, %v454_v12  ;;  %v949_v15 = vpop.permute.xlu0 %948 }
 0x37d   :  { %6039 = vmatpush.xpose.msk.msrb.mxu1 %vm689_vm5, %v949_v15  ;;  %v466_v15 = vld [vmem:[%s9128_s20 + $0x60] sm:$0xff] }
 0x37e   :  { %v1104_v16 = vsel %vm689_vm5, %v712_v14, -inf }
 0x37f   :  { %1105 = vmax.xlane.f32.xlu2 %v1104_v16 }
 0x380   :  { %6040 = vmatmul.msk.f32.vlgmr.msrb.gmra.mxu1 %vm689_vm5, %v7591_v45 }
 0x384   :  { %v1027_v18 = vpop.permute.xlu1 %1026  ;;  %v1053_v19 = vpop.permute.xlu0 %1052 }
 0x385   :  { %6045 = vmatpush.xpose.msk.msra.mxu0 %vm689_vm5, %v1027_v18  ;;  %6047 = vmatpush.xpose.msk.msra.mxu1 %vm689_vm5, %v1053_v19  ;;  %v463_v18 = vld [vmem:[%s9128_s20 + $0x48] sm:$0xff] }
 0x388   :  { %6046 = vmatmul.msk.f32.vlgmr.msra.gmra.mxu0 %vm689_vm5, %v7616_v60  ;;  %6048 = vmatmul.msk.f32.vlgmr.msra.gmra.mxu1 %vm689_vm5, %v7594_v48 }
 0x389   :  { %1321 = vmatpush.msrb.mxu0 %v7612_v58  ;;  %1344 = vmatpush.msrb.mxu1 %v6322_v17 }
 0x38c   :  { %v6326_v20 = vpop.permute.xlu1 %6325 }
 0x38d   :  { %v6328_v21 = vunpack.i.h.bf16 %v6326_v20  ;;  %v6327_v22 = vunpack.i.l.bf16 %v6326_v20  ;;  %v6331_v23 = vpop.permute.xlu0 %6330 }
 0x38e   :  { %v6333_v24 = vunpack.i.h.bf16 %v6331_v23  ;;  %v6332_v25 = vunpack.i.l.bf16 %v6331_v23 }
 0x38f   :  { %1390 = vmatpush.msrb.mxu3 %v6327_v22  ;;  %1413 = vmatpush.msra.mxu0 %v6328_v21 }
 0x390   :  { %1436 = vmatpush.msra.mxu1 %v6332_v25  ;;  %1459 = vmatpush.msra.mxu2 %v6333_v24 }
 0x3a0   :  { %v737_v27 = vpop.f32.mrf.mxu2 }
 0x3a1   :  { %v7675_v28 = vadd.f32 %v737_v27, %v455_v26  ;;  %v467_v26 = vld [vmem:[%s9128_s20 + $0x68] sm:$0xff] }
 0x3a3   :  { %v1107_v29 = vsel %vm689_vm5, %v7675_v28, -inf }
 0x3a4   :  { %1108 = vmax.xlane.f32.xlu2 %v1107_v29 }
 0x3b6   :  { %v789_v31 = vpop.f32.mrf.mxu0 }
 0x3b7   :  { %v7680_v33 = vadd.f32 %v789_v31, %v457_v30 }
 0x3b9   :  { %v1113_v35 = vsel %vm689_vm5, %v7680_v33, -inf }
 0x3ba   :  { %1114 = vmax.xlane.f32.xlu2 %v1113_v35 }
 0x3d6   :  { %v867_v37 = vpop.f32.mrf.mxu1 }
 0x3d7   :  { %v7685_v38 = vadd.f32 %v867_v37, %v460_v36 }
 0x3d9   :  { %v1122_v39 = vsel %vm689_vm5, %v7685_v38, -inf }
 0x3da   :  { %1123 = vmax.xlane.f32.xlu0 %v1122_v39 }
 0x3de   :  { %v841_v45 = vpop.f32.mrf.mxu0 }
 0x3df   :  { %v7695_v46 = vadd.f32 %v841_v45, %v459_v44 }
 0x3e1   :  { %v1119_v48 = vsel %vm689_vm5, %v7695_v46, -inf }
 0x3e3   :  { %v763_v41 = vpop.f32.mrf.mxu3 }
 0x3e4   :  { %v7690_v42 = vadd.f32 %v763_v41, %v456_v40 }
 0x3e6   :  { %v1110_v43 = vsel %vm689_vm5, %v7690_v42, -inf  ;;  %v945_v19 = vpop.f32.mrf.mxu0 }
 0x3e7   :  { %1111 = vmax.xlane.f32.xlu0 %v1110_v43  ;;  %v7737_v21 = vadd.f32 %v945_v19, %v463_v18 }
 0x3e9   :  { %v1131_v25 = vsel %vm689_vm5, %v7737_v21, -inf }
 0x3eb   :  { %v893_v47 = vpop.f32.mrf.mxu2  ;;  %v815_v56 = vpop.f32.mrf.mxu3 }
 0x3ec   :  { %v7715_v4 = vadd.f32 %v893_v47, %v461_v1  ;;  %v7717_v5 = vadd.f32 %v815_v56, %v458_v3 }
 0x3ee   :  { %v1125_v7 = vsel %vm689_vm5, %v7715_v4, -inf  ;;  %v1116_v10 = vsel %vm689_vm5, %v7717_v5, -inf }
 0x3ef   :  { %1120 = vmax.xlane.f32.xlu0 %v1119_v48  ;;  %v664_v48 = vpop.permute.xlu0 %663 }
 0x3f2   :  { %v1106_v50 = vpop.xlane.xlu2 %1105 }
 0x3f3   :  { %v1152_v51 = vsub.f32 %v712_v14, %v1106_v50  ;;  %v997_v52 = vpop.f32.mrf.mxu2  ;;  %v919_v6 = vpop.f32.mrf.mxu3 }
 0x3f4   :  { %v7700_v53 = vadd.f32 %v997_v52, %v465_v49  ;;  %v7727_v13 = vadd.f32 %v919_v6, %v462_v11 }
 0x3f5   :  { %v1168_v54 = vmul.f32 1.442695, %v1152_v51 }
 0x3f6   :  { %v1137_v55 = vsel %vm689_vm5, %v7700_v53, -inf  ;;  %v1128_v17 = vsel %vm689_vm5, %v7727_v13, -inf }
 0x3f7   :  { %6454 = vpow2.f32 %v1168_v54  ;;  %1138 = vmax.xlane.f32.xlu0 %v1137_v55 }
 0x3fb   :  { %v1023_v16 = vpop.f32.mrf.mxu3  ;;  %v1101_v37 = vpop.f32.mrf.mxu2 }
 0x3fc   :  { %v7735_v20 = vadd.f32 %v1023_v16, %v466_v15 }
 0x3fd   :  { %v7705_v60 = vpop.eup %6454  ;;  %v971_v62 = vpop.f32.mrf.mxu1 }
 0x3fe   :  { %v7707_v63 = vadd.f32 %v971_v62, %v464_v57  ;;  %v1200_v0 = vsel %vm689_vm5, %v7705_v60, 0.0  ;;  %v1140_v22 = vsel %vm689_vm5, %v7735_v20, -inf }
 0x3ff   :  { %1201 = vadd.xlane.f32.xlu2 %v1200_v0 }
 0x400   :  { %v1134_v2 = vsel %vm689_vm5, %v7707_v63, -inf }
 0x401   :  { %1135 = vmax.xlane.f32.xlu1 %v1134_v2 }
 0x405   :  { %v1075_v9 = vpop.f32.mrf.mxu1  ;;  %v1049_v27 = vpop.f32.mrf.mxu0 }
 0x406   :  { %v7725_v12 = vadd.f32 %v1075_v9, %v468_v8  ;;  %v7745_v30 = vadd.f32 %v1049_v27, %v467_v26 }
 0x407   :  { %1126 = vmax.xlane.f32.xlu2 %v1125_v7 }
 0x408   :  { %v1146_v14 = vsel %vm689_vm5, %v7725_v12, -inf  ;;  %v1143_v31 = vsel %vm689_vm5, %v7745_v30, -inf }
 0x409   :  { %1117 = vmax.xlane.f32.xlu1 %v1116_v10 }
 0x40f   :  { %1147 = vmax.xlane.f32.xlu2 %v1146_v14 }
 0x411   :  { %1129 = vmax.xlane.f32.xlu1 %v1128_v17 }
 0x417   :  { %1141 = vmax.xlane.f32.xlu2 %v1140_v22  ;;  %v1109_v23 = vpop.xlane.xlu2 %1108 }
 0x418   :  { %v1153_v24 = vsub.f32 %v7675_v28, %v1109_v23  ;;  %v469_v28 = vld [vmem:[%s9128_s20 + $0x78] sm:$0xff] }
 0x419   :  { %1132 = vmax.xlane.f32.xlu1 %v1131_v25  ;;  %v7754_v39 = vadd.f32 %v1101_v37, %v469_v28 }
 0x41a   :  { %v1170_v29 = vmul.f32 1.442695, %v1153_v24 }
 0x41b   :  { %v1149_v40 = vsel %vm689_vm5, %v7754_v39, -inf }
 0x41c   :  { %6456 = vpow2.f32 %v1170_v29 }
 0x421   :  { %1144 = vmax.xlane.f32.xlu1 %v1143_v31 }
 0x422   :  { %v7749_v35 = vpop.eup %6456 }
 0x423   :  { %v1203_v36 = vsel %vm689_vm5, %v7749_v35, 0.0 }
 0x424   :  { %1204 = vadd.xlane.f32.xlu0 %v1203_v36 }
 0x42c   :  { %1150 = vmax.xlane.f32.xlu0 %v1149_v40 }
 0x42d   :  { %v1115_v41 = vpop.xlane.xlu2 %1114 }
 0x42e   :  { %v1155_v43 = vsub.f32 %v7680_v33, %v1115_v41 }
 0x430   :  { %v1174_v44 = vmul.f32 1.442695, %v1155_v43 }
 0x432   :  { %6458 = vpow2.f32 %v1174_v44 }
 0x438   :  { %v7759_v45 = vpop.eup %6458 }
 0x439   :  { %v1209_v47 = vsel %vm689_vm5, %v7759_v45, 0.0 }
 0x43a   :  { %1210 = vadd.xlane.f32.xlu2 %v1209_v47 }
 0x44d   :  { %v1124_v49 = vpop.xlane.xlu0 %1123 }
 0x44e   :  { %v1158_v50 = vsub.f32 %v7685_v38, %v1124_v49 }
 0x450   :  { %v1180_v51 = vmul.f32 1.442695, %v1158_v50 }
 0x452   :  { %6460 = vpow2.f32 %v1180_v51  ;;  %6335 = vrot.lane.b32.xlu2 %v7620_v61, %s7176_s11 }
 0x458   :  { %v7766_v52 = vpop.eup %6460 }
 0x459   :  { %v1218_v33 = vsel %vm689_vm5, %v7766_v52, 0.0 }
 0x45a   :  { %1219 = vadd.xlane.f32.xlu1 %v1218_v33  ;;  %v1112_v54 = vpop.xlane.xlu0 %1111 }
 0x45b   :  { %v1154_v55 = vsub.f32 %v7690_v42, %v1112_v54 }
 0x45d   :  { %v1172_v56 = vmul.f32 1.442695, %v1154_v55 }
 0x45f   :  { %6462 = vpow2.f32 %v1172_v56 }
 0x462   :  { %v1121_v42 = vpop.xlane.xlu0 %1120 }
 0x463   :  { %v1157_v9 = vsub.f32 %v7695_v46, %v1121_v42 }
 0x465   :  { %v7771_v57 = vpop.eup %6462  ;;  %v1178_v14 = vmul.f32 1.442695, %v1157_v9 }
 0x466   :  { %v1206_v38 = vsel %vm689_vm5, %v7771_v57, 0.0 }
 0x467   :  { %1207 = vadd.xlane.f32.xlu0 %v1206_v38 }
 0x46a   :  { %v1139_v17 = vpop.xlane.xlu0 %1138 }
 0x46b   :  { %v1163_v23 = vsub.f32 %v7700_v53, %v1139_v17 }
 0x46d   :  { %v1190_v29 = vmul.f32 1.442695, %v1163_v23 }
 0x472   :  { %v1202_v62 = vpop.xlane.xlu2 %1201 }
 0x473   :  { %6464 = vrcp.f32 %v1202_v62  ;;  %675 = vrot.lane.b32.xlu1 %v7614_v59, %s7177_s26 }
 0x474   :  { %v1136_v61 = vpop.xlane.xlu1 %1135 }
 0x475   :  { %v1162_v0 = vsub.f32 %v7707_v63, %v1136_v61 }
 0x477   :  { %v1188_v1 = vmul.f32 1.442695, %v1162_v0 }
 0x479   :  { %v6465_v2 = vpop.eup %6464  ;;  %6466 = vpow2.f32 %v1188_v1 }
 0x47a   :  { %v1264_v3 = vmul.f32 %v6465_v2, %v7705_v60  ;;  %v1127_v6 = vpop.xlane.xlu2 %1126 }
 0x47b   :  { %v1159_v7 = vsub.f32 %v7715_v4, %v1127_v6 }
 0x47c   :  { %6051 = vmatmul.msk.f32.vlgmr.msra.gmra.mxu3 %vm689_vm5, %v1264_v3  ;;  %v1118_v8 = vpop.xlane.xlu1 %1117 }
 0x47d   :  { %v1182_v10 = vmul.f32 1.442695, %v1159_v7  ;;  %1482 = vmatpush.msra.mxu3 %v664_v48  ;;  %v1156_v19 = vsub.f32 %v7717_v5, %v1118_v8 }
 0x47f   :  { %v7782_v11 = vpop.eup %6466  ;;  %6468 = vpow2.f32 %v1182_v10  ;;  %v1176_v26 = vmul.f32 1.442695, %v1156_v19 }
 0x480   :  { %v1230_v63 = vsel %vm689_vm5, %v7782_v11, 0.0  ;;  %6470 = vpow2.f32 %v1178_v14 }
 0x481   :  { %1231 = vadd.xlane.f32.xlu2 %v1230_v63 }
 0x482   :  { %v1148_v25 = vpop.xlane.xlu2 %1147 }
 0x483   :  { %v1166_v5 = vsub.f32 %v7725_v12, %v1148_v25 }
 0x484   :  { %v1130_v15 = vpop.xlane.xlu1 %1129 }
 0x485   :  { %v7786_v60 = vpop.eup %6468  ;;  %v1160_v4 = vsub.f32 %v7727_v13, %v1130_v15  ;;  %v1196_v37 = vmul.f32 1.442695, %v1166_v5 }
 0x486   :  { %v1221_v16 = vsel %vm689_vm5, %v7786_v60, 0.0  ;;  %v7791_v18 = vpop.eup %6470 }
 0x487   :  { %1222 = vadd.xlane.f32.xlu0 %v1221_v16  ;;  %v1184_v46 = vmul.f32 1.442695, %v1160_v4  ;;  %v1215_v13 = vsel %vm689_vm5, %v7791_v18, 0.0 }
 0x489   :  { %6472 = vpow2.f32 %v1184_v46 }
 0x48a   :  { %v1142_v43 = vpop.xlane.xlu2 %1141 }
 0x48c   :  { %v1133_v22 = vpop.xlane.xlu1 %1132 }
 0x48d   :  { %v1161_v24 = vsub.f32 %v7737_v21, %v1133_v22 }
 0x48f   :  { %v1186_v27 = vmul.f32 1.442695, %v1161_v24  ;;  %1216 = vadd.xlane.f32.xlu0 %v1215_v13  ;;  %v7798_v31 = vpop.eup %6472 }
 0x490   :  { %v1224_v21 = vsel %vm689_vm5, %v7798_v31, 0.0 }
 0x491   :  { %6474 = vpow2.f32 %v1186_v27 }
 0x492   :  { %6476 = vpow2.f32 %v1176_v26 }
 0x493   :  { %6478 = vpow2.f32 %v1190_v29 }
 0x494   :  { %v1145_v36 = vpop.xlane.xlu1 %1144 }
 0x495   :  { %v1165_v53 = vsub.f32 %v7745_v30, %v1145_v36  ;;  %v1164_v30 = vsub.f32 %v7735_v20, %v1142_v43 }
 0x497   :  { %v7804_v28 = vpop.eup %6474  ;;  %v1194_v40 = vmul.f32 1.442695, %v1165_v53  ;;  %1225 = vadd.xlane.f32.xlu0 %v1224_v21  ;;  %v1205_v41 = vpop.xlane.xlu0 %1204  ;;  %v1192_v33 = vmul.f32 1.442695, %v1164_v30 }
 0x498   :  { %6480 = vrcp.f32 %v1205_v41  ;;  %v1227_v44 = vsel %vm689_vm5, %v7804_v28, 0.0  ;;  %v7808_v47 = vpop.eup %6476 }
 0x499   :  { %6482 = vpow2.f32 %v1194_v40  ;;  %1228 = vadd.xlane.f32.xlu2 %v1227_v44  ;;  %v7810_v12 = vpop.eup %6478  ;;  %v1212_v48 = vsel %vm689_vm5, %v7808_v47, 0.0 }
 0x49a   :  { %6484 = vpow2.f32 %v1196_v37  ;;  %v1233_v50 = vsel %vm689_vm5, %v7810_v12, 0.0 }
 0x49b   :  { %6486 = vpow2.f32 %v1192_v33 }
 0x49d   :  { %1213 = vadd.xlane.f32.xlu1 %v1212_v48 }
 0x49e   :  { %v6481_v49 = vpop.eup %6480 }
 0x49f   :  { %v7817_v51 = vpop.eup %6482  ;;  %v1265_v54 = vmul.f32 %v6481_v49, %v7749_v35  ;;  %1234 = vadd.xlane.f32.xlu0 %v1233_v50  ;;  %v1151_v55 = vpop.xlane.xlu0 %1150 }
 0x4a0   :  { %v1167_v56 = vsub.f32 %v7754_v39, %v1151_v55  ;;  %v1239_v20 = vsel %vm689_vm5, %v7817_v51, 0.0  ;;  %v7823_v38 = vpop.eup %6484 }
 0x4a1   :  { %6052 = vmatmul.msk.f32.vlgmr.msrb.gmra.mxu0 %vm689_vm5, %v1265_v54  ;;  %1240 = vadd.xlane.f32.xlu2 %v1239_v20  ;;  %v1242_v61 = vsel %vm689_vm5, %v7823_v38, 0.0  ;;  %v7828_v35 = vpop.eup %6486 }
 0x4a2   :  { %v1198_v62 = vmul.f32 1.442695, %v1167_v56  ;;  %v1236_v1 = vsel %vm689_vm5, %v7828_v35, 0.0 }
 0x4a4   :  { %6488 = vpow2.f32 %v1198_v62 }
 0x4a5   :  { %1243 = vadd.xlane.f32.xlu1 %v1242_v61 }
 0x4aa   :  { %v7830_v0 = vpop.eup %6488 }
 0x4ab   :  { %v1245_v39 = vsel %vm689_vm5, %v7830_v0, 0.0 }
 0x4ac   :  { %1246 = vadd.xlane.f32.xlu0 %v1245_v39 }
 0x4ad   :  { %1237 = vadd.xlane.f32.xlu1 %v1236_v1  ;;  %v1211_v2 = vpop.xlane.xlu2 %1210 }
 0x4ae   :  { %6490 = vrcp.f32 %v1211_v2 }
 0x4b4   :  { %v6491_v42 = vpop.eup %6490 }
 0x4b5   :  { %v1267_v3 = vmul.f32 %v6491_v42, %v7759_v45  ;;  %v6336_v6 = vpop.permute.xlu2 %6335 }
 0x4b6   :  { %v6338_v7 = vunpack.i.h.bf16 %v6336_v6  ;;  %v6337_v63 = vunpack.i.l.bf16 %v6336_v6 }
 0x4b7   :  { %6054 = vmatmul.msk.f32.vlgmr.msrb.gmra.mxu2 %vm689_vm5, %v1267_v3 }
 0x4b8   :  { %1551 = vmatpush.msrb.mxu2 %v6338_v7  ;;  %v494_v7 = vld [vmem:[#allocation8 + $0x38] sm:$0xff] }
 0x4c0   :  { %681 = vrot.lane.b32.xlu0 %v7614_v59, %s7178_s4 }
 0x4c6   :  { %665 = vrot.lane.b32.xlu1 %v7612_v58, %s7172_s17 }
 0x4cd   :  { %v1220_v45 = vpop.xlane.xlu1 %1219 }
 0x4ce   :  { %683 = vrot.lane.b32.xlu1 %v7612_v58, %s7178_s4 }
 0x4d6   :  { %677 = vrot.lane.b32.xlu1 %v7612_v58, %s7177_s26 }
 0x4da   :  { %v1208_v8 = vpop.xlane.xlu0 %1207 }
 0x4db   :  { %6492 = vrcp.f32 %v1208_v8  ;;  %v493_v8 = vld [vmem:[#allocation8 + $0x30] sm:$0xff] }
 0x4dc   :  { %6494 = vrcp.f32 %v1220_v45  ;;  %v492_v45 = vld [vmem:[#allocation8 + $0x28] sm:$0xff] }
 0x4e1   :  { %v6493_v9 = vpop.eup %6492 }
 0x4e2   :  { %v1266_v10 = vmul.f32 %v6493_v9, %v7771_v57  ;;  %v6495_v59 = vpop.eup %6494  ;;  %v491_v9 = vld [vmem:[#allocation8 + $0x20] sm:$0xff] }
 0x4e3   :  { %v1270_v14 = vmul.f32 %v6495_v59, %v7766_v52  ;;  %v488_v59 = vld [vmem:[#allocation8 + $0x8] sm:$0xff] }
 0x4e4   :  { %6053 = vmatmul.msk.f32.vlgmr.msrb.gmra.mxu1 %vm689_vm5, %v1266_v10  ;;  %v490_v10 = vld [vmem:[#allocation8 + $0x18] sm:$0xff] }
 0x4e5   :  { %1528 = vmatpush.msrb.mxu1 %v6337_v63  ;;  %v676_v19 = vpop.permute.xlu1 %675  ;;  %v489_v63 = vld [vmem:[#allocation8 + $0x10] sm:$0xff] }
 0x4ec   :  { %6057 = vmatmul.msk.f32.vlgmr.msra.gmra.mxu1 %vm689_vm5, %v1270_v14  ;;  %v487_v14 = vld [vmem:[#allocation8] sm:$0xff] }
 0x4f4   :  { %v1232_v15 = vpop.xlane.xlu2 %1231 }
 0x4f5   :  { %6496 = vrcp.f32 %v1232_v15 }
 0x4fa   :  { %v1223_v4 = vpop.xlane.xlu0 %1222 }
 0x4fb   :  { %v6497_v58 = vpop.eup %6496  ;;  %6498 = vrcp.f32 %v1223_v4 }
 0x4fc   :  { %v1274_v16 = vmul.f32 %v6497_v58, %v7782_v11 }
 0x4fe   :  { %6061 = vmatmul.msk.f32.vlgmr.msrb.gmra.mxu1 %vm689_vm5, %v1274_v16 }
 0x501   :  { %v6499_v46 = vpop.eup %6498 }
 0x502   :  { %v1271_v57 = vmul.f32 %v6499_v46, %v7786_v60  ;;  %v1217_v17 = vpop.xlane.xlu0 %1216 }
 0x503   :  { %6500 = vrcp.f32 %v1217_v17 }
 0x504   :  { %6058 = vmatmul.msk.f32.vlgmr.msra.gmra.mxu2 %vm689_vm5, %v1271_v57 }
 0x509   :  { %v6501_v52 = vpop.eup %6500 }
 0x50a   :  { %v1269_v22 = vmul.f32 %v6501_v52, %v7791_v18  ;;  %v1226_v23 = vpop.xlane.xlu0 %1225 }
 0x50c   :  { %6056 = vmatmul.msk.f32.vlgmr.msra.gmra.mxu0 %vm689_vm5, %v1269_v22  ;;  %v1229_v37 = vpop.xlane.xlu2 %1228 }
 0x510   :  { %v1214_v24 = vpop.xlane.xlu1 %1213 }
 0x511   :  { %6502 = vrcp.f32 %v1214_v24 }
 0x512   :  { %v1235_v25 = vpop.xlane.xlu0 %1234 }
 0x513   :  { %6504 = vrcp.f32 %v1235_v25 }
 0x514   :  { %6506 = vrcp.f32 %v1226_v23 }
 0x517   :  { %v6503_v11 = vpop.eup %6502 }
 0x518   :  { %v1268_v13 = vmul.f32 %v6503_v11, %v7808_v47  ;;  %v1244_v60 = vpop.xlane.xlu1 %1243 }
 0x519   :  { %v6505_v26 = vpop.eup %6504 }
 0x51a   :  { %v1275_v27 = vmul.f32 %v6505_v26, %v7810_v12  ;;  %6055 = vmatmul.msk.f32.vlgmr.msrb.gmra.mxu3 %vm689_vm5, %v1268_v13  ;;  %v6507_v18 = vpop.eup %6506  ;;  %v1241_v12 = vpop.xlane.xlu2 %1240 }
 0x51b   :  { %1574 = vmatpush.msrb.mxu3 %v676_v19  ;;  %v1272_v29 = vmul.f32 %v6507_v18, %v7798_v31 }
 0x51c   :  { %6062 = vmatmul.msk.f32.vlgmr.msrb.gmra.mxu2 %vm689_vm5, %v1275_v27 }
 0x51e   :  { %v7876_v62 = vpop.f32.mrf.mxu0 }
 0x51f   :  { %v1247_v21 = vpop.xlane.xlu0 %1246 }
 0x520   :  { %v1238_v5 = vpop.xlane.xlu1 %1237 }
 0x521   :  { %6508 = vrcp.f32 %v1238_v5 }
 0x522   :  { %6059 = vmatmul.msk.f32.vlgmr.msra.gmra.mxu3 %vm689_vm5, %v1272_v29  ;;  %6510 = vrcp.f32 %v1244_v60 }
 0x523   :  { %6512 = vrcp.f32 %v1229_v37  ;;  %1741 = vmatpush.msra.mxu3 %v494_v7 }
 0x524   :  { %6514 = vrcp.f32 %v1247_v21 }
 0x525   :  { %6516 = vrcp.f32 %v1241_v12  ;;  %1742 = vmatpush.msra.mxu3 %v493_v8 }
 0x527   :  { %v6509_v36 = vpop.eup %6508  ;;  %1743 = vmatpush.msra.mxu3 %v492_v45 }
 0x528   :  { %v1276_v53 = vmul.f32 %v6509_v36, %v7828_v35  ;;  %v6511_v40 = vpop.eup %6510 }
 0x529   :  { %v1278_v41 = vmul.f32 %v6511_v40, %v7823_v38  ;;  %v6513_v31 = vpop.eup %6512  ;;  %v1300_v38 = vpop.f32.mrf.mxu3  ;;  %1744 = vmatpush.msra.mxu3 %v491_v9 }
 0x52a   :  { %6063 = vmatmul.msk.f32.vlgmr.msrb.gmra.mxu3 %vm689_vm5, %v1276_v53  ;;  %v1273_v44 = vmul.f32 %v6513_v31, %v7804_v28  ;;  %v6515_v30 = vpop.eup %6514  ;;  %v6429_v31 = vld [vmem:[%s9129_s21] ss:$0 sm:$0xff]  ;;  %s9139_s21 = sld [smem:[#allocation41_spill]] }
 0x52b   :  { %v1279_v48 = vmul.f32 %v6515_v30, %v7830_v0  ;;  %v6517_v50 = vpop.eup %6516  ;;  %1745 = vmatpush.msra.mxu3 %v490_v10 }
 0x52c   :  { %v1277_v33 = vmul.f32 %v6517_v50, %v7817_v51 }
 0x52d   :  { %1746 = vmatpush.msra.mxu3 %v489_v63 }
 0x52f   :  { %1747 = vmatpush.msra.mxu3 %v488_v59 }
 0x531   :  { %1748 = vmatpush.msra.mxu3 %v487_v14 }
 0x532   :  { %v682_v43 = vpop.permute.xlu0 %681 }
 0x533   :  { %1620 = vmatpush.msra.mxu1 %v682_v43 }
 0x534   :  { %6065 = vmatmul.msk.f32.vlgmr.msra.gmra.mxu1 %vm689_vm5, %v1278_v41 }
 0x538   :  { %v666_v47 = vpop.permute.xlu1 %665 }
 0x539   :  { %1505 = vmatpush.msrb.mxu0 %v666_v47 }
 0x53a   :  { %6060 = vmatmul.msk.f32.vlgmr.msrb.gmra.mxu0 %vm689_vm5, %v1273_v44  ;;  %v1369_v56 = vpop.f32.mrf.mxu2 }
 0x540   :  { %v684_v49 = vpop.permute.xlu1 %683 }
 0x541   :  { %1643 = vmatpush.msra.mxu2 %v684_v49 }
 0x542   :  { %6066 = vmatmul.msk.f32.vlgmr.msra.gmra.mxu2 %vm689_vm5, %v1279_v48 }
 0x548   :  { %v678_v54 = vpop.permute.xlu1 %677 }
 0x549   :  { %1597 = vmatpush.msra.mxu0 %v678_v54  ;;  %v512_v54 = vld [vmem:[#allocation11 + $0x38] sm:$0xff] }
 0x54a   :  { %6064 = vmatmul.msk.f32.vlgmr.msra.gmra.mxu0 %vm689_vm5, %v1277_v33  ;;  %1868 = vmatpush.msrb.mxu1 %v512_v54 }
 0x561   :  { %v1346_v28 = vpop.f32.mrf.mxu1 }
 0x562   :  { %1650 = vrot.lane.b32.xlu0 %v1346_v28, %s7156_s22  ;;  %v511_v28 = vld [vmem:[#allocation11 + $0x30] sm:$0xff] }
 0x563   :  { %1869 = vmatpush.msrb.mxu1 %v511_v28 }
 0x569   :  { %v1438_v55 = vpop.f32.mrf.mxu1 }
 0x56a   :  { %1666 = vrot.lane.b32.xlu0 %v1438_v55, %s7180_s25  ;;  %v510_v55 = vld [vmem:[#allocation11 + $0x28] sm:$0xff] }
 0x56b   :  { %1870 = vmatpush.msrb.mxu1 %v510_v55 }
 0x572   :  { %1652 = vrot.lane.b32.xlu0 %v1369_v56, %s7156_s22  ;;  %v7185_v56 = vmov 64.0  }
 0x573   :  { %6518 = vrcp.f32 %v7185_v56 }
 0x57b   :  { %v1530_v20 = vpop.f32.mrf.mxu1 }
 0x57c   :  { %1682 = vrot.lane.b32.xlu2 %v1530_v20, %s7181_s14  ;;  %v509_v20 = vld [vmem:[#allocation11 + $0x20] sm:$0xff] }
 0x57d   :  { %1871 = vmatpush.msrb.mxu1 %v509_v20 }
 0x587   :  { %v1461_v51 = vpop.f32.mrf.mxu2 }
 0x589   :  { %v1415_v0 = vpop.f32.mrf.mxu0 }
 0x59d   :  { %v1392_v61 = vpop.f32.mrf.mxu3 }
 0x59e   :  { %1658 = vrot.lane.b32.xlu1 %v1392_v61, %s7164_s23 }
 0x59f   :  { %v1553_v35 = vpop.f32.mrf.mxu2 }
 0x5a0   :  { %1684 = vrot.lane.b32.xlu2 %v1553_v35, %s7181_s14  ;;  %v452_v35 = vld [vmem:[%s9130_s2] sm:$0xff] }
 0x5a5   :  { %v1484_v39 = vpop.f32.mrf.mxu3 }
 0x5a6   :  { %1660 = vrot.lane.b32.xlu1 %v1415_v0, %s7164_s23 }
 0x5ad   :  { %v1576_v1 = vpop.f32.mrf.mxu3 }
 0x5ae   :  { %1674 = vrot.lane.b32.xlu1 %v1484_v39, %s7182_s0  ;;  %1690 = vrot.lane.b32.xlu0 %v1576_v1, %s7183_s1 }
 0x5b1   :  { %v1622_v2 = vpop.f32.mrf.mxu1 }
 0x5b6   :  { %1668 = vrot.lane.b32.xlu0 %v1461_v51, %s7180_s25  ;;  %1698 = vrot.lane.b32.xlu1 %v1622_v2, %s7184_s12  ;;  %v6519_v51 = vpop.eup %6518  ;;  %v453_v2 = vld [vmem:[%s9130_s2 + $0x8] sm:$0xff] }
 0x5b7   :  { %v1507_v42 = vpop.f32.mrf.mxu0  ;;  %v1765_v61 = vmul.f32 64.0, %v6519_v51  ;;  %vm1769_vm12 = vweird.f32 %v6519_v51 }
 0x5b9   :  { %v1766_v0 = vsub.f32 1.0, %v1765_v61 }
 0x5bb   :  { %v1767_v39 = vmul.f32 %v6519_v51, %v1766_v0 }
 0x5bd   :  { %v1768_v1 = vadd.f32 %v6519_v51, %v1767_v39 }
 0x5be   :  { %1676 = vrot.lane.b32.xlu1 %v1507_v42, %s7182_s0 }
 0x5bf   :  { %v7914_v42 = vsel %vm1769_vm12, %v6519_v51, %v1768_v1  ;;  %v6433_v51 = vld [vmem:[%s9134_s10] ss:$0 sm:$0xff]  ;;  %s9143_s10 = sld [smem:[#allocation49_spill]] }
 0x5c5   :  { %v1645_v3 = vpop.f32.mrf.mxu2 }
 0x5c6   :  { %1700 = vrot.lane.b32.xlu1 %v1645_v3, %s7184_s12 }
 0x5c7   :  { %v1599_v6 = vpop.f32.mrf.mxu0 }
 0x5c8   :  { %1692 = vrot.lane.b32.xlu0 %v1599_v6, %s7183_s1 }
 0x5d4   :  { %v1651_v15 = vpop.permute.xlu0 %1650 }
 0x5d5   :  { %v1704_v46 = vsel %vm689_vm5, %v1300_v38, %v1651_v15  ;;  %v507_v38 = vld [vmem:[#allocation11 + $0x10] sm:$0xff]  ;;  %v503_v15 = vld [vmem:[#allocation10 + $0x38] sm:$0xff] }
 0x5d6   :  { %v1683_v23 = vpop.permute.xlu2 %1682  ;;  %1836 = vmatpush.msrb.mxu0 %v503_v15 }
 0x5dc   :  { %v1667_v58 = vpop.permute.xlu0 %1666 }
 0x5e4   :  { %v1653_v17 = vpop.permute.xlu0 %1652 }
 0x5e5   :  { %v1705_v18 = vsel %vm689_vm5, %v7876_v62, %v1653_v17  ;;  %v505_v62 = vld [vmem:[#allocation11] sm:$0xff] }
 0x5e6   :  { %v500_v17 = vld [vmem:[#allocation10 + $0x20] sm:$0xff] }
 0x5fa   :  { %v1685_v53 = vpop.permute.xlu2 %1684 }
 0x610   :  { %v1659_v4 = vpop.permute.xlu1 %1658 }
 0x611   :  { %v1707_v57 = vsel %vm1706_vm6, %v1704_v46, %v1659_v4  ;;  %v502_v4 = vld [vmem:[#allocation10 + $0x30] sm:$0xff] }
 0x612   :  { %v1710_v52 = vsel %vm1709_vm7, %v1707_v57, %v1667_v58  ;;  %1837 = vmatpush.msrb.mxu0 %v502_v4  ;;  %v501_v58 = vld [vmem:[#allocation10 + $0x28] sm:$0xff] }
 0x614   :  { %1838 = vmatpush.msrb.mxu0 %v501_v58 }
 0x616   :  { %1839 = vmatpush.msrb.mxu0 %v500_v17 }
 0x618   :  { %v1661_v16 = vpop.permute.xlu1 %1660 }
 0x619   :  { %v1708_v29 = vsel %vm1706_vm6, %v1705_v18, %v1661_v16  ;;  %v6431_v16 = vld [vmem:[%s9131_s3] ss:$0 sm:$0xff]  ;;  %s9140_s3 = sld [smem:[#allocation43_spill]] }
 0x620   :  { %v1675_v19 = vpop.permute.xlu1 %1674  ;;  %v1691_v25 = vpop.permute.xlu0 %1690 }
 0x621   :  { %v1713_v22 = vsel %vm1712_vm8, %v1710_v52, %v1675_v19  ;;  %v499_v19 = vld [vmem:[#allocation10 + $0x18] sm:$0xff]  ;;  %v498_v52 = vld [vmem:[#allocation10 + $0x10] sm:$0xff] }
 0x622   :  { %v1716_v24 = vsel %vm1715_vm9, %v1713_v22, %v1683_v23  ;;  %1840 = vmatpush.msrb.mxu0 %v499_v19  ;;  %v497_v22 = vld [vmem:[#allocation10 + $0x8] sm:$0xff]  ;;  %v496_v23 = vld [vmem:[#allocation10] sm:$0xff] }
 0x623   :  { %v1719_v11 = vsel %vm1718_vm10, %v1716_v24, %v1691_v25 }
 0x624   :  { %1841 = vmatpush.msrb.mxu0 %v498_v52 }
 0x626   :  { %1842 = vmatpush.msrb.mxu0 %v497_v22 }
 0x628   :  { %v1699_v13 = vpop.permute.xlu1 %1698  ;;  %v1669_v27 = vpop.permute.xlu0 %1668  ;;  %1843 = vmatpush.msrb.mxu0 %v496_v23 }
 0x629   :  { %v1722_v60 = vsel %vm1721_vm11, %v1719_v11, %v1699_v13  ;;  %v1711_v5 = vsel %vm1709_vm7, %v1708_v29, %v1669_v27 }
 0x62a   :  { %6067 = vmatmul.msk.f32.vlgmr.msra.gmra.mxu3 %vm560_vm4, %v1722_v60 }
 0x630   :  { %v1677_v26 = vpop.permute.xlu1 %1676 }
 0x631   :  { %v1714_v36 = vsel %vm1712_vm8, %v1711_v5, %v1677_v26 }
 0x632   :  { %v1717_v37 = vsel %vm1715_vm9, %v1714_v36, %v1685_v53 }
 0x638   :  { %v1701_v40 = vpop.permute.xlu1 %1700 }
 0x63a   :  { %v1693_v21 = vpop.permute.xlu0 %1692 }
 0x63b   :  { %v1720_v41 = vsel %vm1718_vm10, %v1717_v37, %v1693_v21  ;;  %v6430_v37 = vld [vmem:[%s9132_s7] ss:$0 sm:$0xff]  ;;  %s9141_s7 = sld [smem:[#allocation50_spill]] }
 0x63c   :  { %v1723_v43 = vsel %vm1721_vm11, %v1720_v41, %v1701_v40 }
 0x63d   :  { %6068 = vmatmul.msk.f32.gmra.mxu3 %vm560_vm4, %v1723_v43 }
 0x6ad   :  { %v1750_v44 = vpop.f32.mrf.mxu3 }
 0x6ae   :  { %v1751_v47 = vadd.f32 %v6429_v31, %v1750_v44 }
 0x6b0   :  { %v1756_v12 = vadd.f32 %v1751_v47, %v7544_v32  ;;  %v508_v32 = vld [vmem:[#allocation11 + $0x18] sm:$0xff] }
 0x6b1   :  { %1872 = vmatpush.msrb.mxu1 %v508_v32 }
 0x6b2   :  { %v1758_v30 = vsel %vm560_vm4, %v1756_v12, 0.0 }
 0x6b3   :  { %1759 = vadd.xlane.f32.xlu2 %v1758_v30  ;;  %1873 = vmatpush.msrb.mxu1 %v507_v38 }
 0x6c0   :  { %v1753_v48 = vpop.f32.mrf.mxu3 }
 0x6c1   :  { %v1754_v49 = vadd.f32 %v6429_v31, %v1753_v48  ;;  %v6432_v31 = vld [vmem:[%s9133_s6] ss:$0 sm:$0xff]  ;;  %s9142_s6 = sld [smem:[#allocation48_spill]] }
 0x6c3   :  { %v1757_v50 = vadd.f32 %v1754_v49, %v7550_v34  ;;  %v506_v34 = vld [vmem:[#allocation11 + $0x8] sm:$0xff] }
 0x6c4   :  { %1874 = vmatpush.msrb.mxu1 %v506_v34 }
 0x6c5   :  { %v1761_v33 = vsel %vm560_vm4, %v1757_v50, 0.0 }
 0x6c6   :  { %1762 = vadd.xlane.f32.xlu0 %v1761_v33  ;;  %1875 = vmatpush.msrb.mxu1 %v505_v62 }
 0x6c7   :  { %6071 = vmatmul.msk.f32.vlgmr.msrb.gmra.mxu1 %vm560_vm4, %v452_v35 }
 0x6cf   :  { %6072 = vmatmul.msk.f32.gmra.mxu1 %vm560_vm4, %v453_v2 }
 0x726   :  { %v1760_v3 = vpop.xlane.xlu2 %1759 }
 0x727   :  { %v1771_v6 = vmul.f32 %v7914_v42, %v1760_v3 }
 0x729   :  { %v1773_v7 = vsub.f32 %v1756_v12, %v1771_v6 }
 0x72b   :  { %v1775_v8 = vmul.f32 %v1773_v7, %v1773_v7 }
 0x72d   :  { %v1777_v45 = vsel %vm560_vm4, %v1775_v8, 0.0 }
 0x72e   :  { %1778 = vadd.xlane.f32.xlu1 %v1777_v45 }
 0x739   :  { %v1763_v9 = vpop.xlane.xlu0 %1762 }
 0x73a   :  { %v1772_v10 = vmul.f32 %v7914_v42, %v1763_v9 }
 0x73c   :  { %v7919_v63 = vsub.f32 %v1757_v50, %v1772_v10 }
 0x73e   :  { %v1776_v59 = vmul.f32 %v7919_v63, %v7919_v63 }
 0x740   :  { %v1780_v14 = vsel %vm560_vm4, %v1776_v59, 0.0 }
 0x741   :  { %1781 = vadd.xlane.f32.xlu2 %v1780_v14 }
 0x744   :  { %v1877_v46 = vpop.f32.mrf.mxu1 }
 0x745   :  { %v7925_v57 = vadd.f32 %v6431_v16, %v1877_v46 }
 0x747   :  { %1915 = vrot.lane.b32.xlu0 %v7925_v57, %s7173_s29  ;;  %6073 = vmatpush.xpose.msk.msrb.mxu2 %vm689_vm5, %v7925_v57 }
 0x74c   :  { %v1880_v18 = vpop.f32.mrf.mxu1 }
 0x74d   :  { %v7940_v29 = vadd.f32 %v6431_v16, %v1880_v18 }
 0x74f   :  { %1925 = vrot.lane.b32.xlu1 %v7940_v29, %s7175_s16  ;;  %1917 = vrot.lane.b32.xlu0 %v7940_v29, %s7173_s29 }
 0x750   :  { %6075 = vmatpush.xpose.msk.msra.mxu2 %vm689_vm5, %v7940_v29 }
 0x757   :  { %1933 = vrot.lane.b32.xlu1 %v7940_v29, %s7176_s11 }
 0x759   :  { %1923 = vrot.lane.b32.xlu2 %v7925_v57, %s7175_s16 }
 0x761   :  { %1931 = vrot.lane.b32.xlu2 %v7925_v57, %s7176_s11 }
 0x769   :  { %1919 = vrot.lane.b32.xlu2 %v7925_v57, %s7174_s24 }
 0x771   :  { %1939 = vrot.lane.b32.xlu2 %v7925_v57, %s7178_s4 }
 0x779   :  { %1927 = vrot.lane.b32.xlu2 %v7925_v57, %s7172_s17 }
 0x7a1   :  { %v1779_v24 = vpop.xlane.xlu1 %1778 }
 0x7a2   :  { %v1783_v25 = vmul.f32 %v1779_v24, %v7914_v42 }
 0x7a4   :  { %v1785_v11 = vadd.f32 1e-05, %v1783_v25 }
 0x7a6   :  { %6520 = vrsqrt.f32 %v1785_v11  ;;  %vm1793_vm14 = vweird.f32 %v1785_v11 }
 0x7ac   :  { %v6521_v13 = vpop.eup %6520 }
 0x7ad   :  { %v1788_v60 = vmul.f32 %v6521_v13, %v1785_v11  ;;  %vm1794_vm13 = vweird.f32 %v6521_v13 }
 0x7ae   :  { %vm1795_vm15 = vmor %vm1793_vm14, %vm1794_vm13 }
 0x7af   :  { %v1789_v26 = vmul.f32 %v6521_v13, %v1788_v60 }
 0x7b1   :  { %v1790_v27 = vmul.f32 0.5, %v1789_v26 }
 0x7b3   :  { %v1791_v5 = vsub.f32 1.5, %v1790_v27 }
 0x7b4   :  { %v1782_v36 = vpop.xlane.xlu2 %1781 }
 0x7b5   :  { %v1792_v53 = vmul.f32 %v6521_v13, %v1791_v5  ;;  %v1784_v21 = vmul.f32 %v1782_v36, %v7914_v42 }
 0x7b7   :  { %v1796_v40 = vsel %vm1795_vm15, %v6521_v13, %v1792_v53  ;;  %v1786_v41 = vadd.f32 1e-05, %v1784_v21 }
 0x7b8   :  { %v1807_v43 = vmul.f32 %v1796_v40, %v1773_v7 }
 0x7b9   :  { %6522 = vrsqrt.f32 %v1786_v41  ;;  %vm1803_vm1 = vweird.f32 %v1786_v41  ;;  %v1916_v61 = vpop.permute.xlu0 %1915 }
 0x7ba   :  { %v1812_v44 = vmul.f32 %v6430_v37, %v1807_v43  ;;  %v6339_v1 = vpack.i.bf16 %v7925_v57, %v1916_v61 }
 0x7bc   :  { %v7953_v47 = vadd.f32 %v6432_v31, %v1812_v44  ;;  %v1924_v20 = vpop.permute.xlu2 %1923 }
 0x7be   :  { %6069 = vmatmul.msk.f32.vlgmr.msrb.gmra.mxu0 %vm560_vm4, %v7953_v47 }
 0x7bf   :  { %v6523_v12 = vpop.eup %6522 }
 0x7c0   :  { %v1798_v30 = vmul.f32 %v6523_v12, %v1786_v41  ;;  %vm1804_vm0 = vweird.f32 %v6523_v12 }
 0x7c1   :  { %vm1805_vm2 = vmor %vm1803_vm1, %vm1804_vm0  ;;  %v1918_v3 = vpop.permute.xlu0 %1917  ;;  %v7996_v6 = vpop.permute.xlu1 %1925 }
 0x7c2   :  { %v1799_v48 = vmul.f32 %v6523_v12, %v1798_v30  ;;  %6079 = vmatpush.xpose.msk.msrb.mxu3 %vm689_vm5, %v1918_v3  ;;  %v6344_v7 = vpack.i.bf16 %v1918_v3, %v1924_v20 }
 0x7c4   :  { %v1800_v49 = vmul.f32 0.5, %v1799_v48  ;;  %v7964_v32 = vpop.permute.xlu2 %1931 }
 0x7c6   :  { %v1801_v50 = vsub.f32 1.5, %v1800_v49  ;;  %6087 = vmatpush.xpose.msk.msra.mxu3 %vm689_vm5, %v7996_v6 }
 0x7c8   :  { %v1802_v33 = vmul.f32 %v6523_v12, %v1801_v50 }
 0x7c9   :  { %v8014_v10 = vpop.permute.xlu1 %1933 }
 0x7ca   :  { %v1806_v54 = vsel %vm1805_vm2, %v6523_v12, %v1802_v33 }
 0x7cb   :  { %v1808_v28 = vmul.f32 %v1806_v54, %v7919_v63 }
 0x7cc   :  { %v1920_v38 = vpop.permute.xlu2 %1919 }
 0x7cd   :  { %v1813_v55 = vmul.f32 %v6430_v37, %v1808_v28  ;;  %6081 = vmatpush.xpose.msk.msra.mxu0 %vm689_vm5, %v1920_v38  ;;  %v6349_v8 = vpack.i.bf16 %v7940_v29, %v1920_v38 }
 0x7cf   :  { %v7960_v56 = vadd.f32 %v6432_v31, %v1813_v55 }
 0x7d1   :  { %6070 = vmatmul.msk.f32.gmra.mxu0 %vm560_vm4, %v7960_v56 }
 0x7d4   :  { %v7984_v39 = vpop.permute.xlu2 %1939 }
 0x7dc   :  { %v7991_v2 = vpop.permute.xlu2 %1927 }
 0x7dd   :  { %6089 = vmatpush.xpose.msk.msrb.mxu0 %vm689_vm5, %v7991_v2 }
 0x83b   :  { %v1845_v34 = vpop.f32.mrf.mxu0 }
 0x83c   :  { %v1846_v62 = vadd.f32 %v6433_v51, %v1845_v34 }
 0x83e   :  { %1885 = vrot.lane.b32.xlu1 %v1846_v62, %s7173_s29  ;;  %1897 = vrot.lane.b32.xlu2 %v1846_v62, %s7172_s17 }
 0x83f   :  { %1901 = vrot.lane.b32.xlu0 %v1846_v62, %s7176_s11  ;;  %6074 = vmatmul.msk.f32.vlgmr.msrb.gmra.mxu2 %vm689_vm5, %v1846_v62 }
 0x840   :  { %6077 = vmatpush.xpose.msk.msrb.mxu2 %vm689_vm5, %v1916_v61 }
 0x846   :  { %1893 = vrot.lane.b32.xlu1 %v1846_v62, %s7175_s16  ;;  %1935 = vrot.lane.b32.xlu2 %v7925_v57, %s7177_s26 }
 0x847   :  { %1889 = vrot.lane.b32.xlu0 %v1846_v62, %s7174_s24 }
 0x84e   :  { %v1848_v35 = vpop.f32.mrf.mxu0  ;;  %1905 = vrot.lane.b32.xlu2 %v1846_v62, %s7177_s26 }
 0x84f   :  { %v1849_v0 = vadd.f32 %v6433_v51, %v1848_v35  ;;  %1909 = vrot.lane.b32.xlu0 %v1846_v62, %s7178_s4 }
 0x851   :  { %1895 = vrot.lane.b32.xlu1 %v1849_v0, %s7175_s16  ;;  %6076 = vmatmul.msk.f32.vlgmr.msra.gmra.mxu2 %vm689_vm5, %v1849_v0 }
 0x852   :  { %6085 = vmatpush.xpose.msk.msra.mxu2 %vm689_vm5, %v1924_v20 }
 0x856   :  { %1907 = vrot.lane.b32.xlu2 %v1849_v0, %s7177_s26 }
 0x857   :  { %1887 = vrot.lane.b32.xlu0 %v1849_v0, %s7173_s29 }
 0x859   :  { %1903 = vrot.lane.b32.xlu1 %v1849_v0, %s7176_s11 }
 0x85e   :  { %6340 = vrot.lane.b32.xlu2 %v6339_v1, %s7179_s28 }
 0x85f   :  { %1921 = vrot.lane.b32.xlu0 %v7940_v29, %s7174_s24 }
 0x861   :  { %1891 = vrot.lane.b32.xlu1 %v1849_v0, %s7174_s24 }
 0x867   :  { %1941 = vrot.lane.b32.xlu0 %v7940_v29, %s7178_s4 }
 0x869   :  { %1911 = vrot.lane.b32.xlu1 %v1849_v0, %s7178_s4 }
 0x86f   :  { %1929 = vrot.lane.b32.xlu0 %v7940_v29, %s7172_s17 }
 0x871   :  { %1899 = vrot.lane.b32.xlu1 %v1849_v0, %s7172_s17 }
 0x877   :  { %1937 = vrot.lane.b32.xlu0 %v7940_v29, %s7177_s26 }
 0x879   :  { %6345 = vrot.lane.b32.xlu1 %v6344_v7, %s7179_s28 }
 0x87f   :  { %6350 = vrot.lane.b32.xlu0 %v6349_v8, %s7179_s28 }
 0x898   :  { %v1898_v45 = vpop.permute.xlu2 %1897 }
 0x8a0   :  { %v8012_v9 = vpop.permute.xlu2 %1935 }
 0x8a8   :  { %v1906_v63 = vpop.permute.xlu2 %1905 }
 0x8b0   :  { %v1886_v59 = vpop.permute.xlu1 %1885  ;;  %v1908_v15 = vpop.permute.xlu2 %1907 }
 0x8b1   :  { %v1902_v14 = vpop.permute.xlu0 %1901  ;;  %6078 = vmatmul.msk.f32.vlgmr.msrb.gmra.mxu2 %vm689_vm5, %v1886_v59 }
 0x8b2   :  { %6093 = vmatpush.xpose.msk.msrb.mxu2 %vm689_vm5, %v7964_v32 }
 0x8b8   :  { %v1894_v4 = vpop.permute.xlu1 %1893  ;;  %v6341_v16 = vpop.permute.xlu2 %6340 }
 0x8b9   :  { %v1890_v58 = vpop.permute.xlu0 %1889  ;;  %6086 = vmatmul.msk.f32.vlgmr.msra.gmra.mxu2 %vm689_vm5, %v1894_v4  ;;  %v6342_v46 = vunpack.i.l.bf16 %v6341_v16  ;;  %v6343_v57 = vunpack.i.h.bf16 %v6341_v16 }
 0x8ba   :  { %6082 = vmatmul.msk.f32.vlgmr.msra.gmra.mxu0 %vm689_vm5, %v1890_v58  ;;  %6101 = vmatpush.xpose.msk.msra.mxu2 %vm689_vm5, %v7984_v39 }
 0x8bb   :  { %6097 = vmatpush.xpose.msk.msra.mxu0 %vm689_vm5, %v8012_v9 }
 0x8c1   :  { %v1910_v17 = vpop.permute.xlu0 %1909  ;;  %6094 = vmatmul.msk.f32.vlgmr.msrb.gmra.mxu2 %vm689_vm5, %v1902_v14 }
 0x8c2   :  { %v1964_v19 = vpop.f32.mrf.mxu2  ;;  %6090 = vmatmul.msk.f32.vlgmr.msrb.gmra.mxu0 %vm689_vm5, %v1898_v45  ;;  %2576 = vmatpush.msrb.mxu2 %v6342_v46 }
 0x8c3   :  { %2524 = vmatpush.msrb.mxu0 %v6343_v57  ;;  %v1896_v52 = vpop.permute.xlu1 %1895  ;;  %v2327_v22 = vsel %vm689_vm5, %v1964_v19, -inf }
 0x8c4   :  { %2328 = vmax.xlane.f32.xlu0 %v2327_v22 }
 0x8c9   :  { %v1888_v23 = vpop.permute.xlu0 %1887  ;;  %6102 = vmatmul.msk.f32.vlgmr.msra.gmra.mxu2 %vm689_vm5, %v1910_v17 }
 0x8ca   :  { %6080 = vmatmul.msk.f32.vlgmr.msrb.gmra.mxu3 %vm689_vm5, %v1888_v23  ;;  %6098 = vmatmul.msk.f32.vlgmr.msra.gmra.mxu0 %vm689_vm5, %v1906_v63  ;;  %v6354_v23 = vpack.i.bf16 %v7996_v6, %v7964_v32 }
 0x8cb   :  { %6095 = vmatpush.xpose.msk.msrb.mxu3 %vm689_vm5, %v8014_v10  ;;  %v1904_v24 = vpop.permute.xlu1 %1903 }
 0x8d1   :  { %v8033_v25 = vpop.permute.xlu0 %1921 }
 0x8d2   :  { %6083 = vmatpush.xpose.msk.msra.mxu1 %vm689_vm5, %v8033_v25  ;;  %6088 = vmatmul.msk.f32.vlgmr.msra.gmra.mxu3 %vm689_vm5, %v1896_v52 }
 0x8d3   :  { %v1892_v11 = vpop.permute.xlu1 %1891 }
 0x8d4   :  { %v8038_v13 = vpop.f32.mrf.mxu2 }
 0x8d5   :  { %6084 = vmatmul.msk.f32.vlgmr.msra.gmra.mxu1 %vm689_vm5, %v1892_v11  ;;  %v2330_v60 = vsel %vm689_vm5, %v8038_v13, -inf }
 0x8d6   :  { %2331 = vmax.xlane.f32.xlu2 %v2330_v60 }
 0x8d9   :  { %v8043_v26 = vpop.permute.xlu0 %1941 }
 0x8da   :  { %6096 = vmatmul.msk.f32.vlgmr.msrb.gmra.mxu3 %vm689_vm5, %v1904_v24 }
 0x8db   :  { %6103 = vmatpush.xpose.msk.msra.mxu3 %vm689_vm5, %v8043_v26  ;;  %v1912_v27 = vpop.permute.xlu1 %1911 }
 0x8e1   :  { %v8048_v18 = vpop.permute.xlu0 %1929 }
 0x8e2   :  { %6091 = vmatpush.xpose.msk.msrb.mxu1 %vm689_vm5, %v8048_v18  ;;  %6104 = vmatmul.msk.f32.vlgmr.msra.gmra.mxu3 %vm689_vm5, %v1912_v27 }
 0x8e3   :  { %v1900_v29 = vpop.permute.xlu1 %1899 }
 0x8e5   :  { %6092 = vmatmul.msk.f32.vlgmr.msrb.gmra.mxu1 %vm689_vm5, %v1900_v29 }
 0x8e9   :  { %v8054_v5 = vpop.permute.xlu0 %1937 }
 0x8ea   :  { %6099 = vmatpush.xpose.msk.msra.mxu1 %vm689_vm5, %v8054_v5 }
 0x8eb   :  { %v6346_v36 = vpop.permute.xlu1 %6345 }
 0x8ec   :  { %v6348_v53 = vunpack.i.h.bf16 %v6346_v36  ;;  %v6347_v21 = vunpack.i.l.bf16 %v6346_v36 }
 0x8ed   :  { %6100 = vmatmul.msk.f32.vlgmr.msra.gmra.mxu1 %vm689_vm5, %v1908_v15 }
 0x8ee   :  { %2602 = vmatpush.msrb.mxu3 %v6348_v53  ;;  %2680 = vmatpush.msra.mxu2 %v6347_v21 }
 0x8f1   :  { %v6351_v37 = vpop.permute.xlu0 %6350 }
 0x8f2   :  { %v6353_v40 = vunpack.i.h.bf16 %v6351_v37  ;;  %v6352_v41 = vunpack.i.l.bf16 %v6351_v37 }
 0x8f4   :  { %2550 = vmatpush.msrb.mxu1 %v6353_v40  ;;  %2628 = vmatpush.msra.mxu0 %v6352_v41 }
 0x934   :  { %v2012_v43 = vpop.f32.mrf.mxu2 }
 0x935   :  { %v2333_v31 = vsel %vm689_vm5, %v2012_v43, -inf }
 0x936   :  { %2334 = vmax.xlane.f32.xlu1 %v2333_v31 }
 0x937   :  { %v2060_v44 = vpop.f32.mrf.mxu0  ;;  %v2329_v30 = vpop.xlane.xlu0 %2328 }
 0x938   :  { %v2339_v12 = vsel %vm689_vm5, %v2060_v44, -inf  ;;  %v2375_v48 = vsub.f32 %v1964_v19, %v2329_v30 }
 0x939   :  { %2340 = vmax.xlane.f32.xlu0 %v2339_v12 }
 0x93a   :  { %v2391_v33 = vmul.f32 1.442695, %v2375_v48 }
 0x93c   :  { %v8065_v54 = vpop.f32.mrf.mxu2  ;;  %6524 = vpow2.f32 %v2391_v33 }
 0x93d   :  { %v2345_v28 = vsel %vm689_vm5, %v8065_v54, -inf }
 0x93f   :  { %v8061_v49 = vpop.f32.mrf.mxu0 }
 0x940   :  { %v2351_v50 = vsel %vm689_vm5, %v8061_v49, -inf }
 0x941   :  { %2352 = vmax.xlane.f32.xlu2 %v2351_v50 }
 0x942   :  { %v8069_v55 = vpop.eup %6524 }
 0x943   :  { %v2423_v38 = vsel %vm689_vm5, %v8069_v55, 0.0 }
 0x944   :  { %v8100_v4 = vpop.f32.mrf.mxu2 }
 0x945   :  { %v2357_v16 = vsel %vm689_vm5, %v8100_v4, -inf }
 0x947   :  { %v8087_v3 = vpop.f32.mrf.mxu0 }
 0x948   :  { %v2363_v63 = vsel %vm689_vm5, %v8087_v3, -inf }
 0x949   :  { %2346 = vmax.xlane.f32.xlu2 %v2345_v28  ;;  %v2332_v1 = vpop.xlane.xlu2 %2331 }
 0x94a   :  { %v2376_v7 = vsub.f32 %v8038_v13, %v2332_v1 }
 0x94c   :  { %v2393_v14 = vmul.f32 1.442695, %v2376_v7  ;;  %v8114_v52 = vpop.f32.mrf.mxu2 }
 0x94d   :  { %v8071_v20 = vpop.f32.mrf.mxu3  ;;  %v2369_v22 = vsel %vm689_vm5, %v8114_v52, -inf }
 0x94e   :  { %v2336_v61 = vsel %vm689_vm5, %v8071_v20, -inf  ;;  %6526 = vpow2.f32 %v2393_v14 }
 0x951   :  { %2424 = vadd.xlane.f32.xlu2 %v2423_v38 }
 0x952   :  { %v8075_v51 = vpop.f32.mrf.mxu1 }
 0x953   :  { %v2342_v34 = vsel %vm689_vm5, %v8075_v51, -inf }
 0x954   :  { %2343 = vmax.xlane.f32.xlu1 %v2342_v34  ;;  %v8106_v46 = vpop.eup %6526 }
 0x955   :  { %v8079_v62 = vpop.f32.mrf.mxu3  ;;  %v2426_v17 = vsel %vm689_vm5, %v8106_v46, 0.0 }
 0x956   :  { %v2348_v58 = vsel %vm689_vm5, %v8079_v62, -inf }
 0x95c   :  { %2337 = vmax.xlane.f32.xlu1 %v2336_v61 }
 0x95d   :  { %v8083_v35 = vpop.f32.mrf.mxu3 }
 0x95e   :  { %v2360_v0 = vsel %vm689_vm5, %v8083_v35, -inf }
 0x95f   :  { %2361 = vmax.xlane.f32.xlu2 %v2360_v0 }
 0x962   :  { %v8090_v8 = vpop.f32.mrf.mxu1 }
 0x963   :  { %v2354_v45 = vsel %vm689_vm5, %v8090_v8, -inf }
 0x964   :  { %2355 = vmax.xlane.f32.xlu0 %v2354_v45  ;;  %2364 = vmax.xlane.f32.xlu1 %v2363_v63 }
 0x965   :  { %v8096_v59 = vpop.f32.mrf.mxu3 }
 0x966   :  { %v2372_v15 = vsel %vm689_vm5, %v8096_v59, -inf }
 0x967   :  { %2373 = vmax.xlane.f32.xlu2 %v2372_v15 }
 0x96a   :  { %v8108_v57 = vpop.f32.mrf.mxu1 }
 0x96b   :  { %v2366_v19 = vsel %vm689_vm5, %v8108_v57, -inf }
 0x96c   :  { %2349 = vmax.xlane.f32.xlu0 %v2348_v58  ;;  %2358 = vmax.xlane.f32.xlu1 %v2357_v16 }
 0x974   :  { %2427 = vadd.xlane.f32.xlu0 %v2426_v17  ;;  %2367 = vmax.xlane.f32.xlu1 %v2366_v19 }
 0x97c   :  { %2370 = vmax.xlane.f32.xlu0 %v2369_v22 }
 0x97f   :  { %6355 = vrot.lane.b32.xlu2 %v6354_v23, %s7179_s28 }
 0x9a9   :  { %v2335_v24 = vpop.xlane.xlu1 %2334 }
 0x9aa   :  { %v2377_v11 = vsub.f32 %v2012_v43, %v2335_v24 }
 0x9ac   :  { %v2395_v13 = vmul.f32 1.442695, %v2377_v11  ;;  %v2341_v60 = vpop.xlane.xlu0 %2340 }
 0x9ad   :  { %v2379_v27 = vsub.f32 %v2060_v44, %v2341_v60 }
 0x9ae   :  { %6528 = vpow2.f32 %v2395_v13 }
 0x9af   :  { %v2399_v29 = vmul.f32 1.442695, %v2379_v27 }
 0x9b1   :  { %6530 = vpow2.f32 %v2399_v29 }
 0x9b4   :  { %v8121_v36 = vpop.eup %6528  ;;  %v2353_v53 = vpop.xlane.xlu2 %2352 }
 0x9b5   :  { %v2383_v21 = vsub.f32 %v8061_v49, %v2353_v53  ;;  %v2429_v37 = vsel %vm689_vm5, %v8121_v36, 0.0 }
 0x9b6   :  { %2430 = vadd.xlane.f32.xlu0 %v2429_v37 }
 0x9b7   :  { %v8126_v32 = vpop.eup %6530  ;;  %v2407_v6 = vmul.f32 1.442695, %v2383_v21 }
 0x9b8   :  { %v2435_v40 = vsel %vm689_vm5, %v8126_v32, 0.0 }
 0x9b9   :  { %6532 = vpow2.f32 %v2407_v6  ;;  %2436 = vadd.xlane.f32.xlu1 %v2435_v40 }
 0x9bc   :  { %v2347_v41 = vpop.xlane.xlu2 %2346 }
 0x9bd   :  { %v2381_v43 = vsub.f32 %v8065_v54, %v2347_v41 }
 0x9bf   :  { %v8131_v31 = vpop.eup %6532  ;;  %v2403_v44 = vmul.f32 1.442695, %v2381_v43 }
 0x9c0   :  { %v2447_v12 = vsel %vm689_vm5, %v8131_v31, 0.0 }
 0x9c1   :  { %6534 = vpow2.f32 %v2403_v44  ;;  %2448 = vadd.xlane.f32.xlu0 %v2447_v12 }
 0x9c4   :  { %v2425_v30 = vpop.xlane.xlu2 %2424 }
 0x9c5   :  { %6536 = vrcp.f32 %v2425_v30 }
 0x9c7   :  { %v8135_v48 = vpop.eup %6534  ;;  %v2344_v49 = vpop.xlane.xlu1 %2343 }
 0x9c8   :  { %v2380_v50 = vsub.f32 %v8075_v51, %v2344_v49  ;;  %v2441_v33 = vsel %vm689_vm5, %v8135_v48, 0.0 }
 0x9c9   :  { %2442 = vadd.xlane.f32.xlu1 %v2441_v33 }
 0x9ca   :  { %v2401_v54 = vmul.f32 1.442695, %v2380_v50 }
 0x9cb   :  { %v6537_v28 = vpop.eup %6536 }
 0x9cc   :  { %v2487_v38 = vmul.f32 %v6537_v28, %v8069_v55  ;;  %6538 = vpow2.f32 %v2401_v54  ;;  %v6369_v28 = vpack.i.bf16 %v8048_v18, %v8012_v9 }
 0x9ce   :  { %6105 = vmatmul.msk.f32.vlgmr.msrb.gmra.mxu0 %vm689_vm5, %v2487_v38 }
 0x9cf   :  { %v2338_v34 = vpop.xlane.xlu1 %2337 }
 0x9d0   :  { %v2378_v61 = vsub.f32 %v8071_v20, %v2338_v34 }
 0x9d2   :  { %v8143_v0 = vpop.eup %6538  ;;  %v2397_v1 = vmul.f32 1.442695, %v2378_v61  ;;  %v2362_v7 = vpop.xlane.xlu2 %2361 }
 0x9d3   :  { %v2438_v51 = vsel %vm689_vm5, %v8143_v0, 0.0 }
 0x9d4   :  { %6540 = vpow2.f32 %v2397_v1  ;;  %2439 = vadd.xlane.f32.xlu2 %v2438_v51 }
 0x9d7   :  { %v2356_v45 = vpop.xlane.xlu0 %2355  ;;  %v2365_v63 = vpop.xlane.xlu1 %2364 }
 0x9d8   :  { %v2384_v14 = vsub.f32 %v8090_v8, %v2356_v45  ;;  %v2387_v55 = vsub.f32 %v8087_v3, %v2365_v63  ;;  %v2386_v3 = vsub.f32 %v8083_v35, %v2362_v7 }
 0x9da   :  { %v8149_v15 = vpop.eup %6540  ;;  %v2409_v58 = vmul.f32 1.442695, %v2384_v14  ;;  %v2415_v16 = vmul.f32 1.442695, %v2387_v55  ;;  %v8151_v20 = vpop.xlane.xlu2 %2373 }
 0x9db   :  { %v2432_v17 = vsel %vm689_vm5, %v8149_v15, 0.0 }
 0x9dc   :  { %6542 = vpow2.f32 %v2409_v58  ;;  %2433 = vadd.xlane.f32.xlu0 %v2432_v17 }
 0x9dd   :  { %6544 = vpow2.f32 %v2415_v16 }
 0x9df   :  { %v2350_v19 = vpop.xlane.xlu0 %2349  ;;  %v2359_v22 = vpop.xlane.xlu1 %2358 }
 0x9e0   :  { %v2382_v23 = vsub.f32 %v8079_v62, %v2350_v19  ;;  %v2385_v8 = vsub.f32 %v8100_v4, %v2359_v22  ;;  %v2413_v4 = vmul.f32 1.442695, %v2386_v3 }
 0x9e2   :  { %v8157_v24 = vpop.eup %6542  ;;  %v2405_v11 = vmul.f32 1.442695, %v2382_v23  ;;  %v2411_v13 = vmul.f32 1.442695, %v2385_v8  ;;  %v6356_v60 = vpop.permute.xlu2 %6355 }
 0x9e3   :  { %v8160_v27 = vpop.eup %6544  ;;  %v6358_v29 = vunpack.i.h.bf16 %v6356_v60  ;;  %v2450_v53 = vsel %vm689_vm5, %v8157_v24, 0.0  ;;  %v6357_v9 = vunpack.i.l.bf16 %v6356_v60 }
 0x9e4   :  { %6546 = vpow2.f32 %v2405_v11  ;;  %2451 = vadd.xlane.f32.xlu2 %v2450_v53  ;;  %v2459_v62 = vsel %vm689_vm5, %v8160_v27, 0.0 }
 0x9e5   :  { %6548 = vpow2.f32 %v2411_v13  ;;  %2460 = vadd.xlane.f32.xlu1 %v2459_v62  ;;  %2706 = vmatpush.msra.mxu3 %v6358_v29 }
 0x9e7   :  { %v2428_v21 = vpop.xlane.xlu0 %2427  ;;  %v2368_v38 = vpop.xlane.xlu1 %2367 }
 0x9e8   :  { %6550 = vrcp.f32 %v2428_v21  ;;  %v2388_v34 = vsub.f32 %v8108_v57, %v2368_v38  ;;  %v2390_v57 = vsub.f32 %v8096_v59, %v8151_v20 }
 0x9e9   :  { %6552 = vpow2.f32 %v2413_v4 }
 0x9ea   :  { %v8166_v35 = vpop.eup %6546  ;;  %v2421_v51 = vmul.f32 1.442695, %v2390_v57 }
 0x9eb   :  { %v8168_v37 = vpop.eup %6548  ;;  %v2444_v6 = vsel %vm689_vm5, %v8166_v35, 0.0 }
 0x9ec   :  { %v2453_v40 = vsel %vm689_vm5, %v8168_v37, 0.0  ;;  %2445 = vadd.xlane.f32.xlu0 %v2444_v6 }
 0x9ed   :  { %2454 = vadd.xlane.f32.xlu1 %v2453_v40 }
 0x9ee   :  { %v6551_v41 = vpop.eup %6550 }
 0x9ef   :  { %v2488_v43 = vmul.f32 %v6551_v41, %v8106_v46  ;;  %v2371_v44 = vpop.xlane.xlu0 %2370  ;;  %v8175_v12 = vpop.eup %6552  ;;  %v6359_v46 = vpack.i.bf16 %v8033_v25, %v7991_v2 }
 0x9f0   :  { %v2389_v30 = vsub.f32 %v8114_v52, %v2371_v44  ;;  %v2456_v50 = vsel %vm689_vm5, %v8175_v12, 0.0  ;;  %v6364_v52 = vpack.i.bf16 %v8014_v10, %v7984_v39 }
 0x9f1   :  { %6106 = vmatmul.msk.f32.vlgmr.msrb.gmra.mxu1 %vm689_vm5, %v2488_v43 }
 0x9f2   :  { %v2419_v49 = vmul.f32 1.442695, %v2389_v30 }
 0x9f4   :  { %6554 = vpow2.f32 %v2419_v49  ;;  %2457 = vadd.xlane.f32.xlu0 %v2456_v50 }
 0x9fa   :  { %v8181_v33 = vpop.eup %6554 }
 0x9fb   :  { %v2465_v54 = vsel %vm689_vm5, %v8181_v33, 0.0 }
 0x9fc   :  { %2893 = vrot.lane.b32.xlu2 %v8043_v26, %s7179_s28  ;;  %2466 = vadd.xlane.f32.xlu1 %v2465_v54  ;;  %v2417_v26 = vmul.f32 1.442695, %v2388_v34 }
 0x9fe   :  { %6556 = vpow2.f32 %v2417_v26 }
 0xa04   :  { %v8197_v25 = vpop.eup %6556 }
 0xa05   :  { %v2462_v10 = vsel %vm689_vm5, %v8197_v25, 0.0 }
 0xa08   :  { %6360 = vrot.lane.b32.xlu0 %v6359_v46, %s7179_s28 }
 0xa15   :  { %6365 = vrot.lane.b32.xlu1 %v6364_v52, %s7179_s28 }
 0xa1d   :  { %6370 = vrot.lane.b32.xlu1 %v6369_v28, %s7179_s28 }
 0xa29   :  { %v2431_v61 = vpop.xlane.xlu0 %2430 }
 0xa2a   :  { %6558 = vrcp.f32 %v2431_v61 }
 0xa2c   :  { %v2437_v2 = vpop.xlane.xlu1 %2436 }
 0xa2d   :  { %6560 = vrcp.f32 %v2437_v2 }
 0xa2e   :  { %6562 = vpow2.f32 %v2421_v51 }
 0xa30   :  { %v6559_v1 = vpop.eup %6558 }
 0xa31   :  { %v2489_v39 = vmul.f32 %v6559_v1, %v8121_v36 }
 0xa32   :  { %2463 = vadd.xlane.f32.xlu0 %v2462_v10 }
 0xa33   :  { %v6561_v18 = vpop.eup %6560  ;;  %6107 = vmatmul.msk.f32.vlgmr.msrb.gmra.mxu2 %vm689_vm5, %v2489_v39 }
 0xa34   :  { %v2491_v7 = vmul.f32 %v6561_v18, %v8126_v32  ;;  %2784 = vmatpush.msrb.mxu2 %v6357_v9  ;;  %v8207_v36 = vpop.eup %6562  ;;  %v2449_v59 = vpop.xlane.xlu0 %2448 }
 0xa35   :  { %v2468_v55 = vsel %vm689_vm5, %v8207_v36, 0.0 }
 0xa36   :  { %6109 = vmatmul.msk.f32.vlgmr.msra.gmra.mxu0 %vm689_vm5, %v2491_v7 }
 0xa3c   :  { %v2443_v45 = vpop.xlane.xlu1 %2442 }
 0xa3d   :  { %6564 = vrcp.f32 %v2443_v45 }
 0xa43   :  { %v6565_v63 = vpop.eup %6564 }
 0xa44   :  { %v2493_v14 = vmul.f32 %v6565_v63, %v8135_v48 }
 0xa46   :  { %6111 = vmatmul.msk.f32.vlgmr.msra.gmra.mxu2 %vm689_vm5, %v2493_v14 }
 0xa47   :  { %2469 = vadd.xlane.f32.xlu1 %v2468_v55  ;;  %v521_v55 = vld [vmem:[#allocation13 + $0x38] sm:$0xff] }
 0xa4f   :  { %v2434_v32 = vpop.xlane.xlu0 %2433 }
 0xa50   :  { %6566 = vrcp.f32 %v2434_v32  ;;  %v519_v32 = vld [vmem:[#allocation13 + $0x28] sm:$0xff] }
 0xa56   :  { %v6567_v58 = vpop.eup %6566 }
 0xa57   :  { %v2490_v16 = vmul.f32 %v6567_v58, %v8149_v15  ;;  %v2440_v15 = vpop.xlane.xlu2 %2439  ;;  %v518_v58 = vld [vmem:[#allocation13 + $0x20] sm:$0xff] }
 0xa58   :  { %v2461_v20 = vpop.xlane.xlu1 %2460 }
 0xa59   :  { %6108 = vmatmul.msk.f32.vlgmr.msrb.gmra.mxu3 %vm689_vm5, %v2490_v16  ;;  %v517_v16 = vld [vmem:[#allocation13 + $0x18] sm:$0xff] }
 0xa5f   :  { %v2446_v17 = vpop.xlane.xlu0 %2445  ;;  %v2452_v21 = vpop.xlane.xlu2 %2451 }
 0xa60   :  { %v2455_v19 = vpop.xlane.xlu1 %2454  ;;  %6568 = vrcp.f32 %v2446_v17  ;;  %2841 = vrot.lane.b32.xlu1 %v8054_v5, %s7179_s28  ;;  %v516_v17 = vld [vmem:[#allocation13 + $0x10] sm:$0xff] }
 0xa61   :  { %6570 = vrcp.f32 %v2455_v19  ;;  %v515_v19 = vld [vmem:[#allocation13 + $0x8] sm:$0xff] }
 0xa62   :  { %6572 = vrcp.f32 %v2449_v59  ;;  %v520_v59 = vld [vmem:[#allocation13 + $0x30] sm:$0xff] }
 0xa63   :  { %6574 = vrcp.f32 %v2440_v15 }
 0xa66   :  { %v6569_v48 = vpop.eup %6568 }
 0xa67   :  { %v6571_v22 = vpop.eup %6570  ;;  %v2494_v23 = vmul.f32 %v6569_v48, %v8166_v35  ;;  %v2458_v3 = vpop.xlane.xlu0 %2457  ;;  %v514_v48 = vld [vmem:[#allocation13] sm:$0xff] }
 0xa68   :  { %v2497_v8 = vmul.f32 %v6571_v22, %v8168_v37  ;;  %v6573_v11 = vpop.eup %6572  ;;  %6576 = vrcp.f32 %v2458_v3  ;;  %v2894_v43 = vpop.permute.xlu2 %2893 }
 0xa69   :  { %6112 = vmatmul.msk.f32.vlgmr.msra.gmra.mxu3 %vm689_vm5, %v2494_v23  ;;  %v6575_v13 = vpop.eup %6574  ;;  %v2495_v53 = vmul.f32 %v6573_v11, %v8131_v31 }
 0xa6a   :  { %6115 = vmatmul.msk.f32.vlgmr.msrb.gmra.mxu2 %vm689_vm5, %v2497_v8  ;;  %v2492_v62 = vmul.f32 %v6575_v13, %v8143_v0 }
 0xa6e   :  { %v6577_v35 = vpop.eup %6576  ;;  %v2552_v18 = vpop.f32.mrf.mxu1 }
 0xa6f   :  { %v2467_v4 = vpop.xlane.xlu1 %2466  ;;  %v2498_v31 = vmul.f32 %v6577_v35, %v8175_v12  ;;  %v8233_v12 = vpop.f32.mrf.mxu0 }
 0xa70   :  { %6578 = vrcp.f32 %v2467_v4 }
 0xa71   :  { %6580 = vrcp.f32 %v2452_v21 }
 0xa72   :  { %6582 = vrcp.f32 %v2461_v20 }
 0xa76   :  { %v6579_v37 = vpop.eup %6578 }
 0xa77   :  { %v2501_v0 = vmul.f32 %v6579_v37, %v8181_v33  ;;  %v6581_v44 = vpop.eup %6580 }
 0xa78   :  { %v6583_v30 = vpop.eup %6582  ;;  %v2496_v46 = vmul.f32 %v6581_v44, %v8157_v24 }
 0xa79   :  { %v2499_v52 = vmul.f32 %v6583_v30, %v8160_v27 }
 0xa7a   :  { %v6361_v60 = vpop.permute.xlu0 %6360 }
 0xa7b   :  { %v6363_v29 = vunpack.i.h.bf16 %v6361_v60  ;;  %v6362_v5 = vunpack.i.l.bf16 %v6361_v60 }
 0xa7d   :  { %2654 = vmatpush.msra.mxu1 %v6363_v29  ;;  %2732 = vmatpush.msrb.mxu0 %v6362_v5 }
 0xa7e   :  { %6110 = vmatmul.msk.f32.vlgmr.msra.gmra.mxu1 %vm689_vm5, %v2492_v62  ;;  %6113 = vmatmul.msk.f32.vlgmr.msrb.gmra.mxu0 %vm689_vm5, %v2495_v53 }
 0xa87   :  { %v6366_v6 = vpop.permute.xlu1 %6365 }
 0xa88   :  { %v6368_v40 = vunpack.i.h.bf16 %v6366_v6  ;;  %v6367_v41 = vunpack.i.l.bf16 %v6366_v6 }
 0xa8a   :  { %2810 = vmatpush.msrb.mxu3 %v6368_v40  ;;  %2888 = vmatpush.msra.mxu2 %v6367_v41 }
 0xa8b   :  { %6116 = vmatmul.msk.f32.vlgmr.msrb.gmra.mxu3 %vm689_vm5, %v2498_v31  ;;  %6119 = vmatmul.msk.f32.vlgmr.msra.gmra.mxu2 %vm689_vm5, %v2501_v0 }
 0xa8c   :  { %2914 = vmatpush.msra.mxu3 %v2894_v43 }
 0xa8f   :  { %v6371_v49 = vpop.permute.xlu1 %6370 }
 0xa90   :  { %v6373_v50 = vunpack.i.h.bf16 %v6371_v49  ;;  %v6372_v54 = vunpack.i.l.bf16 %v6371_v49 }
 0xa92   :  { %2758 = vmatpush.msrb.mxu1 %v6373_v50  ;;  %2836 = vmatpush.msra.mxu0 %v6372_v54 }
 0xa93   :  { %6114 = vmatmul.msk.f32.vlgmr.msrb.gmra.mxu1 %vm689_vm5, %v2496_v46  ;;  %6117 = vmatmul.msk.f32.vlgmr.msra.gmra.mxu0 %vm689_vm5, %v2499_v52  ;;  %v6434_v46 = vld [vmem:[%s9135_s19] ss:$0 sm:$0xff]  ;;  %s9144_s19 = sld [smem:[#allocation51_spill]] }
 0xa94   :  { %3006 = vmatpush.msrb.mxu0 %v521_v55 }
 0xa96   :  { %3007 = vmatpush.msrb.mxu0 %v520_v59 }
 0xa98   :  { %3008 = vmatpush.msrb.mxu0 %v519_v32 }
 0xa9a   :  { %3009 = vmatpush.msrb.mxu0 %v518_v58 }
 0xa9c   :  { %3010 = vmatpush.msrb.mxu0 %v517_v16 }
 0xa9e   :  { %3011 = vmatpush.msrb.mxu0 %v516_v17 }
 0xaa0   :  { %3012 = vmatpush.msrb.mxu0 %v515_v19 }
 0xaa2   :  { %3013 = vmatpush.msrb.mxu0 %v514_v48 }
 0xaa5   :  { %v2464_v27 = vpop.xlane.xlu0 %2463 }
 0xab3   :  { %v2630_v33 = vpop.f32.mrf.mxu0 }
 0xab4   :  { %2929 = vrot.lane.b32.xlu1 %v2630_v33, %s7164_s23 }
 0xab6   :  { %v2578_v38 = vpop.f32.mrf.mxu2 }
 0xaba   :  { %v2470_v28 = vpop.xlane.xlu1 %2469 }
 0xabb   :  { %6584 = vrcp.f32 %v2470_v28 }
 0xabc   :  { %2921 = vrot.lane.b32.xlu1 %v2578_v38, %s7156_s22  ;;  %6586 = vrcp.f32 %v2464_v27 }
 0xac1   :  { %v6585_v34 = vpop.eup %6584 }
 0xac2   :  { %v2502_v24 = vmul.f32 %v6585_v34, %v8207_v36  ;;  %v6587_v26 = vpop.eup %6586 }
 0xac3   :  { %v2500_v61 = vmul.f32 %v6587_v26, %v8197_v25 }
 0xac4   :  { %6120 = vmatmul.msk.f32.vlgmr.msra.gmra.mxu3 %vm689_vm5, %v2502_v24 }
 0xac9   :  { %v2682_v1 = vpop.f32.mrf.mxu2 }
 0xad2   :  { %v2842_v2 = vpop.permute.xlu1 %2841 }
 0xad3   :  { %2862 = vmatpush.msra.mxu1 %v2842_v2 }
 0xad4   :  { %6118 = vmatmul.msk.f32.vlgmr.msra.gmra.mxu1 %vm689_vm5, %v2500_v61 }
 0xadc   :  { %v2604_v39 = vpop.f32.mrf.mxu3 }
 0xaec   :  { %v2708_v9 = vpop.f32.mrf.mxu3 }
 0xaed   :  { %v2786_v10 = vpop.f32.mrf.mxu2 }
 0xaee   :  { %2953 = vrot.lane.b32.xlu1 %v2786_v10, %s7181_s14 }
 0xaf6   :  { %2939 = vrot.lane.b32.xlu1 %v2708_v9, %s7180_s25 }
 0xafb   :  { %v2734_v57 = vpop.f32.mrf.mxu0  ;;  %v2656_v7 = vpop.f32.mrf.mxu1 }
 0xafc   :  { %2945 = vrot.lane.b32.xlu0 %v2734_v57, %s7182_s0  ;;  %v530_v57 = vld [vmem:[#allocation14 + $0x38] sm:$0xff] }
 0xafd   :  { %3094 = vmatpush.msrb.mxu1 %v530_v57 }
 0xb04   :  { %2931 = vrot.lane.b32.xlu0 %v2656_v7, %s7164_s23  ;;  %v529_v7 = vld [vmem:[#allocation14 + $0x30] sm:$0xff] }
 0xb05   :  { %3095 = vmatpush.msrb.mxu1 %v529_v7 }
 0xb0e   :  { %v2812_v25 = vpop.f32.mrf.mxu3  ;;  %v2890_v51 = vpop.f32.mrf.mxu2 }
 0xb0f   :  { %2969 = vrot.lane.b32.xlu1 %v2890_v51, %s7184_s12  ;;  %2955 = vrot.lane.b32.xlu0 %v2812_v25, %s7181_s14  ;;  %v528_v25 = vld [vmem:[#allocation14 + $0x28] sm:$0xff]  ;;  %v527_v51 = vld [vmem:[#allocation14 + $0x20] sm:$0xff] }
 0xb10   :  { %v2838_v45 = vpop.f32.mrf.mxu0  ;;  %v2760_v36 = vpop.f32.mrf.mxu1  ;;  %3096 = vmatpush.msrb.mxu1 %v528_v25 }
 0xb11   :  { %2961 = vrot.lane.b32.xlu2 %v2838_v45, %s7183_s1  ;;  %v526_v45 = vld [vmem:[#allocation14 + $0x18] sm:$0xff] }
 0xb12   :  { %3097 = vmatpush.msrb.mxu1 %v527_v51 }
 0xb14   :  { %3098 = vmatpush.msrb.mxu1 %v526_v45 }
 0xb19   :  { %2947 = vrot.lane.b32.xlu2 %v2760_v36, %s7182_s0  ;;  %v525_v36 = vld [vmem:[#allocation14 + $0x10] sm:$0xff] }
 0xb1a   :  { %3099 = vmatpush.msrb.mxu1 %v525_v36 }
 0xb21   :  { %2937 = vrot.lane.b32.xlu2 %v2682_v1, %s7180_s25 }
 0xb26   :  { %v2930_v20 = vpop.permute.xlu1 %2929 }
 0xb29   :  { %2923 = vrot.lane.b32.xlu2 %v2604_v39, %s7156_s22 }
 0xb2e   :  { %v2922_v22 = vpop.permute.xlu1 %2921 }
 0xb2f   :  { %v2975_v3 = vsel %vm689_vm5, %v8233_v12, %v2922_v22  ;;  %v6435_v22 = vld [vmem:[%s9136_s8] ss:$0 sm:$0xff]  ;;  %s9146_s8 = sld [smem:[#allocation54_spill]] }
 0xb30   :  { %v2977_v13 = vsel %vm1706_vm6, %v2975_v3, %v2930_v20 }
 0xb47   :  { %v2916_v63 = vpop.f32.mrf.mxu3 }
 0xb48   :  { %2971 = vrot.lane.b32.xlu2 %v2916_v63, %s7184_s12  ;;  %v524_v63 = vld [vmem:[#allocation14 + $0x8] sm:$0xff] }
 0xb49   :  { %3100 = vmatpush.msrb.mxu1 %v524_v63 }
 0xb51   :  { %v2864_v14 = vpop.f32.mrf.mxu1 }
 0xb52   :  { %2963 = vrot.lane.b32.xlu1 %v2864_v14, %s7183_s1  ;;  %v523_v14 = vld [vmem:[#allocation14] sm:$0xff] }
 0xb53   :  { %3101 = vmatpush.msrb.mxu1 %v523_v14 }
 0xb60   :  { %v2954_v8 = vpop.permute.xlu1 %2953 }
 0xb68   :  { %v2940_v11 = vpop.permute.xlu1 %2939 }
 0xb6b   :  { %v2962_v23 = vpop.permute.xlu2 %2961 }
 0xb6e   :  { %v2946_v29 = vpop.permute.xlu0 %2945 }
 0xb73   :  { %v2948_v15 = vpop.permute.xlu2 %2947 }
 0xb76   :  { %v2932_v40 = vpop.permute.xlu0 %2931 }
 0xb7b   :  { %v2938_v60 = vpop.permute.xlu2 %2937 }
 0xb7c   :  { %v2979_v5 = vsel %vm1709_vm7, %v2977_v13, %v2938_v60  ;;  %v547_v13 = vld [vmem:[%s9138_s15 + $0x78] sm:$0xff]  ;;  %v546_v60 = vld [vmem:[%s9138_s15 + $0x70] sm:$0xff] }
 0xb7d   :  { %v2981_v53 = vsel %vm1712_vm8, %v2979_v5, %v2946_v29  ;;  %3114 = vmatpush.msrb.mxu2 %v547_v13  ;;  %v545_v29 = vld [vmem:[%s9138_s15 + $0x68] sm:$0xff]  ;;  %v3199_v13 = vld [vmem:[%s9141_s7 + $0x30] sm:$0xff] }
 0xb7e   :  { %v2983_v62 = vsel %vm1715_vm9, %v2981_v53, %v2954_v8 }
 0xb7f   :  { %v2985_v21 = vsel %vm1718_vm10, %v2983_v62, %v2962_v23  ;;  %3115 = vmatpush.msrb.mxu2 %v546_v60  ;;  %v544_v62 = vld [vmem:[%s9138_s15 + $0x60] sm:$0xff]  ;;  %v3200_v60 = vld [vmem:[%s9141_s7 + $0x38] sm:$0xff] }
 0xb81   :  { %v2970_v4 = vpop.permute.xlu1 %2969  ;;  %v2956_v43 = vpop.permute.xlu0 %2955  ;;  %3116 = vmatpush.msrb.mxu2 %v545_v29  ;;  %v3197_v29 = vld [vmem:[%s9141_s7 + $0x20] sm:$0xff] }
 0xb82   :  { %v2987_v35 = vsel %vm1721_vm11, %v2985_v21, %v2970_v4  ;;  %v543_v21 = vld [vmem:[%s9138_s15 + $0x58] sm:$0xff] }
 0xb83   :  { %6121 = vmatmul.msk.f32.vlgmr.msrb.gmra.mxu0 %vm560_vm4, %v2987_v35  ;;  %v2924_v37 = vpop.permute.xlu2 %2923  ;;  %3117 = vmatpush.msrb.mxu2 %v544_v62  ;;  %v542_v35 = vld [vmem:[%s9138_s15 + $0x50] sm:$0xff]  ;;  %v3196_v62 = vld [vmem:[%s9141_s7 + $0x18] sm:$0xff] }
 0xb84   :  { %v2976_v6 = vsel %vm689_vm5, %v2552_v18, %v2924_v37  ;;  %v541_v37 = vld [vmem:[%s9138_s15 + $0x48] sm:$0xff] }
 0xb85   :  { %v2978_v41 = vsel %vm1706_vm6, %v2976_v6, %v2932_v40  ;;  %3118 = vmatpush.msrb.mxu2 %v543_v21  ;;  %v540_v6 = vld [vmem:[%s9138_s15 + $0x40] sm:$0xff]  ;;  %v3194_v21 = vld [vmem:[%s9141_s7 + $0x8] sm:$0xff] }
 0xb86   :  { %v2980_v31 = vsel %vm1709_vm7, %v2978_v41, %v2940_v11  ;;  %v539_v41 = vld [vmem:[%s9138_s15 + $0x38] sm:$0xff] }
 0xb87   :  { %v2982_v0 = vsel %vm1712_vm8, %v2980_v31, %v2948_v15  ;;  %v6436_v15 = vld [vmem:[%s9137_s5] ss:$0 sm:$0xff]  ;;  %3119 = vmatpush.msrb.mxu2 %v542_v35  ;;  %s9148_s5 = sld [smem:[#allocation60_spill]] }
 0xb88   :  { %v2984_v30 = vsel %vm1715_vm9, %v2982_v0, %v2956_v43  ;;  %v538_v0 = vld [vmem:[%s9138_s15 + $0x30] sm:$0xff] }
 0xb89   :  { %3120 = vmatpush.msrb.mxu2 %v541_v37 }
 0xb8b   :  { %3121 = vmatpush.msrb.mxu2 %v540_v6 }
 0xb8d   :  { %3122 = vmatpush.msrb.mxu2 %v539_v41 }
 0xb8f   :  { %3123 = vmatpush.msrb.mxu2 %v538_v0 }
 0xba2   :  { %v2972_v49 = vpop.permute.xlu2 %2971 }
 0xbc4   :  { %v2964_v44 = vpop.permute.xlu1 %2963 }
 0xbc5   :  { %v2986_v50 = vsel %vm1718_vm10, %v2984_v30, %v2964_v44  ;;  %v537_v44 = vld [vmem:[%s9138_s15 + $0x28] sm:$0xff] }
 0xbc6   :  { %v2988_v54 = vsel %vm1721_vm11, %v2986_v50, %v2972_v49  ;;  %v536_v49 = vld [vmem:[%s9138_s15 + $0x20] sm:$0xff]  ;;  %3124 = vmatpush.msrb.mxu2 %v537_v44 }
 0xbc7   :  { %6122 = vmatmul.msk.f32.gmra.mxu0 %vm560_vm4, %v2988_v54  ;;  %v535_v54 = vld [vmem:[%s9138_s15 + $0x18] sm:$0xff] }
 0xbc8   :  { %3125 = vmatpush.msrb.mxu2 %v536_v49 }
 0xbca   :  { %3126 = vmatpush.msrb.mxu2 %v535_v54  ;;  %v6440_v54 = vld [vmem:[%s9143_s10] ss:$0 sm:$0xff] }
 0xc00   :  { %v3015_v52 = vpop.f32.mrf.mxu0 }
 0xc01   :  { %v3016_v12 = vadd.f32 %v6434_v46, %v3015_v52 }
 0xc03   :  { %v3021_v33 = vadd.f32 %v3016_v12, %v7953_v47 }
 0xc05   :  { %v3023_v28 = vsel %vm560_vm4, %v3021_v33, 0.0 }
 0xc06   :  { %3024 = vadd.xlane.f32.xlu0 %v3023_v28 }
 0xc44   :  { %v3018_v38 = vpop.f32.mrf.mxu0 }
 0xc45   :  { %v3019_v34 = vadd.f32 %v6434_v46, %v3018_v38  ;;  %v534_v38 = vld [vmem:[%s9138_s15 + $0x10] sm:$0xff] }
 0xc46   :  { %3127 = vmatpush.msrb.mxu2 %v534_v38 }
 0xc47   :  { %v3022_v24 = vadd.f32 %v3019_v34, %v7960_v56  ;;  %v533_v34 = vld [vmem:[%s9138_s15 + $0x8] sm:$0xff] }
 0xc48   :  { %3128 = vmatpush.msrb.mxu2 %v533_v34 }
 0xc49   :  { %v3026_v27 = vsel %vm560_vm4, %v3022_v24, 0.0 }
 0xc4a   :  { %3027 = vadd.xlane.f32.xlu1 %v3026_v27  ;;  %v6437_v27 = vld [vmem:[%s9139_s21] ss:$0 sm:$0xff] }
 0xc79   :  { %v3025_v26 = vpop.xlane.xlu0 %3024 }
 0xc7a   :  { %v3029_v61 = vmul.f32 %v3025_v26, %v7914_v42 }
 0xc7c   :  { %v3031_v2 = vsub.f32 %v3021_v33, %v3029_v61 }
 0xc7e   :  { %v3033_v1 = vmul.f32 %v3031_v2, %v3031_v2 }
 0xc80   :  { %v3035_v39 = vsel %vm560_vm4, %v3033_v1, 0.0 }
 0xc81   :  { %3036 = vadd.xlane.f32.xlu2 %v3035_v39 }
 0xcbd   :  { %v3028_v10 = vpop.xlane.xlu1 %3027 }
 0xcbe   :  { %v3030_v47 = vmul.f32 %v3028_v10, %v7914_v42 }
 0xcc0   :  { %v8278_v9 = vsub.f32 %v3022_v24, %v3030_v47  ;;  %v532_v24 = vld [vmem:[%s9138_s15] sm:$0xff]  ;;  %s9149_s15 = sld [smem:[#allocation53_spill]] }
 0xcc1   :  { %3129 = vmatpush.msrb.mxu2 %v532_v24  ;;  %v6438_v47 = vld [vmem:[%s9140_s3] ss:$0 sm:$0xff] }
 0xcc2   :  { %v3034_v18 = vmul.f32 %v8278_v9, %v8278_v9 }
 0xcc4   :  { %v3038_v56 = vsel %vm560_vm4, %v3034_v18, 0.0 }
 0xcc5   :  { %3039 = vadd.xlane.f32.xlu0 %v3038_v56 }
 0xcf4   :  { %v3037_v55 = vpop.xlane.xlu2 %3036 }
 0xcf5   :  { %v3041_v59 = vmul.f32 %v3037_v55, %v7914_v42 }
 0xcf7   :  { %v3043_v32 = vadd.f32 1e-05, %v3041_v59 }
 0xcf9   :  { %6588 = vrsqrt.f32 %v3043_v32  ;;  %vm3051_vm12 = vweird.f32 %v3043_v32 }
 0xcff   :  { %v6589_v58 = vpop.eup %6588 }
 0xd00   :  { %v3046_v16 = vmul.f32 %v6589_v58, %v3043_v32  ;;  %vm3052_vm3 = vweird.f32 %v6589_v58 }
 0xd01   :  { %vm3053_vm13 = vmor %vm3051_vm12, %vm3052_vm3 }
 0xd02   :  { %v3047_v20 = vmul.f32 %v6589_v58, %v3046_v16 }
 0xd04   :  { %v3048_v17 = vmul.f32 0.5, %v3047_v20 }
 0xd06   :  { %v3049_v19 = vsub.f32 1.5, %v3048_v17 }
 0xd08   :  { %v3050_v48 = vmul.f32 %v6589_v58, %v3049_v19  ;;  %v3207_v19 = vld [vmem:[%s9141_s7 + $0x70] sm:$0xff] }
 0xd09   :  { %3297 = vmatpush.msrb.mxu3 %v3207_v19 }
 0xd0a   :  { %v3054_v23 = vsel %vm3053_vm13, %v6589_v58, %v3050_v48  ;;  %v3208_v48 = vld [vmem:[%s9141_s7 + $0x78] sm:$0xff] }
 0xd0b   :  { %v3065_v8 = vmul.f32 %v3054_v23, %v3031_v2  ;;  %3320 = vmatpush.msra.mxu0 %v3208_v48  ;;  %v3206_v23 = vld [vmem:[%s9141_s7 + $0x68] sm:$0xff] }
 0xd0d   :  { %v3070_v3 = vmul.f32 %v6435_v22, %v3065_v8  ;;  %3321 = vmatpush.msra.mxu0 %v3206_v23  ;;  %v3203_v8 = vld [vmem:[%s9141_s7 + $0x50] sm:$0xff] }
 0xd0f   :  { %v8286_v11 = vadd.f32 %v6436_v15, %v3070_v3  ;;  %v3201_v3 = vld [vmem:[%s9141_s7 + $0x40] sm:$0xff] }
 0xd11   :  { %6123 = vmatmul.msk.f32.vlgmr.msrb.gmra.mxu1 %vm560_vm4, %v8286_v11 }
 0xd38   :  { %v3040_v5 = vpop.xlane.xlu0 %3039 }
 0xd39   :  { %v3042_v53 = vmul.f32 %v3040_v5, %v7914_v42  ;;  %v3198_v5 = vld [vmem:[%s9141_s7 + $0x28] sm:$0xff] }
 0xd3b   :  { %v3044_v4 = vadd.f32 1e-05, %v3042_v53  ;;  %v3195_v53 = vld [vmem:[%s9141_s7 + $0x10] sm:$0xff] }
 0xd3d   :  { %6590 = vrsqrt.f32 %v3044_v4  ;;  %vm3061_vm15 = vweird.f32 %v3044_v4 }
 0xd43   :  { %v6591_v40 = vpop.eup %6590 }
 0xd44   :  { %v3056_v31 = vmul.f32 %v6591_v40, %v3044_v4  ;;  %vm3062_vm14 = vweird.f32 %v6591_v40  ;;  %v3193_v4 = vld [vmem:[%s9141_s7] sm:$0xff] }
 0xd45   :  { %vm3063_vm0 = vmor %vm3061_vm15, %vm3062_vm14 }
 0xd46   :  { %v3057_v43 = vmul.f32 %v6591_v40, %v3056_v31 }
 0xd48   :  { %v3058_v30 = vmul.f32 0.5, %v3057_v43 }
 0xd4a   :  { %v3059_v50 = vsub.f32 1.5, %v3058_v30  ;;  %v6439_v30 = vld [vmem:[%s9142_s6] ss:$0 sm:$0xff] }
 0xd4c   :  { %v3060_v46 = vmul.f32 %v6591_v40, %v3059_v50 }
 0xd4e   :  { %v3064_v52 = vsel %vm3063_vm0, %v6591_v40, %v3060_v46 }
 0xd4f   :  { %v3066_v12 = vmul.f32 %v3064_v52, %v8278_v9 }
 0xd51   :  { %v3071_v33 = vmul.f32 %v6435_v22, %v3066_v12  ;;  %v3205_v22 = vld [vmem:[%s9141_s7 + $0x60] sm:$0xff] }
 0xd52   :  { %3298 = vmatpush.msrb.mxu3 %v3205_v22 }
 0xd53   :  { %v3076_v28 = vadd.f32 %v6436_v15, %v3071_v33  ;;  %v3204_v15 = vld [vmem:[%s9141_s7 + $0x58] sm:$0xff] }
 0xd54   :  { %3299 = vmatpush.msrb.mxu3 %v3203_v8  ;;  %3322 = vmatpush.msra.mxu0 %v3204_v15 }
 0xd55   :  { %6124 = vmatmul.msk.f32.gmra.mxu1 %vm560_vm4, %v3076_v28 }
 0xd56   :  { %3300 = vmatpush.msrb.mxu3 %v3201_v3 }
 0xd58   :  { %3301 = vmatpush.msrb.mxu3 %v3199_v13 }
 0xd5a   :  { %3302 = vmatpush.msrb.mxu3 %v3197_v29 }
 0xd5c   :  { %3303 = vmatpush.msrb.mxu3 %v3195_v53 }
 0xd5e   :  { %3304 = vmatpush.msrb.mxu3 %v3193_v4 }
 0xd8e   :  { %v3103_v26 = vpop.f32.mrf.mxu1 }
 0xd8f   :  { %v3104_v61 = vadd.f32 %v6437_v27, %v3103_v26 }
 0xd91   :  { %v3109_v2 = vmax.f32 %v3104_v61, 0.0 }
 0xd93   :  { %3130 = vmatmul.f32.vlgmr.msrb.gmra.mxu2 %v3109_v2 }
 0xdd2   :  { %v3106_v1 = vpop.f32.mrf.mxu1 }
 0xdd3   :  { %v3107_v39 = vadd.f32 %v6437_v27, %v3106_v1 }
 0xdd5   :  { %v3110_v10 = vmax.f32 %v3107_v39, 0.0 }
 0xdd7   :  { %3133 = vmatmul.f32.gmra.mxu2 %v3110_v10 }
 0xe16   :  { %v3131_v9 = vpop.f32.mrf.mxu2 }
 0xe17   :  { %v3132_v18 = vadd.f32 %v6438_v47, %v3131_v9 }
 0xe19   :  { %v3137_v56 = vadd.f32 %v3132_v18, %v8286_v11  ;;  %v3202_v11 = vld [vmem:[%s9141_s7 + $0x48] sm:$0xff] }
 0xe1a   :  { %3323 = vmatpush.msra.mxu0 %v3202_v11 }
 0xe1b   :  { %v3139_v57 = vsel %vm560_vm4, %v3137_v56, 0.0 }
 0xe1c   :  { %3140 = vadd.xlane.f32.xlu2 %v3139_v57  ;;  %3324 = vmatpush.msra.mxu0 %v3200_v60 }
 0xe1e   :  { %3325 = vmatpush.msra.mxu0 %v3198_v5 }
 0xe20   :  { %3326 = vmatpush.msra.mxu0 %v3196_v62 }
 0xe22   :  { %3327 = vmatpush.msra.mxu0 %v3194_v21 }
 0xe5a   :  { %v3134_v7 = vpop.f32.mrf.mxu2 }
 0xe5b   :  { %v3135_v25 = vadd.f32 %v6438_v47, %v3134_v7  ;;  %v3209_v47 = vld [vmem:[%s9144_s19] sm:$0x3] }
 0xe5c   :  { %v3279_v9 = vperm.slane %v3209_v47, 0  ;;  %v3280_v23 = vperm.slane %v3209_v47, 1 }
 0xe5d   :  { %v3138_v51 = vadd.f32 %v3135_v25, %v3076_v28 }
 0xe5f   :  { %v3142_v45 = vsel %vm560_vm4, %v3138_v51, 0.0 }
 0xe60   :  { %3143 = vadd.xlane.f32.xlu1 %v3142_v45 }
 0xe8f   :  { %v3141_v36 = vpop.xlane.xlu2 %3140 }
 0xe90   :  { %v3145_v63 = vmul.f32 %v3141_v36, %v7914_v42 }
 0xe92   :  { %v3147_v14 = vsub.f32 %v3137_v56, %v3145_v63 }
 0xe94   :  { %v3149_v55 = vmul.f32 %v3147_v14, %v3147_v14 }
 0xe96   :  { %v3151_v59 = vsel %vm560_vm4, %v3149_v55, 0.0 }
 0xe97   :  { %3152 = vadd.xlane.f32.xlu0 %v3151_v59 }
 0xed3   :  { %v3144_v32 = vpop.xlane.xlu1 %3143 }
 0xed4   :  { %v3146_v58 = vmul.f32 %v3144_v32, %v7914_v42 }
 0xed6   :  { %v8317_v16 = vsub.f32 %v3138_v51, %v3146_v58 }
 0xed8   :  { %v3150_v20 = vmul.f32 %v8317_v16, %v8317_v16 }
 0xeda   :  { %v3154_v17 = vsel %vm560_vm4, %v3150_v20, 0.0 }
 0xedb   :  { %3155 = vadd.xlane.f32.xlu2 %v3154_v17 }
 0xf0a   :  { %v3153_v35 = vpop.xlane.xlu0 %3152 }
 0xf0b   :  { %v3157_v37 = vmul.f32 %v3153_v35, %v7914_v42 }
 0xf0d   :  { %v3159_v6 = vadd.f32 1e-05, %v3157_v37 }
 0xf0f   :  { %6592 = vrsqrt.f32 %v3159_v6  ;;  %vm3167_vm2 = vweird.f32 %v3159_v6 }
 0xf15   :  { %v6593_v40 = vpop.eup %6592 }
 0xf16   :  { %v3162_v41 = vmul.f32 %v6593_v40, %v3159_v6  ;;  %vm3168_vm1 = vweird.f32 %v6593_v40 }
 0xf17   :  { %vm3169_vm3 = vmor %vm3167_vm2, %vm3168_vm1 }
 0xf18   :  { %v3163_v31 = vmul.f32 %v6593_v40, %v3162_v41 }
 0xf1a   :  { %v3164_v0 = vmul.f32 0.5, %v3163_v31 }
 0xf1c   :  { %v3165_v43 = vsub.f32 1.5, %v3164_v0 }
 0xf1e   :  { %v3166_v44 = vmul.f32 %v6593_v40, %v3165_v43 }
 0xf20   :  { %v3170_v49 = vsel %vm3169_vm3, %v6593_v40, %v3166_v44 }
 0xf21   :  { %v3181_v50 = vmul.f32 %v3170_v49, %v3147_v14 }
 0xf23   :  { %v3186_v46 = vmul.f32 %v6439_v30, %v3181_v50 }
 0xf25   :  { %v8341_v52 = vadd.f32 %v6440_v54, %v3186_v46 }
 0xf27   :  { %6125 = vmatmul.msk.f32.vlgmr.msrb.gmra.mxu3 %vm560_vm4, %v8341_v52  ;;  %6127 = vmatmul.msk.f32.vlgmr.msra.gmra.mxu0 %vm560_vm4, %v8341_v52 }
 0xf4e   :  { %v3156_v12 = vpop.xlane.xlu2 %3155 }
 0xf4f   :  { %v3158_v33 = vmul.f32 %v3156_v12, %v7914_v42 }
 0xf51   :  { %v3160_v28 = vadd.f32 1e-05, %v3158_v33 }
 0xf53   :  { %6594 = vrsqrt.f32 %v3160_v28  ;;  %vm3177_vm13 = vweird.f32 %v3160_v28 }
 0xf59   :  { %v6595_v38 = vpop.eup %6594 }
 0xf5a   :  { %v3172_v34 = vmul.f32 %v6595_v38, %v3160_v28  ;;  %vm3178_vm12 = vweird.f32 %v6595_v38 }
 0xf5b   :  { %vm3179_vm14 = vmor %vm3177_vm13, %vm3178_vm12 }
 0xf5c   :  { %v3173_v24 = vmul.f32 %v6595_v38, %v3172_v34 }
 0xf5e   :  { %v3174_v27 = vmul.f32 0.5, %v3173_v24 }
 0xf60   :  { %v3175_v26 = vsub.f32 1.5, %v3174_v27 }
 0xf62   :  { %v3176_v61 = vmul.f32 %v6595_v38, %v3175_v26  ;;  %v6737_v26 = vld [vmem:[%s9128_s20 + $0x8] sm:$0xff] }
 0xf64   :  { %v3180_v2 = vsel %vm3179_vm14, %v6595_v38, %v3176_v61 }
 0xf65   :  { %v3182_v1 = vmul.f32 %v3180_v2, %v8317_v16 }
 0xf67   :  { %v3187_v39 = vmul.f32 %v6439_v30, %v3182_v1  ;;  %v6736_v30 = vld [vmem:[%s9128_s20] sm:$0xff] }
 0xf69   :  { %v8349_v10 = vadd.f32 %v6440_v54, %v3187_v39  ;;  %v6738_v39 = vld [vmem:[%s9128_s20 + $0x10] sm:$0xff] }
 0xf6b   :  { %6126 = vmatmul.msk.f32.gmra.mxu3 %vm560_vm4, %v8349_v10  ;;  %6128 = vmatmul.msk.f32.gmra.mxu0 %vm560_vm4, %v8349_v10 }
 0xfa4   :  { %v3329_v16 = vpop.f32.mrf.mxu0 }
 0xfa5   :  { %v8389_v15 = vadd.f32 %v3329_v16, %v3280_v23  ;;  %v6742_v16 = vld [vmem:[%s9128_s20 + $0x70] sm:$0xff] }
 0xfaa   :  { %v3306_v18 = vpop.f32.mrf.mxu3 }
 0xfab   :  { %v3307_v56 = vadd.f32 %v3306_v18, %v3279_v9 }
 0xfad   :  { %3345 = vrot.lane.b32.xlu0 %v3307_v56, %s7175_s16  ;;  %3337 = vrot.lane.b32.xlu1 %v3307_v56, %s7173_s29 }
 0xfb5   :  { %3353 = vrot.lane.b32.xlu0 %v3307_v56, %s7176_s11  ;;  %3341 = vrot.lane.b32.xlu1 %v3307_v56, %s7174_s24 }
 0xfbd   :  { %3361 = vrot.lane.b32.xlu0 %v3307_v56, %s7178_s4  ;;  %3349 = vrot.lane.b32.xlu1 %v3307_v56, %s7172_s17 }
 0xfc5   :  { %3357 = vrot.lane.b32.xlu1 %v3307_v56, %s7177_s26 }
 0xfe8   :  { %v3332_v19 = vpop.f32.mrf.mxu0 }
 0xfe9   :  { %v8387_v8 = vadd.f32 %v3332_v19, %v3280_v23  ;;  %v6743_v23 = vld [vmem:[%s9128_s20 + $0x28] sm:$0xff] }
 0xfeb   :  { %v6374_v3 = vpack.i.bf16 %v8387_v8, %v8389_v15 }
 0xfee   :  { %v3309_v57 = vpop.f32.mrf.mxu3 }
 0xfef   :  { %v3310_v7 = vadd.f32 %v3309_v57, %v3279_v9 }
 0xff1   :  { %3351 = vrot.lane.b32.xlu1 %v3310_v7, %s7172_s17  ;;  %3343 = vrot.lane.b32.xlu0 %v3310_v7, %s7174_s24 }
 0xff2   :  { %3339 = vrot.lane.b32.xlu2 %v3310_v7, %s7173_s29 }
 0xff9   :  { %3363 = vrot.lane.b32.xlu0 %v3310_v7, %s7178_s4 }
 0xffa   :  { %3347 = vrot.lane.b32.xlu2 %v3310_v7, %s7175_s16 }
0x1001   :  { %3435 = vrot.lane.b32.xlu0 %v3310_v7, %s7179_s28 }
0x1002   :  { %3355 = vrot.lane.b32.xlu2 %v3310_v7, %s7176_s11 }
0x100a   :  { %3409 = vrot.lane.b32.xlu2 %v3307_v56, %s7179_s28 }
0x101f   :  { %v3346_v25 = vpop.permute.xlu0 %3345  ;;  %v3338_v51 = vpop.permute.xlu1 %3337 }
0x1020   :  { %3565 = vrot.lane.b32.xlu1 %v3346_v25, %s7179_s28  ;;  %3461 = vrot.lane.b32.xlu2 %v3338_v51, %s7179_s28 }
0x1027   :  { %v3354_v45 = vpop.permute.xlu0 %3353  ;;  %v3342_v36 = vpop.permute.xlu1 %3341 }
0x1028   :  { %3669 = vrot.lane.b32.xlu1 %v3354_v45, %s7179_s28  ;;  %3359 = vrot.lane.b32.xlu2 %v3310_v7, %s7177_s26 }
0x102f   :  { %v3362_v63 = vpop.permute.xlu0 %3361  ;;  %v3350_v14 = vpop.permute.xlu1 %3349 }
0x1030   :  { %3773 = vrot.lane.b32.xlu1 %v3362_v63, %s7179_s28  ;;  %3513 = vrot.lane.b32.xlu2 %v3342_v36, %s7179_s28 }
0x1037   :  { %v3358_v55 = vpop.permute.xlu1 %3357 }
0x1038   :  { %3617 = vrot.lane.b32.xlu2 %v3350_v14, %s7179_s28 }
0x1040   :  { %3721 = vrot.lane.b32.xlu2 %v3358_v55, %s7179_s28 }
0x104c   :  { %v3340_v59 = vpop.permute.xlu2 %3339 }
0x104d   :  { %3487 = vrot.lane.b32.xlu0 %v3340_v59, %s7179_s28 }
0x1054   :  { %v3348_v32 = vpop.permute.xlu2 %3347 }
0x1055   :  { %3591 = vrot.lane.b32.xlu0 %v3348_v32, %s7179_s28 }
0x105c   :  { %v3356_v58 = vpop.permute.xlu2 %3355 }
0x105d   :  { %3695 = vrot.lane.b32.xlu0 %v3356_v58, %s7179_s28 }
0x1063   :  { %v3344_v20 = vpop.permute.xlu0 %3343  ;;  %v3352_v48 = vpop.permute.xlu1 %3351 }
0x1064   :  { %v3410_v17 = vpop.permute.xlu2 %3409  ;;  %3539 = vrot.lane.b32.xlu1 %v3344_v20, %s7179_s28 }
0x1065   :  { %6129 = vmatpush.xpose.msk.msra.mxu1 %vm689_vm5, %v3410_v17 }
0x1068   :  { %6130 = vmatmul.msk.f32.vlgmr.msra.gmra.mxu1 %vm689_vm5, %v3307_v56  ;;  %v6739_v56 = vld [vmem:[%s9128_s20 + $0x20] sm:$0xff] }
0x106b   :  { %v3364_v22 = vpop.permute.xlu0 %3363 }
0x106c   :  { %3643 = vrot.lane.b32.xlu1 %v3352_v48, %s7179_s28  ;;  %3799 = vrot.lane.b32.xlu0 %v3364_v22, %s7179_s28 }
0x1073   :  { %v3436_v11 = vpop.permute.xlu0 %3435 }
0x1074   :  { %6375 = vrot.lane.b32.xlu1 %v6374_v3, %s7173_s29  ;;  %6131 = vmatpush.xpose.msk.msra.mxu3 %vm689_vm5, %v3436_v11 }
0x1075   :  { %6380 = vrot.lane.b32.xlu0 %v6374_v3, %s7175_s16 }
0x1077   :  { %6132 = vmatmul.msk.f32.vlgmr.msra.gmra.mxu3 %vm689_vm5, %v3310_v7 }
0x107a   :  { %v3462_v13 = vpop.permute.xlu2 %3461 }
0x107b   :  { %6133 = vmatpush.xpose.msk.msrb.mxu1 %vm689_vm5, %v3462_v13 }
0x107c   :  { %6390 = vrot.lane.b32.xlu1 %v6374_v3, %s7176_s11 }
0x107e   :  { %6134 = vmatmul.msk.f32.vlgmr.msrb.gmra.mxu1 %vm689_vm5, %v3338_v51  ;;  %v6740_v51 = vld [vmem:[%s9128_s20 + $0x40] sm:$0xff] }
0x1082   :  { %v3360_v60 = vpop.permute.xlu2 %3359 }
0x1083   :  { %3747 = vrot.lane.b32.xlu2 %v3360_v60, %s7179_s28 }
0x108a   :  { %v3514_v29 = vpop.permute.xlu2 %3513 }
0x108b   :  { %6385 = vrot.lane.b32.xlu2 %v6374_v3, %s7174_s24  ;;  %6137 = vmatpush.xpose.msk.msrb.mxu0 %vm689_vm5, %v3514_v29  ;;  %v6744_v29 = vld [vmem:[%s9128_s20 + $0x18] sm:$0xff] }
0x108e   :  { %6138 = vmatmul.msk.f32.vlgmr.msrb.gmra.mxu0 %vm689_vm5, %v3342_v36 }
0x1092   :  { %v3566_v5 = vpop.permute.xlu1 %3565  ;;  %v3618_v53 = vpop.permute.xlu2 %3617 }
0x1093   :  { %6141 = vmatpush.xpose.msk.msra.mxu2 %vm689_vm5, %v3566_v5  ;;  %6145 = vmatpush.xpose.msk.msra.mxu0 %vm689_vm5, %v3618_v53 }
0x1096   :  { %6142 = vmatmul.msk.f32.vlgmr.msra.gmra.mxu2 %vm689_vm5, %v3346_v25  ;;  %6146 = vmatmul.msk.f32.vlgmr.msra.gmra.mxu0 %vm689_vm5, %v3350_v14  ;;  %v6741_v14 = vld [vmem:[%s9128_s20 + $0x30] sm:$0xff] }
0x109a   :  { %v3670_v62 = vpop.permute.xlu1 %3669  ;;  %v3722_v4 = vpop.permute.xlu2 %3721 }
0x109b   :  { %6149 = vmatpush.xpose.msk.msrb.mxu2 %vm689_vm5, %v3670_v62  ;;  %6153 = vmatpush.xpose.msk.msrb.mxu0 %vm689_vm5, %v3722_v4 }
0x109e   :  { %6150 = vmatmul.msk.f32.vlgmr.msrb.gmra.mxu2 %vm689_vm5, %v3354_v45  ;;  %6154 = vmatmul.msk.f32.vlgmr.msrb.gmra.mxu0 %vm689_vm5, %v3358_v55 }
0x109f   :  { %4019 = vmatpush.msra.mxu0 %v8389_v15 }
0x10a2   :  { %v3774_v21 = vpop.permute.xlu1 %3773 }
0x10a3   :  { %6157 = vmatpush.xpose.msk.msra.mxu2 %vm689_vm5, %v3774_v21 }
0x10a6   :  { %6158 = vmatmul.msk.f32.vlgmr.msra.gmra.mxu2 %vm689_vm5, %v3362_v63 }
0x10bf   :  { %v3488_v35 = vpop.permute.xlu0 %3487 }
0x10c0   :  { %6135 = vmatpush.xpose.msk.msrb.mxu3 %vm689_vm5, %v3488_v35 }
0x10c3   :  { %6136 = vmatmul.msk.f32.vlgmr.msrb.gmra.mxu3 %vm689_vm5, %v3340_v59 }
0x10c7   :  { %v3592_v37 = vpop.permute.xlu0 %3591 }
0x10c8   :  { %6143 = vmatpush.xpose.msk.msra.mxu3 %vm689_vm5, %v3592_v37 }
0x10cb   :  { %6144 = vmatmul.msk.f32.vlgmr.msra.gmra.mxu3 %vm689_vm5, %v3348_v32 }
0x10cf   :  { %v3696_v6 = vpop.permute.xlu0 %3695 }
0x10d0   :  { %6151 = vmatpush.xpose.msk.msrb.mxu3 %vm689_vm5, %v3696_v6  ;;  %v6745_v6 = vld [vmem:[%s9128_s20 + $0x68] sm:$0xff] }
0x10d3   :  { %6152 = vmatmul.msk.f32.vlgmr.msrb.gmra.mxu3 %vm689_vm5, %v3356_v58 }
0x10d6   :  { %v3540_v40 = vpop.permute.xlu1 %3539 }
0x10d7   :  { %6139 = vmatpush.xpose.msk.msra.mxu1 %vm689_vm5, %v3540_v40 }
0x10da   :  { %6140 = vmatmul.msk.f32.vlgmr.msra.gmra.mxu1 %vm689_vm5, %v3344_v20 }
0x10dd   :  { %v3748_v41 = vpop.permute.xlu2 %3747 }
0x10de   :  { %v3644_v31 = vpop.permute.xlu1 %3643  ;;  %v3800_v0 = vpop.permute.xlu0 %3799 }
0x10df   :  { %6147 = vmatpush.xpose.msk.msrb.mxu1 %vm689_vm5, %v3644_v31  ;;  %6159 = vmatpush.xpose.msk.msra.mxu3 %vm689_vm5, %v3800_v0 }
0x10e2   :  { %6148 = vmatmul.msk.f32.vlgmr.msrb.gmra.mxu1 %vm689_vm5, %v3352_v48  ;;  %6160 = vmatmul.msk.f32.vlgmr.msra.gmra.mxu3 %vm689_vm5, %v3364_v22 }
0x10e3   :  { %6155 = vmatpush.xpose.msk.msra.mxu1 %vm689_vm5, %v3748_v41 }
0x10e5   :  { %v3432_v43 = vpop.f32.mrf.mxu1  ;;  %v6386_v44 = vpop.permute.xlu2 %6385 }
0x10e6   :  { %v3433_v49 = vadd.f32 %v6736_v30, %v3432_v43  ;;  %v6387_v50 = vunpack.i.l.bf16 %v6386_v44  ;;  %v6376_v54 = vpop.permute.xlu1 %6375  ;;  %v6388_v24 = vunpack.i.h.bf16 %v6386_v44  ;;  %v6746_v43 = vld [vmem:[%s9128_s20 + $0x58] sm:$0xff] }
0x10e7   :  { %4042 = vmatpush.msrb.mxu1 %v8387_v8  ;;  %v6378_v46 = vunpack.i.h.bf16 %v6376_v54  ;;  %v6377_v12 = vunpack.i.l.bf16 %v6376_v54  ;;  %v6381_v33 = vpop.permute.xlu0 %6380 }
0x10e8   :  { %v6383_v28 = vunpack.i.h.bf16 %v6381_v33  ;;  %v6382_v38 = vunpack.i.l.bf16 %v6381_v33  ;;  %v3825_v34 = vsel %vm689_vm5, %v3433_v49, -inf  ;;  %4111 = vmatpush.msrb.mxu0 %v6387_v50 }
0x10e9   :  { %3826 = vmax.xlane.f32.xlu1 %v3825_v34  ;;  %4065 = vmatpush.msrb.mxu2 %v6377_v12 }
0x10ea   :  { %4088 = vmatpush.msrb.mxu3 %v6378_v46  ;;  %6156 = vmatmul.msk.f32.vlgmr.msra.gmra.mxu1 %vm689_vm5, %v3360_v60 }
0x10eb   :  { %4134 = vmatpush.msra.mxu1 %v6388_v24  ;;  %4157 = vmatpush.msra.mxu2 %v6382_v38  ;;  %v6747_v24 = vld [vmem:[%s9128_s20 + $0x48] sm:$0xff] }
0x10ec   :  { %4180 = vmatpush.msra.mxu3 %v6383_v28 }
0x10ee   :  { %v8461_v19 = vpop.permute.xlu1 %6390 }
0x10fa   :  { %v3458_v27 = vpop.f32.mrf.mxu3 }
0x10fb   :  { %v8433_v61 = vadd.f32 %v6737_v26, %v3458_v27  ;;  %v3484_v1 = vpop.f32.mrf.mxu1 }
0x10fc   :  { %v8438_v47 = vadd.f32 %v6738_v39, %v3484_v1 }
0x10fd   :  { %v3828_v2 = vsel %vm689_vm5, %v8433_v61, -inf }
0x10fe   :  { %3829 = vmax.xlane.f32.xlu0 %v3828_v2  ;;  %v3831_v9 = vsel %vm689_vm5, %v8438_v47, -inf  ;;  %v6748_v2 = vld [vmem:[%s9128_s20 + $0x50] sm:$0xff] }
0x1106   :  { %3832 = vmax.xlane.f32.xlu0 %v3831_v9 }
0x110b   :  { %v3536_v18 = vpop.f32.mrf.mxu0 }
0x110c   :  { %v8443_v57 = vadd.f32 %v6739_v56, %v3536_v18 }
0x110e   :  { %v3837_v7 = vsel %vm689_vm5, %v8443_v57, -inf }
0x110f   :  { %3838 = vmax.xlane.f32.xlu0 %v3837_v7  ;;  %v6749_v7 = vld [vmem:[%s9128_s20 + $0x60] sm:$0xff] }
0x1113   :  { %v3640_v25 = vpop.f32.mrf.mxu0 }
0x1114   :  { %v8448_v45 = vadd.f32 %v6740_v51, %v3640_v25 }
0x1116   :  { %v3849_v36 = vsel %vm689_vm5, %v8448_v45, -inf }
0x1117   :  { %3850 = vmax.xlane.f32.xlu1 %v3849_v36 }
0x1119   :  { %v3588_v63 = vpop.f32.mrf.mxu2 }
0x111a   :  { %v3589_v55 = vadd.f32 %v6741_v14, %v3588_v63 }
0x111b   :  { %v3744_v56 = vpop.f32.mrf.mxu0 }
0x111c   :  { %v3843_v59 = vsel %vm689_vm5, %v3589_v55, -inf  ;;  %v8510_v25 = vadd.f32 %v6749_v7, %v3744_v56 }
0x111d   :  { %3844 = vmax.xlane.f32.xlu2 %v3843_v59 }
0x111e   :  { %v3861_v36 = vsel %vm689_vm5, %v8510_v25, -inf }
0x1121   :  { %v3692_v32 = vpop.f32.mrf.mxu2 }
0x1122   :  { %v8501_v1 = vadd.f32 %v6748_v2, %v3692_v32 }
0x1123   :  { %3397 = vrot.lane.b32.xlu0 %v8389_v15, %s7177_s26 }
0x1124   :  { %v3855_v9 = vsel %vm689_vm5, %v8501_v1, -inf }
0x1129   :  { %v3796_v58 = vpop.f32.mrf.mxu2 }
0x112a   :  { %v8457_v20 = vadd.f32 %v6742_v16, %v3796_v58 }
0x112c   :  { %v3867_v17 = vsel %vm689_vm5, %v8457_v20, -inf }
0x1146   :  { %v3510_v48 = vpop.f32.mrf.mxu3 }
0x1147   :  { %v8469_v5 = vadd.f32 %v6744_v29, %v3510_v48 }
0x1149   :  { %v3834_v21 = vsel %vm689_vm5, %v8469_v5, -inf }
0x114d   :  { %3868 = vmax.xlane.f32.xlu0 %v3867_v17 }
0x114e   :  { %v3614_v4 = vpop.f32.mrf.mxu3 }
0x1156   :  { %v3718_v0 = vpop.f32.mrf.mxu3 }
0x1157   :  { %v3562_v22 = vpop.f32.mrf.mxu1  ;;  %v8483_v44 = vadd.f32 %v6746_v43, %v3718_v0 }
0x1158   :  { %v8464_v3 = vadd.f32 %v6743_v23, %v3562_v22 }
0x1159   :  { %v3858_v30 = vsel %vm689_vm5, %v8483_v44, -inf }
0x115a   :  { %v3840_v11 = vsel %vm689_vm5, %v8464_v3, -inf }
0x115b   :  { %3841 = vmax.xlane.f32.xlu1 %v3840_v11  ;;  %v6751_v11 = vld [vmem:[%s9128_s20 + $0x78] sm:$0xff] }
0x115c   :  { %v3827_v13 = vpop.xlane.xlu1 %3826 }
0x115d   :  { %v3873_v60 = vsub.f32 %v3433_v49, %v3827_v13 }
0x115f   :  { %v3889_v53 = vmul.f32 1.442695, %v3873_v60  ;;  %v3666_v62 = vpop.f32.mrf.mxu1 }
0x1160   :  { %v8497_v27 = vadd.f32 %v6747_v24, %v3666_v62 }
0x1161   :  { %6596 = vpow2.f32 %v3889_v53 }
0x1162   :  { %v3852_v39 = vsel %vm689_vm5, %v8497_v27, -inf }
0x1163   :  { %3835 = vmax.xlane.f32.xlu1 %v3834_v21 }
0x1165   :  { %v3822_v22 = vpop.f32.mrf.mxu3 }
0x1166   :  { %v8532_v13 = vadd.f32 %v6751_v11, %v3822_v22 }
0x1167   :  { %v8473_v35 = vpop.eup %6596  ;;  %v3770_v37 = vpop.f32.mrf.mxu1 }
0x1168   :  { %v8476_v40 = vadd.f32 %v6745_v6, %v3770_v37  ;;  %v3921_v41 = vsel %vm689_vm5, %v8473_v35, 0.0  ;;  %v3870_v60 = vsel %vm689_vm5, %v8532_v13, -inf }
0x1169   :  { %3922 = vadd.xlane.f32.xlu2 %v3921_v41 }
0x116a   :  { %v3864_v31 = vsel %vm689_vm5, %v8476_v40, -inf }
0x116b   :  { %3865 = vmax.xlane.f32.xlu0 %v3864_v31 }
0x1171   :  { %v3830_v49 = vpop.xlane.xlu0 %3829 }
0x1173   :  { %3859 = vmax.xlane.f32.xlu0 %v3858_v30 }
0x1179   :  { %v3833_v12 = vpop.xlane.xlu0 %3832 }
0x117a   :  { %v3875_v28 = vsub.f32 %v8438_v47, %v3833_v12 }
0x117c   :  { %3385 = vrot.lane.b32.xlu1 %v8389_v15, %s7172_s17  ;;  %v3893_v34 = vmul.f32 1.442695, %v3875_v28 }
0x1181   :  { %3403 = vrot.lane.b32.xlu2 %v8389_v15, %s7178_s4 }
0x118a   :  { %v3851_v15 = vpop.xlane.xlu1 %3850 }
0x118b   :  { %v3881_v26 = vsub.f32 %v8448_v45, %v3851_v15  ;;  %v3874_v45 = vsub.f32 %v8433_v61, %v3830_v49  ;;  %v3839_v61 = vpop.xlane.xlu0 %3838 }
0x118c   :  { %v3877_v17 = vsub.f32 %v8443_v57, %v3839_v61 }
0x118d   :  { %v3905_v47 = vmul.f32 1.442695, %v3881_v26  ;;  %v3891_v14 = vmul.f32 1.442695, %v3874_v45 }
0x118e   :  { %v3897_v23 = vmul.f32 1.442695, %v3877_v17 }
0x1190   :  { %v3845_v50 = vpop.xlane.xlu2 %3844 }
0x1191   :  { %v3879_v54 = vsub.f32 %v3589_v55, %v3845_v50  ;;  %v6750_v55 = vld [vmem:[%s9128_s20 + $0x38] sm:$0xff]  ;;  %s9145_s20 = sld [smem:[#allocation52_spill]] }
0x1192   :  { %v8520_v59 = vadd.f32 %v6750_v55, %v3614_v4  ;;  %v6392_v55 = vunpack.i.l.bf16 %v8461_v19 }
0x1193   :  { %v3901_v46 = vmul.f32 1.442695, %v3879_v54 }
0x1194   :  { %v3846_v58 = vsel %vm689_vm5, %v8520_v59, -inf }
0x1195   :  { %6598 = vpow2.f32 %v3901_v46  ;;  %v8552_v50 = vpop.permute.xlu0 %3397 }
0x1196   :  { %6600 = vpow2.f32 %v3893_v34 }
0x1197   :  { %6602 = vpow2.f32 %v3905_v47 }
0x1198   :  { %6604 = vpow2.f32 %v3891_v14 }
0x1199   :  { %6606 = vpow2.f32 %v3897_v23 }
0x119b   :  { %v8491_v33 = vpop.eup %6598 }
0x119c   :  { %v3939_v38 = vsel %vm689_vm5, %v8491_v33, 0.0  ;;  %v8507_v18 = vpop.eup %6600 }
0x119d   :  { %3940 = vadd.xlane.f32.xlu0 %v3939_v38  ;;  %v3927_v51 = vsel %vm689_vm5, %v8507_v18, 0.0  ;;  %v8517_v63 = vpop.eup %6602 }
0x119e   :  { %v3945_v32 = vsel %vm689_vm5, %v8517_v63, 0.0  ;;  %v8526_v16 = vpop.eup %6604 }
0x119f   :  { %v3924_v48 = vsel %vm689_vm5, %v8526_v16, 0.0  ;;  %v8536_v29 = vpop.eup %6606 }
0x11a0   :  { %v3933_v4 = vsel %vm689_vm5, %v8536_v29, 0.0 }
0x11a6   :  { %3853 = vmax.xlane.f32.xlu1 %v3852_v39 }
0x11aa   :  { %3856 = vmax.xlane.f32.xlu2 %v3855_v9 }
0x11ae   :  { %3928 = vadd.xlane.f32.xlu1 %v3927_v51 }
0x11b2   :  { %3862 = vmax.xlane.f32.xlu2 %v3861_v36 }
0x11b6   :  { %3946 = vadd.xlane.f32.xlu1 %v3945_v32 }
0x11ba   :  { %3847 = vmax.xlane.f32.xlu2 %v3846_v58 }
0x11c0   :  { %v3869_v54 = vpop.xlane.xlu0 %3868 }
0x11c2   :  { %3925 = vadd.xlane.f32.xlu2 %v3924_v48 }
0x11ca   :  { %3871 = vmax.xlane.f32.xlu2 %v3870_v60 }
0x11ce   :  { %v3842_v53 = vpop.xlane.xlu1 %3841 }
0x11cf   :  { %v3878_v62 = vsub.f32 %v8464_v3, %v3842_v53 }
0x11d1   :  { %v3899_v57 = vmul.f32 1.442695, %v3878_v62 }
0x11d2   :  { %3934 = vadd.xlane.f32.xlu2 %v3933_v4 }
0x11d3   :  { %6608 = vpow2.f32 %v3899_v57 }
0x11d6   :  { %v3836_v21 = vpop.xlane.xlu1 %3835 }
0x11d7   :  { %v3876_v37 = vsub.f32 %v8469_v5, %v3836_v21 }
0x11d9   :  { %v8542_v6 = vpop.eup %6608  ;;  %v3895_v41 = vmul.f32 1.442695, %v3876_v37 }
0x11da   :  { %v3936_v31 = vsel %vm689_vm5, %v8542_v6, 0.0 }
0x11db   :  { %6610 = vpow2.f32 %v3895_v41  ;;  %3937 = vadd.xlane.f32.xlu0 %v3936_v31 }
0x11dc   :  { %v3923_v0 = vpop.xlane.xlu2 %3922 }
0x11dd   :  { %6612 = vrcp.f32 %v3923_v0 }
0x11de   :  { %v3866_v46 = vpop.xlane.xlu0 %3865 }
0x11df   :  { %v3886_v48 = vsub.f32 %v8476_v40, %v3866_v46 }
0x11e1   :  { %v8546_v3 = vpop.eup %6610  ;;  %v3915_v60 = vmul.f32 1.442695, %v3886_v48 }
0x11e2   :  { %v3930_v43 = vsel %vm689_vm5, %v8546_v3, 0.0 }
0x11e3   :  { %v6613_v30 = vpop.eup %6612  ;;  %3931 = vadd.xlane.f32.xlu0 %v3930_v43 }
0x11e4   :  { %v3985_v49 = vmul.f32 %v6613_v30, %v8473_v35  ;;  %v3404_v12 = vpop.permute.xlu2 %3403  ;;  %v3887_v35 = vsub.f32 %v8457_v20, %v3869_v54 }
0x11e6   :  { %6161 = vmatmul.msk.f32.vlgmr.msra.gmra.mxu0 %vm689_vm5, %v3985_v49  ;;  %v3860_v15 = vpop.xlane.xlu0 %3859  ;;  %v3917_v9 = vmul.f32 1.442695, %v3887_v35 }
0x11e7   :  { %v3884_v40 = vsub.f32 %v8483_v44, %v3860_v15 }
0x11ee   :  { %v3386_v5 = vpop.permute.xlu1 %3385 }
0x11ef   :  { %4203 = vmatpush.msra.mxu0 %v3386_v5 }
0x1219   :  { %v3854_v28 = vpop.xlane.xlu1 %3853 }
0x121a   :  { %v3882_v38 = vsub.f32 %v8497_v27, %v3854_v28  ;;  %v3941_v27 = vpop.xlane.xlu0 %3940 }
0x121c   :  { %v3907_v34 = vmul.f32 1.442695, %v3882_v38 }
0x121d   :  { %v3857_v24 = vpop.xlane.xlu2 %3856 }
0x121e   :  { %6614 = vpow2.f32 %v3907_v34  ;;  %v3883_v26 = vsub.f32 %v8501_v1, %v3857_v24 }
0x1220   :  { %v3909_v2 = vmul.f32 1.442695, %v3883_v26 }
0x1221   :  { %v3929_v39 = vpop.xlane.xlu1 %3928 }
0x1222   :  { %6616 = vpow2.f32 %v3909_v2 }
0x1223   :  { %6618 = vrcp.f32 %v3929_v39 }
0x1224   :  { %v8557_v47 = vpop.eup %6614  ;;  %6620 = vpow2.f32 %v3917_v9 }
0x1225   :  { %v3863_v56 = vpop.xlane.xlu2 %3862  ;;  %v3948_v7 = vsel %vm689_vm5, %v8557_v47, 0.0  ;;  %6622 = vrcp.f32 %v3941_v27 }
0x1226   :  { %v3885_v51 = vsub.f32 %v8510_v25, %v3863_v56  ;;  %3949 = vadd.xlane.f32.xlu1 %v3948_v7 }
0x1228   :  { %v8562_v45 = vpop.eup %6616  ;;  %v3913_v1 = vmul.f32 1.442695, %v3885_v51 }
0x1229   :  { %v6619_v20 = vpop.eup %6618  ;;  %v3951_v36 = vsel %vm689_vm5, %v8562_v45, 0.0  ;;  %v3947_v30 = vpop.xlane.xlu1 %3946 }
0x122a   :  { %v3987_v14 = vmul.f32 %v6619_v20, %v8507_v18  ;;  %6624 = vpow2.f32 %v3913_v1  ;;  %3952 = vadd.xlane.f32.xlu2 %v3951_v36  ;;  %v8569_v32 = vpop.eup %6620 }
0x122b   :  { %v6623_v61 = vpop.eup %6622  ;;  %v3963_v18 = vsel %vm689_vm5, %v8569_v32, 0.0 }
0x122c   :  { %6163 = vmatmul.msk.f32.vlgmr.msrb.gmra.mxu2 %vm689_vm5, %v3987_v14  ;;  %v3991_v11 = vmul.f32 %v6623_v61, %v8491_v33  ;;  %v3911_v33 = vmul.f32 1.442695, %v3884_v40 }
0x122d   :  { %4249 = vmatpush.msrb.mxu2 %v6392_v55  ;;  %v3848_v25 = vpop.xlane.xlu2 %3847 }
0x122e   :  { %v3880_v58 = vsub.f32 %v8520_v59, %v3848_v25 }
0x1230   :  { %v8572_v17 = vpop.eup %6624  ;;  %v3903_v22 = vmul.f32 1.442695, %v3880_v58 }
0x1231   :  { %v3957_v23 = vsel %vm689_vm5, %v8572_v17, 0.0 }
0x1232   :  { %6626 = vpow2.f32 %v3903_v22  ;;  %3964 = vadd.xlane.f32.xlu2 %v3963_v18  ;;  %3958 = vadd.xlane.f32.xlu0 %v3957_v23 }
0x1234   :  { %6167 = vmatmul.msk.f32.vlgmr.msra.gmra.mxu2 %vm689_vm5, %v3991_v11 }
0x1235   :  { %4341 = vmatpush.msra.mxu2 %v3404_v12  ;;  %v3926_v59 = vpop.xlane.xlu2 %3925 }
0x1236   :  { %6628 = vrcp.f32 %v3926_v59 }
0x1237   :  { %6630 = vpow2.f32 %v3915_v60 }
0x1238   :  { %v8581_v53 = vpop.eup %6626  ;;  %6632 = vpow2.f32 %v3911_v33 }
0x1239   :  { %v3942_v62 = vsel %vm689_vm5, %v8581_v53, 0.0 }
0x123a   :  { %3943 = vadd.xlane.f32.xlu0 %v3942_v62 }
0x123c   :  { %v6629_v57 = vpop.eup %6628 }
0x123d   :  { %v3986_v4 = vmul.f32 %v6629_v57, %v8526_v16  ;;  %v3872_v21 = vpop.xlane.xlu2 %3871  ;;  %v8587_v37 = vpop.eup %6630 }
0x123e   :  { %v3888_v41 = vsub.f32 %v8532_v13, %v3872_v21  ;;  %v3960_v31 = vsel %vm689_vm5, %v8587_v37, 0.0  ;;  %v8595_v43 = vpop.eup %6632 }
0x123f   :  { %6162 = vmatmul.msk.f32.vlgmr.msrb.gmra.mxu1 %vm689_vm5, %v3986_v4  ;;  %3387 = vrot.lane.b32.xlu1 %v8387_v8, %s7172_s17  ;;  %v3954_v13 = vsel %vm689_vm5, %v8595_v43, 0.0 }
0x1240   :  { %v3919_v44 = vmul.f32 1.442695, %v3888_v41 }
0x1242   :  { %6634 = vpow2.f32 %v3919_v44  ;;  %3961 = vadd.xlane.f32.xlu0 %v3960_v31  ;;  %v3217_v31 = vld [vmem:[#allocation16 + $0x38] sm:$0xff] }
0x1245   :  { %v3935_v0 = vpop.xlane.xlu2 %3934 }
0x1246   :  { %6636 = vrcp.f32 %v3935_v0  ;;  %v3216_v0 = vld [vmem:[#allocation16 + $0x30] sm:$0xff] }
0x1247   :  { %6638 = vrcp.f32 %v3947_v30  ;;  %v3213_v30 = vld [vmem:[#allocation16 + $0x18] sm:$0xff] }
0x1248   :  { %v8597_v16 = vpop.eup %6634 }
0x1249   :  { %v3966_v49 = vsel %vm689_vm5, %v8597_v16, 0.0 }
0x124a   :  { %3955 = vadd.xlane.f32.xlu0 %v3954_v13  ;;  %3967 = vadd.xlane.f32.xlu2 %v3966_v49  ;;  %v3212_v13 = vld [vmem:[#allocation16 + $0x10] sm:$0xff]  ;;  %v3211_v49 = vld [vmem:[#allocation16 + $0x8] sm:$0xff] }
0x124c   :  { %v6637_v5 = vpop.eup %6636 }
0x124d   :  { %v3989_v54 = vmul.f32 %v6637_v5, %v8536_v29  ;;  %v6639_v12 = vpop.eup %6638  ;;  %v3210_v5 = vld [vmem:[#allocation16] sm:$0xff] }
0x124e   :  { %v3938_v46 = vpop.xlane.xlu0 %3937  ;;  %v3993_v38 = vmul.f32 %v6639_v12, %v8517_v63 }
0x124f   :  { %6640 = vrcp.f32 %v3938_v46  ;;  %6165 = vmatmul.msk.f32.vlgmr.msrb.gmra.mxu0 %vm689_vm5, %v3989_v54 }
0x1250   :  { %4295 = vmatpush.msrb.mxu0 %v8552_v50  ;;  %v6393_v50 = vunpack.i.h.bf16 %v8461_v19 }
0x1255   :  { %v6641_v28 = vpop.eup %6640 }
0x1256   :  { %v3990_v34 = vmul.f32 %v6641_v28, %v8542_v6  ;;  %v3932_v24 = vpop.xlane.xlu0 %3931 }
0x1257   :  { %6642 = vrcp.f32 %v3932_v24  ;;  %6169 = vmatmul.msk.f32.vlgmr.msra.gmra.mxu0 %vm689_vm5, %v3993_v38 }
0x1258   :  { %6166 = vmatmul.msk.f32.vlgmr.msra.gmra.mxu1 %vm689_vm5, %v3990_v34  ;;  %4456 = vmatpush.msra.mxu0 %v3217_v31 }
0x125a   :  { %4457 = vmatpush.msra.mxu0 %v3216_v0 }
0x125d   :  { %v6643_v15 = vpop.eup %6642 }
0x125e   :  { %v3988_v29 = vmul.f32 %v6643_v15, %v8546_v3  ;;  %3399 = vrot.lane.b32.xlu0 %v8387_v8, %s7177_s26 }
0x1260   :  { %6164 = vmatmul.msk.f32.vlgmr.msrb.gmra.mxu3 %vm689_vm5, %v3988_v29 }
0x1261   :  { %4272 = vmatpush.msrb.mxu3 %v6393_v50 }
0x1262   :  { %3405 = vrot.lane.b32.xlu2 %v8387_v8, %s7178_s4 }
0x1263   :  { %v8627_v25 = vpop.f32.mrf.mxu0 }
0x1299   :  { %v3950_v26 = vpop.xlane.xlu1 %3949 }
0x129d   :  { %v3953_v63 = vpop.xlane.xlu2 %3952 }
0x129e   :  { %6644 = vrcp.f32 %v3953_v63 }
0x12a4   :  { %v6645_v6 = vpop.eup %6644 }
0x12a5   :  { %v3995_v35 = vmul.f32 %v6645_v6, %v8562_v45  ;;  %v3959_v2 = vpop.xlane.xlu0 %3958  ;;  %v3965_v39 = vpop.xlane.xlu2 %3964 }
0x12a6   :  { %6646 = vrcp.f32 %v3959_v2 }
0x12a7   :  { %6648 = vrcp.f32 %v3965_v39  ;;  %6171 = vmatmul.msk.f32.vlgmr.msrb.gmra.mxu2 %vm689_vm5, %v3995_v35 }
0x12a8   :  { %6650 = vrcp.f32 %v3950_v26 }
0x12ac   :  { %v6647_v19 = vpop.eup %6646 }
0x12ad   :  { %v6649_v3 = vpop.eup %6648  ;;  %v3997_v9 = vmul.f32 %v6647_v19, %v8572_v17  ;;  %v3944_v56 = vpop.xlane.xlu0 %3943 }
0x12ae   :  { %v6651_v7 = vpop.eup %6650  ;;  %v3999_v8 = vmul.f32 %v6649_v3, %v8569_v32  ;;  %6652 = vrcp.f32 %v3944_v56 }
0x12af   :  { %6173 = vmatmul.msk.f32.vlgmr.msrb.gmra.mxu0 %vm689_vm5, %v3997_v9  ;;  %v3994_v27 = vmul.f32 %v6651_v7, %v8557_v47  ;;  %v4067_v23 = vpop.f32.mrf.mxu2 }
0x12b0   :  { %6175 = vmatmul.msk.f32.vlgmr.msra.gmra.mxu2 %vm689_vm5, %v3999_v8 }
0x12b1   :  { %v3388_v51 = vpop.permute.xlu1 %3387 }
0x12b2   :  { %4226 = vmatpush.msrb.mxu1 %v3388_v51 }
0x12b3   :  { %6170 = vmatmul.msk.f32.vlgmr.msrb.gmra.mxu1 %vm689_vm5, %v3994_v27 }
0x12b4   :  { %v6653_v45 = vpop.eup %6652 }
0x12b5   :  { %v3992_v1 = vmul.f32 %v6653_v45, %v8581_v53  ;;  %v3962_v20 = vpop.xlane.xlu0 %3961 }
0x12b7   :  { %6168 = vmatmul.msk.f32.vlgmr.msra.gmra.mxu3 %vm689_vm5, %v3992_v1  ;;  %v4159_v60 = vpop.f32.mrf.mxu2 }
0x12bc   :  { %v4044_v59 = vpop.f32.mrf.mxu1 }
0x12bd   :  { %v3956_v36 = vpop.xlane.xlu0 %3955  ;;  %v3968_v14 = vpop.xlane.xlu2 %3967 }
0x12be   :  { %6654 = vrcp.f32 %v3956_v36 }
0x12bf   :  { %6656 = vrcp.f32 %v3968_v14  ;;  %v6441_v14 = vld [vmem:[%s9145_s20] ss:$0 sm:$0xff] }
0x12c0   :  { %6658 = vrcp.f32 %v3962_v20 }
0x12c4   :  { %v6655_v55 = vpop.eup %6654 }
0x12c5   :  { %v3996_v32 = vmul.f32 %v6655_v55, %v8595_v43  ;;  %v3406_v47 = vpop.permute.xlu2 %3405  ;;  %v6657_v58 = vpop.eup %6656  ;;  %v3215_v43 = vld [vmem:[#allocation16 + $0x28] sm:$0xff] }
0x12c6   :  { %4364 = vmatpush.msra.mxu3 %v3406_v47  ;;  %v6659_v17 = vpop.eup %6658  ;;  %v4000_v48 = vmul.f32 %v6657_v58, %v8597_v16  ;;  %v3214_v16 = vld [vmem:[#allocation16 + $0x20] sm:$0xff]  ;;  %4458 = vmatpush.msra.mxu0 %v3215_v43  ;;  %v3226_v43 = vld [vmem:[#allocation17 + $0x38] sm:$0xff] }
0x12c7   :  { %6172 = vmatmul.msk.f32.vlgmr.msrb.gmra.mxu3 %vm689_vm5, %v3996_v32  ;;  %v3998_v22 = vmul.f32 %v6659_v17, %v8587_v37 }
0x12c8   :  { %4459 = vmatpush.msra.mxu0 %v3214_v16  ;;  %v3225_v16 = vld [vmem:[#allocation17 + $0x30] sm:$0xff] }
0x12ca   :  { %4460 = vmatpush.msra.mxu0 %v3213_v30  ;;  %v3224_v30 = vld [vmem:[#allocation17 + $0x28] sm:$0xff] }
0x12cc   :  { %v4113_v61 = vpop.f32.mrf.mxu0  ;;  %4461 = vmatpush.msra.mxu0 %v3212_v13  ;;  %v3223_v13 = vld [vmem:[#allocation17 + $0x20] sm:$0xff] }
0x12cd   :  { %4379 = vrot.lane.b32.xlu1 %v4113_v61, %s7164_s23 }
0x12ce   :  { %4462 = vmatpush.msra.mxu0 %v3211_v49  ;;  %v6444_v49 = vld [vmem:[%s9146_s8] ss:$0 sm:$0xff] }
0x12cf   :  { %6176 = vmatmul.msk.f32.vlgmr.msra.gmra.mxu3 %vm689_vm5, %v4000_v48 }
0x12d0   :  { %v3400_v18 = vpop.permute.xlu0 %3399  ;;  %4463 = vmatpush.msra.mxu0 %v3210_v5 }
0x12d1   :  { %4318 = vmatpush.msra.mxu1 %v3400_v18  ;;  %v3234_v18 = vld [vmem:[#allocation19 + $0x30] sm:$0xff] }
0x12d2   :  { %6174 = vmatmul.msk.f32.vlgmr.msra.gmra.mxu1 %vm689_vm5, %v3998_v22  ;;  %v3235_v22 = vld [vmem:[#allocation19 + $0x38] sm:$0xff] }
0x12d3   :  { %4570 = vmatpush.msrb.mxu2 %v3235_v22  ;;  %4544 = vmatpush.msrb.mxu1 %v3226_v43 }
0x12d4   :  { %v4205_v11 = vpop.f32.mrf.mxu0 }
0x12d5   :  { %4371 = vrot.lane.b32.xlu1 %v4067_v23, %s7156_s22  ;;  %4395 = vrot.lane.b32.xlu2 %v4205_v11, %s7182_s0  ;;  %v4136_v62 = vpop.f32.mrf.mxu1  ;;  %v3233_v23 = vld [vmem:[#allocation19 + $0x28] sm:$0xff]  ;;  %v3232_v11 = vld [vmem:[#allocation19 + $0x20] sm:$0xff] }
0x12d6   :  { %4571 = vmatpush.msrb.mxu2 %v3234_v18  ;;  %4545 = vmatpush.msrb.mxu1 %v3225_v16 }
0x12d8   :  { %4572 = vmatpush.msrb.mxu2 %v3233_v23  ;;  %4546 = vmatpush.msrb.mxu1 %v3224_v30 }
0x12da   :  { %4573 = vmatpush.msrb.mxu2 %v3232_v11  ;;  %4547 = vmatpush.msrb.mxu1 %v3223_v13 }
0x12dd   :  { %4387 = vrot.lane.b32.xlu1 %v4159_v60, %s7180_s25  ;;  %v3230_v60 = vld [vmem:[#allocation19 + $0x10] sm:$0xff] }
0x12e3   :  { %v4090_v57 = vpop.f32.mrf.mxu3 }
0x132a   :  { %v4251_v53 = vpop.f32.mrf.mxu2 }
0x132b   :  { %4403 = vrot.lane.b32.xlu0 %v4251_v53, %s7181_s14  ;;  %v3228_v53 = vld [vmem:[#allocation19] sm:$0xff] }
0x132c   :  { %v4297_v40 = vpop.f32.mrf.mxu0 }
0x132d   :  { %4411 = vrot.lane.b32.xlu1 %v4297_v40, %s7183_s1  ;;  %v6753_v40 = vld [vmem:[%s9130_s2 + $0x8] sm:$0xff] }
0x132f   :  { %v4396_v38 = vpop.permute.xlu2 %4395 }
0x1330   :  { %v4228_v4 = vpop.f32.mrf.mxu1 }
0x1333   :  { %v4343_v33 = vpop.f32.mrf.mxu2  ;;  %4373 = vrot.lane.b32.xlu0 %v4090_v57, %s7156_s22 }
0x1334   :  { %4419 = vrot.lane.b32.xlu2 %v4343_v33, %s7184_s12 }
0x1335   :  { %4381 = vrot.lane.b32.xlu1 %v4136_v62, %s7164_s23 }
0x133a   :  { %v4182_v21 = vpop.f32.mrf.mxu3 }
0x133b   :  { %4397 = vrot.lane.b32.xlu0 %v4228_v4, %s7182_s0 }
0x133c   :  { %4389 = vrot.lane.b32.xlu2 %v4182_v21, %s7180_s25 }
0x133f   :  { %v4380_v54 = vpop.permute.xlu1 %4379 }
0x1347   :  { %v4372_v46 = vpop.permute.xlu1 %4371 }
0x1348   :  { %v4425_v12 = vsel %vm689_vm5, %v8627_v25, %v4372_v46 }
0x1349   :  { %v4427_v34 = vsel %vm1706_vm6, %v4425_v12, %v4380_v54  ;;  %v3222_v54 = vld [vmem:[#allocation17 + $0x18] sm:$0xff]  ;;  %v3221_v12 = vld [vmem:[#allocation17 + $0x10] sm:$0xff] }
0x134a   :  { %v4274_v37 = vpop.f32.mrf.mxu3  ;;  %4548 = vmatpush.msrb.mxu1 %v3222_v54 }
0x134b   :  { %4405 = vrot.lane.b32.xlu1 %v4274_v37, %s7181_s14 }
0x134c   :  { %4549 = vmatpush.msrb.mxu1 %v3221_v12 }
0x134f   :  { %v4320_v41 = vpop.f32.mrf.mxu1  ;;  %v4388_v28 = vpop.permute.xlu1 %4387 }
0x1350   :  { %4413 = vrot.lane.b32.xlu2 %v4320_v41, %s7183_s1  ;;  %v4429_v24 = vsel %vm1709_vm7, %v4427_v34, %v4388_v28  ;;  %v3220_v28 = vld [vmem:[#allocation17 + $0x8] sm:$0xff] }
0x1351   :  { %v4431_v29 = vsel %vm1712_vm8, %v4429_v24, %v4396_v38  ;;  %4550 = vmatpush.msrb.mxu1 %v3220_v28  ;;  %v3219_v38 = vld [vmem:[#allocation17] sm:$0xff] }
0x1352   :  { %v4366_v44 = vpop.f32.mrf.mxu3 }
0x1353   :  { %4421 = vrot.lane.b32.xlu0 %v4366_v44, %s7184_s12  ;;  %4551 = vmatpush.msrb.mxu1 %v3219_v38 }
0x138e   :  { %v4420_v6 = vpop.permute.xlu2 %4419 }
0x1396   :  { %v4390_v3 = vpop.permute.xlu2 %4389 }
0x139d   :  { %v4404_v15 = vpop.permute.xlu0 %4403 }
0x139e   :  { %v4433_v50 = vsel %vm1715_vm9, %v4431_v29, %v4404_v15 }
0x139f   :  { %v4412_v63 = vpop.permute.xlu1 %4411 }
0x13a0   :  { %v4435_v26 = vsel %vm1718_vm10, %v4433_v50, %v4412_v63 }
0x13a1   :  { %v4437_v35 = vsel %vm1721_vm11, %v4435_v26, %v4420_v6 }
0x13a2   :  { %6177 = vmatmul.msk.f32.vlgmr.msra.gmra.mxu0 %vm560_vm4, %v4437_v35 }
0x13a5   :  { %v4374_v2 = vpop.permute.xlu0 %4373 }
0x13a6   :  { %v4426_v19 = vsel %vm689_vm5, %v4044_v59, %v4374_v2  ;;  %v3229_v59 = vld [vmem:[#allocation19 + $0x8] sm:$0xff] }
0x13a7   :  { %v4382_v39 = vpop.permute.xlu1 %4381 }
0x13a8   :  { %v4428_v9 = vsel %vm1706_vm6, %v4426_v19, %v4382_v39  ;;  %v6443_v19 = vld [vmem:[%s9148_s5] ss:$0 sm:$0xff] }
0x13a9   :  { %v4430_v8 = vsel %vm1709_vm7, %v4428_v9, %v4390_v3 }
0x13aa   :  { %v4414_v45 = vpop.permute.xlu2 %4413 }
0x13ad   :  { %v4398_v56 = vpop.permute.xlu0 %4397 }
0x13ae   :  { %v4432_v27 = vsel %vm1712_vm8, %v4430_v8, %v4398_v56 }
0x13bd   :  { %v4406_v7 = vpop.permute.xlu1 %4405 }
0x13be   :  { %v4434_v51 = vsel %vm1715_vm9, %v4432_v27, %v4406_v7 }
0x13bf   :  { %v4436_v20 = vsel %vm1718_vm10, %v4434_v51, %v4414_v45 }
0x13c5   :  { %v4422_v1 = vpop.permute.xlu0 %4421 }
0x13c6   :  { %v4438_v36 = vsel %vm1721_vm11, %v4436_v20, %v4422_v1 }
0x13c7   :  { %6178 = vmatmul.msk.f32.gmra.mxu0 %vm560_vm4, %v4438_v36 }
0x141f   :  { %v4465_v55 = vpop.f32.mrf.mxu0 }
0x1420   :  { %v4466_v25 = vadd.f32 %v6441_v14, %v4465_v55 }
0x1422   :  { %v4471_v32 = vadd.f32 %v4466_v25, %v8341_v52  ;;  %v3231_v52 = vld [vmem:[#allocation19 + $0x18] sm:$0xff] }
0x1423   :  { %4574 = vmatpush.msrb.mxu2 %v3231_v52 }
0x1424   :  { %v4473_v47 = vsel %vm560_vm4, %v4471_v32, 0.0 }
0x1425   :  { %4474 = vadd.xlane.f32.xlu1 %v4473_v47  ;;  %4575 = vmatpush.msrb.mxu2 %v3230_v60 }
0x1427   :  { %4576 = vmatpush.msrb.mxu2 %v3229_v59 }
0x1429   :  { %4577 = vmatpush.msrb.mxu2 %v3228_v53 }
0x1444   :  { %v4468_v58 = vpop.f32.mrf.mxu0 }
0x1445   :  { %v4469_v61 = vadd.f32 %v6441_v14, %v4468_v58 }
0x1447   :  { %v4472_v17 = vadd.f32 %v4469_v61, %v8349_v10  ;;  %v6752_v10 = vld [vmem:[%s9130_s2] sm:$0xff]  ;;  %s9147_s2 = sld [smem:[#allocation59_spill]] }
0x1448   :  { %6181 = vmatmul.msk.f32.vlgmr.msrb.gmra.mxu2 %vm560_vm4, %v6752_v10 }
0x1449   :  { %v4476_v48 = vsel %vm560_vm4, %v4472_v17, 0.0 }
0x144a   :  { %4477 = vadd.xlane.f32.xlu2 %v4476_v48 }
0x144d   :  { %v6442_v2 = vld [vmem:[%s9147_s2] ss:$0 sm:$0xff] }
0x1450   :  { %6182 = vmatmul.msk.f32.gmra.mxu2 %vm560_vm4, %v6753_v40 }
0x1498   :  { %v4475_v62 = vpop.xlane.xlu1 %4474 }
0x1499   :  { %v4479_v57 = vmul.f32 %v4475_v62, %v7914_v42 }
0x149b   :  { %v4481_v33 = vsub.f32 %v4471_v32, %v4479_v57 }
0x149d   :  { %v4483_v4 = vmul.f32 %v4481_v33, %v4481_v33 }
0x149f   :  { %v4485_v21 = vsel %vm560_vm4, %v4483_v4, 0.0 }
0x14a0   :  { %4486 = vadd.xlane.f32.xlu0 %v4485_v21 }
0x14bd   :  { %v4478_v37 = vpop.xlane.xlu2 %4477 }
0x14be   :  { %v4480_v41 = vmul.f32 %v4478_v37, %v7914_v42 }
0x14c0   :  { %v8678_v44 = vsub.f32 %v4472_v17, %v4480_v41  ;;  %v6445_v17 = vld [vmem:[%s9149_s15] ss:$0 sm:$0xff] }
0x14c2   :  { %v4484_v31 = vmul.f32 %v8678_v44, %v8678_v44 }
0x14c4   :  { %v4488_v0 = vsel %vm560_vm4, %v4484_v31, 0.0 }
0x14c5   :  { %4489 = vadd.xlane.f32.xlu2 %v4488_v0 }
0x14cb   :  { %v4579_v5 = vpop.f32.mrf.mxu2 }
0x14cc   :  { %v8684_v46 = vadd.f32 %v6444_v49, %v4579_v5 }
0x14ce   :  { %4617 = vrot.lane.b32.xlu1 %v8684_v46, %s7173_s29  ;;  %4633 = vrot.lane.b32.xlu0 %v8684_v46, %s7176_s11 }
0x14cf   :  { %6183 = vmatpush.xpose.msk.msrb.mxu3 %vm689_vm5, %v8684_v46 }
0x14d3   :  { %v4582_v7 = vpop.f32.mrf.mxu2 }
0x14d4   :  { %v8703_v8 = vadd.f32 %v6444_v49, %v4582_v7 }
0x14d6   :  { %4621 = vrot.lane.b32.xlu0 %v8684_v46, %s7174_s24  ;;  %4623 = vrot.lane.b32.xlu1 %v8703_v8, %s7174_s24 }
0x14d7   :  { %6185 = vmatpush.xpose.msk.msra.mxu3 %vm689_vm5, %v8703_v8 }
0x14dd   :  { %4625 = vrot.lane.b32.xlu2 %v8684_v46, %s7175_s16 }
0x14de   :  { %4627 = vrot.lane.b32.xlu0 %v8703_v8, %s7175_s16  ;;  %4641 = vrot.lane.b32.xlu1 %v8684_v46, %s7178_s4 }
0x14e5   :  { %4619 = vrot.lane.b32.xlu2 %v8703_v8, %s7173_s29 }
0x14e6   :  { %4629 = vrot.lane.b32.xlu1 %v8684_v46, %s7172_s17 }
0x14ed   :  { %4631 = vrot.lane.b32.xlu2 %v8703_v8, %s7172_s17 }
0x1513   :  { %v4487_v34 = vpop.xlane.xlu0 %4486 }
0x1514   :  { %v4491_v24 = vmul.f32 %v4487_v34, %v7914_v42 }
0x1516   :  { %v4493_v15 = vadd.f32 1e-05, %v4491_v24 }
0x1518   :  { %6660 = vrsqrt.f32 %v4493_v15  ;;  %vm4501_vm0 = vweird.f32 %v4493_v15 }
0x151e   :  { %v6661_v29 = vpop.eup %6660 }
0x151f   :  { %v4496_v50 = vmul.f32 %v6661_v29, %v4493_v15  ;;  %vm4502_vm15 = vweird.f32 %v6661_v29 }
0x1520   :  { %vm4503_vm1 = vmor %vm4501_vm0, %vm4502_vm15 }
0x1521   :  { %v4497_v63 = vmul.f32 %v6661_v29, %v4496_v50 }
0x1523   :  { %v4498_v6 = vmul.f32 0.5, %v4497_v63 }
0x1525   :  { %v4499_v26 = vsub.f32 1.5, %v4498_v6 }
0x1527   :  { %v4500_v35 = vmul.f32 %v6661_v29, %v4499_v26 }
0x1529   :  { %v4504_v39 = vsel %vm4503_vm1, %v6661_v29, %v4500_v35 }
0x152a   :  { %v4515_v3 = vmul.f32 %v4504_v39, %v4481_v33 }
0x152c   :  { %v4520_v9 = vmul.f32 %v6442_v2, %v4515_v3 }
0x152e   :  { %v8699_v56 = vadd.f32 %v6443_v19, %v4520_v9 }
0x1530   :  { %6179 = vmatmul.msk.f32.vlgmr.msrb.gmra.mxu1 %vm560_vm4, %v8699_v56 }
0x1538   :  { %v4490_v27 = vpop.xlane.xlu2 %4489 }
0x1539   :  { %v4492_v51 = vmul.f32 %v4490_v27, %v7914_v42 }
0x153b   :  { %v4494_v45 = vadd.f32 1e-05, %v4492_v51 }
0x153d   :  { %6662 = vrsqrt.f32 %v4494_v45  ;;  %vm4511_vm3 = vweird.f32 %v4494_v45 }
0x1540   :  { %v4618_v18 = vpop.permute.xlu1 %4617  ;;  %v4626_v23 = vpop.permute.xlu2 %4625 }
0x1541   :  { %v8739_v59 = vpop.permute.xlu0 %4633  ;;  %v6399_v57 = vpack.i.bf16 %v4626_v23, %v8703_v8  ;;  %v6394_v41 = vpack.i.bf16 %v8684_v46, %v4618_v18 }
0x1543   :  { %v6663_v1 = vpop.eup %6662 }
0x1544   :  { %v4506_v20 = vmul.f32 %v6663_v1, %v4494_v45  ;;  %vm4512_vm2 = vweird.f32 %v6663_v1 }
0x1545   :  { %vm4513_vm12 = vmor %vm4511_vm3, %vm4512_vm2 }
0x1546   :  { %v4507_v36 = vmul.f32 %v6663_v1, %v4506_v20 }
0x1548   :  { %v4508_v14 = vmul.f32 0.5, %v4507_v36  ;;  %v4620_v60 = vpop.permute.xlu2 %4619  ;;  %v8743_v53 = vpop.permute.xlu1 %4623 }
0x1549   :  { %6189 = vmatpush.xpose.msk.msrb.mxu0 %vm689_vm5, %v4620_v60  ;;  %6193 = vmatpush.xpose.msk.msra.mxu2 %vm689_vm5, %v8743_v53  ;;  %v4622_v40 = vpop.permute.xlu0 %4621 }
0x154a   :  { %v4509_v55 = vsub.f32 1.5, %v4508_v14  ;;  %6191 = vmatpush.xpose.msk.msra.mxu1 %vm689_vm5, %v4622_v40  ;;  %v6404_v37 = vpack.i.bf16 %v4620_v60, %v4622_v40 }
0x154c   :  { %v4510_v25 = vmul.f32 %v6663_v1, %v4509_v55 }
0x154e   :  { %v4514_v32 = vsel %vm4513_vm12, %v6663_v1, %v4510_v25 }
0x154f   :  { %v4516_v47 = vmul.f32 %v4514_v32, %v8678_v44 }
0x1550   :  { %v8750_v10 = vpop.permute.xlu2 %4631  ;;  %v8755_v62 = vpop.permute.xlu1 %4641 }
0x1551   :  { %v4521_v58 = vmul.f32 %v6442_v2, %v4516_v47  ;;  %6201 = vmatpush.xpose.msk.msrb.mxu2 %vm689_vm5, %v8750_v10  ;;  %v8762_v33 = vpop.permute.xlu0 %4627 }
0x1552   :  { %6197 = vmatpush.xpose.msk.msra.mxu0 %vm689_vm5, %v8762_v33 }
0x1553   :  { %v8721_v61 = vadd.f32 %v6443_v19, %v4521_v58 }
0x1555   :  { %6180 = vmatmul.msk.f32.gmra.mxu1 %vm560_vm4, %v8721_v61 }
0x1558   :  { %v8764_v4 = vpop.permute.xlu1 %4629 }
0x1559   :  { %v6414_v21 = vpack.i.bf16 %v8762_v33, %v8764_v4  ;;  %6199 = vmatpush.xpose.msk.msrb.mxu1 %vm689_vm5, %v8764_v4 }
0x15ad   :  { %v4553_v48 = vpop.f32.mrf.mxu1 }
0x15ae   :  { %v4554_v22 = vadd.f32 %v6445_v17, %v4553_v48 }
0x15b0   :  { %4611 = vrot.lane.b32.xlu2 %v4554_v22, %s7178_s4  ;;  %4603 = vrot.lane.b32.xlu1 %v4554_v22, %s7176_s11 }
0x15b1   :  { %4587 = vrot.lane.b32.xlu0 %v4554_v22, %s7173_s29  ;;  %6184 = vmatmul.msk.f32.vlgmr.msrb.gmra.mxu3 %vm689_vm5, %v4554_v22 }
0x15b2   :  { %6187 = vmatpush.xpose.msk.msrb.mxu3 %vm689_vm5, %v4618_v18 }
0x15b8   :  { %4591 = vrot.lane.b32.xlu1 %v4554_v22, %s7174_s24 }
0x15b9   :  { %4595 = vrot.lane.b32.xlu0 %v4554_v22, %s7175_s16 }
0x15c0   :  { %4637 = vrot.lane.b32.xlu1 %v8684_v46, %s7177_s26 }
0x15d2   :  { %v4556_v11 = vpop.f32.mrf.mxu1 }
0x15d3   :  { %v4557_v52 = vadd.f32 %v6445_v17, %v4556_v11 }
0x15d5   :  { %4593 = vrot.lane.b32.xlu2 %v4557_v52, %s7174_s24  ;;  %4597 = vrot.lane.b32.xlu1 %v4557_v52, %s7175_s16  ;;  %s9154_s24 = sld [smem:[#allocation58_spill]]  ;;  %s5944_s16 = sshll.u32 %s7430_s13, 4  ;;  %s5945_s16 = int_to_ptr.hbm [resolvable:$true] %s5944_s16 }
0x15d6   :  { %4589 = vrot.lane.b32.xlu0 %v4557_v52, %s7173_s29  ;;  %6186 = vmatmul.msk.f32.vlgmr.msra.gmra.mxu3 %vm689_vm5, %v4557_v52  ;;  %s9152_s29 = sld [smem:[#allocation61_spill]] }
0x15d7   :  { %6195 = vmatpush.xpose.msk.msra.mxu3 %vm689_vm5, %v4626_v23 }
0x15dd   :  { %4599 = vrot.lane.b32.xlu2 %v4554_v22, %s7172_s17  ;;  %4605 = vrot.lane.b32.xlu1 %v4557_v52, %s7176_s11 }
0x15de   :  { %4601 = vrot.lane.b32.xlu0 %v4557_v52, %s7172_s17  ;;  %s9151_s17 = sld [smem:[#allocation57_spill]] }
0x15e5   :  { %4609 = vrot.lane.b32.xlu2 %v4557_v52, %s7177_s26  ;;  %6400 = vrot.lane.b32.xlu1 %v6399_v57, %s7179_s28 }
0x15e6   :  { %4639 = vrot.lane.b32.xlu0 %v8703_v8, %s7177_s26 }
0x15ed   :  { %4607 = vrot.lane.b32.xlu2 %v4554_v22, %s7177_s26 }
0x15ee   :  { %4635 = vrot.lane.b32.xlu0 %v8703_v8, %s7176_s11  ;;  %s7078_s11 = sshra.s32 %s5945_s16, 4  ;;  %s7079_s11 = int_to_ptr.hbm [resolvable:$true] %s7078_s11 }
0x15ef   :  { %s7080_s26 = scalar_lea.hbm %s7079_s11, 16  ;;  %p7083_p10 = scmp.lt.s32.totalorder %s7079_s11, %s7430_s13 }
0x15f0   :  { %p7081_p9 = scmp.ne.s32.totalorder %s7079_s11, %s7080_s26 }
0x15f5   :  { %4613 = vrot.lane.b32.xlu2 %v4557_v52, %s7178_s4 }
0x15f6   :  { %4643 = vrot.lane.b32.xlu0 %v8703_v8, %s7178_s4  ;;  %s7082_s4 = scalar_lea.hbm %s7430_s13, 16 }
0x15f7   :  { %p7084_p11 = scmp.lt.s32.totalorder %s7082_s4, %s7080_s26 }
0x15f9   :  { %p7085_p12 = por %p7084_p11, %p7083_p10 }
0x15fb   :  { %p7086_p13 = pnand %p7085_p12, %p7081_p9 }
0x15fd   :  { %6395 = vrot.lane.b32.xlu2 %v6394_v41, %s7179_s28 }
0x15fe   :  { %6405 = vrot.lane.b32.xlu0 %v6404_v37, %s7179_s28 }
0x160a   :  { %v4612_v0 = vpop.permute.xlu2 %4611 }
0x1622   :  { %v4604_v44 = vpop.permute.xlu1 %4603 }
0x1623   :  { %v4588_v31 = vpop.permute.xlu0 %4587 }
0x1624   :  { %6188 = vmatmul.msk.f32.vlgmr.msrb.gmra.mxu3 %vm689_vm5, %v4588_v31 }
0x1625   :  { %6203 = vmatpush.xpose.msk.msrb.mxu3 %vm689_vm5, %v8739_v59 }
0x162a   :  { %v4592_v43 = vpop.permute.xlu1 %4591 }
0x162b   :  { %v4596_v16 = vpop.permute.xlu0 %4595  ;;  %6192 = vmatmul.msk.f32.vlgmr.msra.gmra.mxu1 %vm689_vm5, %v4592_v43 }
0x162c   :  { %6196 = vmatmul.msk.f32.vlgmr.msra.gmra.mxu3 %vm689_vm5, %v4596_v16 }
0x162d   :  { %6211 = vmatpush.xpose.msk.msra.mxu3 %vm689_vm5, %v8755_v62 }
0x162f   :  { %v4594_v30 = vpop.permute.xlu2 %4593 }
0x1630   :  { %6194 = vmatmul.msk.f32.vlgmr.msra.gmra.mxu2 %vm689_vm5, %v4594_v30 }
0x1632   :  { %v8789_v13 = vpop.permute.xlu1 %4637 }
0x1633   :  { %6207 = vmatpush.xpose.msk.msra.mxu1 %vm689_vm5, %v8789_v13 }
0x1634   :  { %v8793_v49 = vpop.f32.mrf.mxu3  ;;  %6204 = vmatmul.msk.f32.vlgmr.msrb.gmra.mxu3 %vm689_vm5, %v4604_v44 }
0x1635   :  { %v5029_v5 = vsel %vm689_vm5, %v8793_v49, -inf }
0x1636   :  { %5030 = vmax.xlane.f32.xlu0 %v5029_v5 }
0x1637   :  { %v4600_v54 = vpop.permute.xlu2 %4599 }
0x1638   :  { %6200 = vmatmul.msk.f32.vlgmr.msrb.gmra.mxu1 %vm689_vm5, %v4600_v54 }
0x163c   :  { %6212 = vmatmul.msk.f32.vlgmr.msra.gmra.mxu3 %vm689_vm5, %v4612_v0 }
0x163f   :  { %v4610_v46 = vpop.permute.xlu2 %4609 }
0x1647   :  { %v4608_v12 = vpop.permute.xlu2 %4607  ;;  %v4598_v28 = vpop.permute.xlu1 %4597 }
0x1648   :  { %v4590_v38 = vpop.permute.xlu0 %4589  ;;  %6208 = vmatmul.msk.f32.vlgmr.msra.gmra.mxu1 %vm689_vm5, %v4608_v12 }
0x1649   :  { %6190 = vmatmul.msk.f32.vlgmr.msrb.gmra.mxu0 %vm689_vm5, %v4590_v38 }
0x164f   :  { %v4614_v34 = vpop.permute.xlu2 %4613  ;;  %v4606_v24 = vpop.permute.xlu1 %4605 }
0x1650   :  { %v4602_v15 = vpop.permute.xlu0 %4601 }
0x1651   :  { %6198 = vmatmul.msk.f32.vlgmr.msra.gmra.mxu0 %vm689_vm5, %v4598_v28  ;;  %6202 = vmatmul.msk.f32.vlgmr.msrb.gmra.mxu2 %vm689_vm5, %v4602_v15 }
0x1657   :  { %v6396_v29 = vpop.permute.xlu2 %6395  ;;  %v6401_v50 = vpop.permute.xlu1 %6400 }
0x1658   :  { %v8804_v63 = vpop.permute.xlu0 %4639  ;;  %v6398_v6 = vunpack.i.h.bf16 %v6396_v29  ;;  %v6397_v26 = vunpack.i.l.bf16 %v6396_v29  ;;  %v6403_v35 = vunpack.i.h.bf16 %v6401_v50  ;;  %v6402_v2 = vunpack.i.l.bf16 %v6401_v50 }
0x1659   :  { %v4690_v39 = vpop.f32.mrf.mxu3  ;;  %6209 = vmatpush.xpose.msk.msra.mxu2 %vm689_vm5, %v8804_v63  ;;  %v6409_v29 = vpack.i.bf16 %v8739_v59, %v8743_v53 }
0x165a   :  { %v5032_v19 = vsel %vm689_vm5, %v4690_v39, -inf  ;;  %5226 = vmatpush.msrb.mxu1 %v6398_v6  ;;  %5278 = vmatpush.msrb.mxu3 %v6397_v26 }
0x165b   :  { %5033 = vmax.xlane.f32.xlu2 %v5032_v19 }
0x165c   :  { %6210 = vmatmul.msk.f32.vlgmr.msra.gmra.mxu2 %vm689_vm5, %v4610_v46  ;;  %5382 = vmatpush.msra.mxu3 %v6403_v35 }
0x165d   :  { %5252 = vmatpush.msrb.mxu2 %v6402_v2 }
0x1660   :  { %v8810_v3 = vpop.permute.xlu0 %4635 }
0x1661   :  { %v6424_v9 = vpack.i.bf16 %v8810_v3, %v8789_v13  ;;  %6205 = vmatpush.xpose.msk.msrb.mxu0 %vm689_vm5, %v8810_v3 }
0x1664   :  { %6206 = vmatmul.msk.f32.vlgmr.msrb.gmra.mxu0 %vm689_vm5, %v4606_v24 }
0x1668   :  { %v8817_v7 = vpop.permute.xlu0 %4643 }
0x1669   :  { %6213 = vmatpush.xpose.msk.msra.mxu0 %vm689_vm5, %v8817_v7 }
0x166c   :  { %6214 = vmatmul.msk.f32.vlgmr.msra.gmra.mxu0 %vm689_vm5, %v4614_v34 }
0x1670   :  { %v6406_v8 = vpop.permute.xlu0 %6405 }
0x1671   :  { %v6408_v27 = vunpack.i.h.bf16 %v6406_v8  ;;  %v6407_v51 = vunpack.i.l.bf16 %v6406_v8 }
0x1673   :  { %5304 = vmatpush.msrb.mxu0 %v6408_v27  ;;  %5330 = vmatpush.msra.mxu1 %v6407_v51 }
0x16a7   :  { %v4714_v45 = vpop.f32.mrf.mxu3 }
0x16a8   :  { %v5035_v1 = vsel %vm689_vm5, %v4714_v45, -inf  ;;  %v4762_v20 = vpop.f32.mrf.mxu1 }
0x16a9   :  { %5036 = vmax.xlane.f32.xlu1 %v5035_v1  ;;  %v5041_v36 = vsel %vm689_vm5, %v4762_v20, -inf  ;;  %v5031_v17 = vpop.xlane.xlu0 %5030 }
0x16aa   :  { %5042 = vmax.xlane.f32.xlu0 %v5041_v36  ;;  %v5077_v48 = vsub.f32 %v8793_v49, %v5031_v17 }
0x16ac   :  { %v5093_v22 = vmul.f32 1.442695, %v5077_v48 }
0x16ae   :  { %6664 = vpow2.f32 %v5093_v22 }
0x16af   :  { %v8824_v14 = vpop.f32.mrf.mxu3 }
0x16b0   :  { %v5047_v55 = vsel %vm689_vm5, %v8824_v14, -inf }
0x16b1   :  { %5048 = vmax.xlane.f32.xlu1 %v5047_v55 }
0x16b3   :  { %v8845_v60 = vpop.f32.mrf.mxu2 }
0x16b4   :  { %v8847_v40 = vpop.eup %6664  ;;  %v5044_v37 = vsel %vm689_vm5, %v8845_v60, -inf }
0x16b5   :  { %v8828_v25 = vpop.f32.mrf.mxu1  ;;  %v5125_v44 = vsel %vm689_vm5, %v8847_v40, 0.0 }
0x16b6   :  { %v5053_v32 = vsel %vm689_vm5, %v8828_v25, -inf }
0x16b7   :  { %v8832_v47 = vpop.f32.mrf.mxu3  ;;  %5054 = vmax.xlane.f32.xlu2 %v5053_v32 }
0x16b8   :  { %v5059_v58 = vsel %vm689_vm5, %v8832_v47, -inf }
0x16b9   :  { %5060 = vmax.xlane.f32.xlu0 %v5059_v58 }
0x16bf   :  { %v8855_v43 = vpop.f32.mrf.mxu3 }
0x16c0   :  { %v5071_v5 = vsel %vm689_vm5, %v8855_v43, -inf }
0x16c5   :  { %v8837_v18 = vpop.f32.mrf.mxu1 }
0x16c6   :  { %v8839_v23 = vpop.f32.mrf.mxu0  ;;  %v5065_v11 = vsel %vm689_vm5, %v8837_v18, -inf }
0x16c7   :  { %v5038_v52 = vsel %vm689_vm5, %v8839_v23, -inf  ;;  %5066 = vmax.xlane.f32.xlu1 %v5065_v11 }
0x16c8   :  { %5039 = vmax.xlane.f32.xlu2 %v5038_v52 }
0x16ce   :  { %v5034_v57 = vpop.xlane.xlu2 %5033  ;;  %v8853_v0 = vpop.f32.mrf.mxu0 }
0x16cf   :  { %v5078_v41 = vsub.f32 %v4690_v39, %v5034_v57  ;;  %5045 = vmax.xlane.f32.xlu1 %v5044_v37  ;;  %v5050_v49 = vsel %vm689_vm5, %v8853_v0, -inf }
0x16d0   :  { %5126 = vadd.xlane.f32.xlu2 %v5125_v44 }
0x16d1   :  { %v5095_v31 = vmul.f32 1.442695, %v5078_v41 }
0x16d3   :  { %6666 = vpow2.f32 %v5095_v31 }
0x16d4   :  { %v8857_v16 = vpop.f32.mrf.mxu2 }
0x16d5   :  { %v5056_v30 = vsel %vm689_vm5, %v8857_v16, -inf }
0x16d6   :  { %5057 = vmax.xlane.f32.xlu0 %v5056_v30 }
0x16d7   :  { %5051 = vmax.xlane.f32.xlu1 %v5050_v49 }
0x16d8   :  { %5072 = vmax.xlane.f32.xlu2 %v5071_v5 }
0x16d9   :  { %v8865_v54 = vpop.eup %6666 }
0x16da   :  { %v5128_v46 = vsel %vm689_vm5, %v8865_v54, 0.0 }
0x16df   :  { %v8869_v12 = vpop.f32.mrf.mxu2  ;;  %5129 = vadd.xlane.f32.xlu1 %v5128_v46 }
0x16e0   :  { %v5068_v28 = vsel %vm689_vm5, %v8869_v12, -inf }
0x16e1   :  { %5069 = vmax.xlane.f32.xlu2 %v5068_v28  ;;  %v8873_v38 = vpop.f32.mrf.mxu0 }
0x16e2   :  { %v5062_v34 = vsel %vm689_vm5, %v8873_v38, -inf }
0x16e3   :  { %5063 = vmax.xlane.f32.xlu0 %v5062_v34 }
0x16e9   :  { %v8877_v24 = vpop.f32.mrf.mxu0 }
0x16ea   :  { %v5074_v15 = vsel %vm689_vm5, %v8877_v24, -inf }
0x16eb   :  { %5075 = vmax.xlane.f32.xlu1 %v5074_v15 }
0x16f9   :  { %6410 = vrot.lane.b32.xlu2 %v6409_v29, %s7179_s28 }
0x171c   :  { %v5037_v50 = vpop.xlane.xlu1 %5036 }
0x171d   :  { %v5079_v6 = vsub.f32 %v4714_v45, %v5037_v50  ;;  %v5043_v26 = vpop.xlane.xlu0 %5042 }
0x171e   :  { %v5081_v35 = vsub.f32 %v4762_v20, %v5043_v26 }
0x171f   :  { %v5097_v2 = vmul.f32 1.442695, %v5079_v6 }
0x1720   :  { %v5101_v39 = vmul.f32 1.442695, %v5081_v35 }
0x1721   :  { %6668 = vpow2.f32 %v5097_v2 }
0x1722   :  { %6670 = vpow2.f32 %v5101_v39 }
0x1724   :  { %v5049_v53 = vpop.xlane.xlu1 %5048 }
0x1725   :  { %v5083_v1 = vsub.f32 %v8824_v14, %v5049_v53 }
0x1727   :  { %v8884_v19 = vpop.eup %6668  ;;  %v5105_v36 = vmul.f32 1.442695, %v5083_v1 }
0x1728   :  { %v8886_v8 = vpop.eup %6670  ;;  %v5131_v27 = vsel %vm689_vm5, %v8884_v19, 0.0 }
0x1729   :  { %5132 = vadd.xlane.f32.xlu0 %v5131_v27  ;;  %v5137_v59 = vsel %vm689_vm5, %v8886_v8, 0.0 }
0x172a   :  { %v5055_v51 = vpop.xlane.xlu2 %5054  ;;  %5138 = vadd.xlane.f32.xlu1 %v5137_v59 }
0x172b   :  { %v5085_v45 = vsub.f32 %v8828_v25, %v5055_v51 }
0x172c   :  { %v5061_v48 = vpop.xlane.xlu0 %5060 }
0x172d   :  { %v5109_v20 = vmul.f32 1.442695, %v5085_v45  ;;  %v5087_v52 = vsub.f32 %v8832_v47, %v5061_v48 }
0x172f   :  { %6672 = vpow2.f32 %v5109_v20  ;;  %v5113_v41 = vmul.f32 1.442695, %v5087_v52 }
0x1730   :  { %6674 = vpow2.f32 %v5105_v36 }
0x1735   :  { %v8894_v55 = vpop.eup %6672 }
0x1736   :  { %v5149_v32 = vsel %vm689_vm5, %v8894_v55, 0.0  ;;  %v8898_v17 = vpop.eup %6674 }
0x1737   :  { %5150 = vadd.xlane.f32.xlu0 %v5149_v32  ;;  %v5143_v37 = vsel %vm689_vm5, %v8898_v17, 0.0 }
0x173a   :  { %v5067_v58 = vpop.xlane.xlu1 %5066 }
0x173b   :  { %v5040_v22 = vpop.xlane.xlu2 %5039  ;;  %v5089_v11 = vsub.f32 %v8837_v18, %v5067_v58 }
0x173c   :  { %v5080_v25 = vsub.f32 %v8839_v23, %v5040_v22 }
0x173d   :  { %v5117_v14 = vmul.f32 1.442695, %v5089_v11 }
0x173e   :  { %v5099_v57 = vmul.f32 1.442695, %v5080_v25 }
0x173f   :  { %6676 = vpow2.f32 %v5117_v14  ;;  %5144 = vadd.xlane.f32.xlu0 %v5143_v37 }
0x1740   :  { %6678 = vpow2.f32 %v5099_v57 }
0x1742   :  { %v5046_v44 = vpop.xlane.xlu1 %5045 }
0x1743   :  { %v5127_v31 = vpop.xlane.xlu2 %5126  ;;  %v5082_v30 = vsub.f32 %v8845_v60, %v5046_v44 }
0x1744   :  { %6680 = vrcp.f32 %v5127_v31 }
0x1745   :  { %v8906_v49 = vpop.eup %6676  ;;  %v5103_v18 = vmul.f32 1.442695, %v5082_v30  ;;  %6682 = vpow2.f32 %v5113_v41 }
0x1746   :  { %v8908_v23 = vpop.eup %6678  ;;  %v5161_v47 = vsel %vm689_vm5, %v8906_v49, 0.0 }
0x1747   :  { %6684 = vpow2.f32 %v5103_v18  ;;  %v5134_v5 = vsel %vm689_vm5, %v8908_v23, 0.0  ;;  %5162 = vadd.xlane.f32.xlu1 %v5161_v47 }
0x1748   :  { %5135 = vadd.xlane.f32.xlu0 %v5134_v5 }
0x1749   :  { %v5058_v46 = vpop.xlane.xlu0 %5057 }
0x174a   :  { %v6681_v28 = vpop.eup %6680  ;;  %v5086_v60 = vsub.f32 %v8857_v16, %v5058_v46  ;;  %v5052_v34 = vpop.xlane.xlu1 %5051 }
0x174b   :  { %v5189_v15 = vmul.f32 %v6681_v28, %v8847_v40  ;;  %v5073_v29 = vpop.xlane.xlu2 %5072  ;;  %v5084_v50 = vsub.f32 %v8853_v0, %v5052_v34  ;;  %v8917_v6 = vpop.eup %6682 }
0x174c   :  { %v5111_v26 = vmul.f32 1.442695, %v5086_v60  ;;  %v5091_v35 = vsub.f32 %v8855_v43, %v5073_v29  ;;  %v5155_v40 = vsel %vm689_vm5, %v8917_v6, 0.0 }
0x174d   :  { %v8920_v2 = vpop.eup %6684  ;;  %v5107_v39 = vmul.f32 1.442695, %v5084_v50  ;;  %6215 = vmatmul.msk.f32.vlgmr.msrb.gmra.mxu1 %vm689_vm5, %v5189_v15 }
0x174e   :  { %6686 = vpow2.f32 %v5111_v26  ;;  %v5121_v27 = vmul.f32 1.442695, %v5091_v35  ;;  %v5140_v16 = vsel %vm689_vm5, %v8920_v2, 0.0 }
0x174f   :  { %6688 = vpow2.f32 %v5107_v39  ;;  %5141 = vadd.xlane.f32.xlu1 %v5140_v16 }
0x1750   :  { %6690 = vpow2.f32 %v5121_v27  ;;  %5156 = vadd.xlane.f32.xlu0 %v5155_v40 }
0x1752   :  { %v5130_v0 = vpop.xlane.xlu1 %5129 }
0x1753   :  { %6692 = vrcp.f32 %v5130_v0 }
0x1754   :  { %v8927_v43 = vpop.eup %6686  ;;  %v5070_v59 = vpop.xlane.xlu2 %5069 }
0x1755   :  { %v8929_v53 = vpop.eup %6688  ;;  %v5152_v1 = vsel %vm689_vm5, %v8927_v43, 0.0  ;;  %v5090_v37 = vsub.f32 %v8869_v12, %v5070_v59 }
0x1756   :  { %v8931_v51 = vpop.eup %6690  ;;  %v5064_v45 = vpop.xlane.xlu0 %5063  ;;  %v5146_v20 = vsel %vm689_vm5, %v8929_v53, 0.0 }
0x1757   :  { %v5088_v36 = vsub.f32 %v8873_v38, %v5064_v45  ;;  %v5167_v32 = vsel %vm689_vm5, %v8931_v51, 0.0  ;;  %5153 = vadd.xlane.f32.xlu1 %v5152_v1  ;;  %5147 = vadd.xlane.f32.xlu2 %v5146_v20  ;;  %v5119_v44 = vmul.f32 1.442695, %v5090_v37 }
0x1758   :  { %5168 = vadd.xlane.f32.xlu0 %v5167_v32 }
0x1759   :  { %v6693_v58 = vpop.eup %6692  ;;  %v5115_v48 = vmul.f32 1.442695, %v5088_v36 }
0x175a   :  { %v5190_v22 = vmul.f32 %v6693_v58, %v8865_v54  ;;  %v6419_v54 = vpack.i.bf16 %v8755_v62, %v8750_v10 }
0x175b   :  { %6694 = vpow2.f32 %v5115_v48 }
0x175c   :  { %v6411_v11 = vpop.permute.xlu2 %6410  ;;  %6216 = vmatmul.msk.f32.vlgmr.msrb.gmra.mxu2 %vm689_vm5, %v5190_v22 }
0x175d   :  { %v6412_v25 = vunpack.i.l.bf16 %v6411_v11  ;;  %v6413_v30 = vunpack.i.h.bf16 %v6411_v11 }
0x175e   :  { %v5076_v52 = vpop.xlane.xlu1 %5075 }
0x175f   :  { %5356 = vmatpush.msra.mxu2 %v6412_v25  ;;  %v5092_v57 = vsub.f32 %v8877_v24, %v5076_v52 }
0x1761   :  { %v8942_v14 = vpop.eup %6694  ;;  %v5123_v41 = vmul.f32 1.442695, %v5092_v57 }
0x1762   :  { %v5158_v38 = vsel %vm689_vm5, %v8942_v14, 0.0 }
0x1763   :  { %5159 = vadd.xlane.f32.xlu2 %v5158_v38  ;;  %6696 = vpow2.f32 %v5123_v41 }
0x1764   :  { %6698 = vpow2.f32 %v5119_v44 }
0x1769   :  { %v8957_v31 = vpop.eup %6696 }
0x176a   :  { %v5170_v33 = vsel %vm689_vm5, %v8957_v31, 0.0  ;;  %v8961_v10 = vpop.eup %6698 }
0x176b   :  { %v5164_v62 = vsel %vm689_vm5, %v8961_v10, 0.0 }
0x176c   :  { %6415 = vrot.lane.b32.xlu0 %v6414_v21, %s7179_s28 }
0x1770   :  { %6420 = vrot.lane.b32.xlu1 %v6419_v54, %s7179_s28 }
0x177b   :  { %5543 = vrot.lane.b32.xlu2 %v8804_v63, %s7179_s28 }
0x1796   :  { %5171 = vadd.xlane.f32.xlu0 %v5170_v33 }
0x179a   :  { %5165 = vadd.xlane.f32.xlu1 %v5164_v62 }
0x179c   :  { %v5133_v4 = vpop.xlane.xlu0 %5132 }
0x179d   :  { %6700 = vrcp.f32 %v5133_v4  ;;  %v5139_v21 = vpop.xlane.xlu1 %5138 }
0x179e   :  { %6702 = vrcp.f32 %v5139_v21 }
0x17a3   :  { %v6701_v63 = vpop.eup %6700 }
0x17a4   :  { %v6703_v12 = vpop.eup %6702  ;;  %v5191_v24 = vmul.f32 %v6701_v63, %v8884_v19 }
0x17a5   :  { %v5193_v18 = vmul.f32 %v6703_v12, %v8886_v8 }
0x17a6   :  { %6217 = vmatmul.msk.f32.vlgmr.msrb.gmra.mxu3 %vm689_vm5, %v5191_v24 }
0x17a7   :  { %5486 = vmatpush.msrb.mxu3 %v6413_v30  ;;  %6219 = vmatmul.msk.f32.vlgmr.msra.gmra.mxu1 %vm689_vm5, %v5193_v18 }
0x17aa   :  { %v5151_v47 = vpop.xlane.xlu0 %5150 }
0x17b2   :  { %v5145_v5 = vpop.xlane.xlu0 %5144 }
0x17b3   :  { %6704 = vrcp.f32 %v5145_v5  ;;  %6425 = vrot.lane.b32.xlu1 %v6424_v9, %s7179_s28 }
0x17b9   :  { %v6705_v46 = vpop.eup %6704 }
0x17ba   :  { %v5195_v28 = vmul.f32 %v6705_v46, %v8898_v17  ;;  %v5163_v19 = vpop.xlane.xlu1 %5162  ;;  %v3244_v46 = vld [vmem:[#allocation20 + $0x38] sm:$0xff] }
0x17bb   :  { %v5136_v60 = vpop.xlane.xlu0 %5135  ;;  %5595 = vrot.lane.b32.xlu1 %v8817_v7, %s7179_s28 }
0x17bc   :  { %6706 = vrcp.f32 %v5136_v60  ;;  %6221 = vmatmul.msk.f32.vlgmr.msra.gmra.mxu3 %vm689_vm5, %v5195_v28  ;;  %v3243_v28 = vld [vmem:[#allocation20 + $0x30] sm:$0xff]  ;;  %v3241_v60 = vld [vmem:[#allocation20 + $0x20] sm:$0xff] }
0x17c2   :  { %v6707_v8 = vpop.eup %6706  ;;  %v5142_v34 = vpop.xlane.xlu1 %5141 }
0x17c3   :  { %v5192_v15 = vmul.f32 %v6707_v8, %v8908_v23  ;;  %v5157_v29 = vpop.xlane.xlu0 %5156  ;;  %6708 = vrcp.f32 %v5142_v34  ;;  %v3240_v8 = vld [vmem:[#allocation20 + $0x18] sm:$0xff] }
0x17c4   :  { %6710 = vrcp.f32 %v5157_v29  ;;  %v3238_v29 = vld [vmem:[#allocation20 + $0x8] sm:$0xff] }
0x17c5   :  { %6218 = vmatmul.msk.f32.vlgmr.msrb.gmra.mxu0 %vm689_vm5, %v5192_v15  ;;  %6712 = vrcp.f32 %v5151_v47  ;;  %v3239_v15 = vld [vmem:[#allocation20 + $0x10] sm:$0xff] }
0x17c9   :  { %v6709_v13 = vpop.eup %6708 }
0x17ca   :  { %v6711_v3 = vpop.eup %6710  ;;  %v5194_v9 = vmul.f32 %v6709_v13, %v8920_v2  ;;  %v5148_v7 = vpop.xlane.xlu2 %5147  ;;  %v3237_v13 = vld [vmem:[#allocation20] sm:$0xff] }
0x17cb   :  { %v5199_v17 = vmul.f32 %v6711_v3, %v8917_v6  ;;  %v5169_v50 = vpop.xlane.xlu0 %5168  ;;  %6714 = vrcp.f32 %v5148_v7  ;;  %v5154_v23 = vpop.xlane.xlu1 %5153 }
0x17cc   :  { %6220 = vmatmul.msk.f32.vlgmr.msra.gmra.mxu2 %vm689_vm5, %v5194_v9  ;;  %6716 = vrcp.f32 %v5169_v50  ;;  %v6713_v26 = vpop.eup %6712  ;;  %v8993_v22 = vpop.f32.mrf.mxu1 }
0x17cd   :  { %6225 = vmatmul.msk.f32.vlgmr.msrb.gmra.mxu3 %vm689_vm5, %v5199_v17  ;;  %6718 = vrcp.f32 %v5154_v23  ;;  %v5197_v6 = vmul.f32 %v6713_v26, %v8894_v55 }
0x17d1   :  { %v6715_v39 = vpop.eup %6714 }
0x17d2   :  { %v6717_v2 = vpop.eup %6716  ;;  %v5196_v0 = vmul.f32 %v6715_v39, %v8929_v53 }
0x17d3   :  { %v6719_v59 = vpop.eup %6718  ;;  %v5203_v36 = vmul.f32 %v6717_v2, %v8931_v51 }
0x17d4   :  { %v5198_v32 = vmul.f32 %v6719_v59, %v8927_v43 }
0x17d6   :  { %v5160_v35 = vpop.xlane.xlu2 %5159 }
0x17de   :  { %v6416_v27 = vpop.permute.xlu0 %6415  ;;  %v5544_v58 = vpop.permute.xlu2 %5543 }
0x17df   :  { %v6418_v16 = vunpack.i.h.bf16 %v6416_v27  ;;  %v6417_v40 = vunpack.i.l.bf16 %v6416_v27 }
0x17e1   :  { %5408 = vmatpush.msra.mxu0 %v6418_v16  ;;  %5434 = vmatpush.msrb.mxu1 %v6417_v40 }
0x17e2   :  { %6222 = vmatmul.msk.f32.vlgmr.msra.gmra.mxu0 %vm689_vm5, %v5196_v0  ;;  %6223 = vmatmul.msk.f32.vlgmr.msrb.gmra.mxu1 %vm689_vm5, %v5197_v6  ;;  %v6421_v45 = vpop.permute.xlu1 %6420 }
0x17e3   :  { %v6423_v1 = vunpack.i.h.bf16 %v6421_v45  ;;  %v6422_v20 = vunpack.i.l.bf16 %v6421_v45 }
0x17e5   :  { %5460 = vmatpush.msrb.mxu2 %v6422_v20  ;;  %5590 = vmatpush.msra.mxu3 %v6423_v1 }
0x17e6   :  { %6224 = vmatmul.msk.f32.vlgmr.msrb.gmra.mxu2 %vm689_vm5, %v5198_v32  ;;  %6229 = vmatmul.msk.f32.vlgmr.msra.gmra.mxu3 %vm689_vm5, %v5203_v36 }
0x17e7   :  { %5564 = vmatpush.msra.mxu2 %v5544_v58 }
0x1809   :  { %v5172_v51 = vpop.xlane.xlu0 %5171 }
0x180d   :  { %v5166_v55 = vpop.xlane.xlu1 %5165 }
0x180e   :  { %6720 = vrcp.f32 %v5166_v55 }
0x180f   :  { %6722 = vrcp.f32 %v5163_v19  ;;  %v3242_v19 = vld [vmem:[#allocation20 + $0x28] sm:$0xff] }
0x1810   :  { %6724 = vrcp.f32 %v5160_v35 }
0x1811   :  { %6726 = vrcp.f32 %v5172_v51 }
0x1814   :  { %v6721_v53 = vpop.eup %6720 }
0x1815   :  { %v5202_v48 = vmul.f32 %v6721_v53, %v8961_v10  ;;  %v6723_v43 = vpop.eup %6722 }
0x1816   :  { %v6725_v11 = vpop.eup %6724  ;;  %v5201_v57 = vmul.f32 %v6723_v43, %v8906_v49  ;;  %v5254_v49 = vpop.f32.mrf.mxu2 }
0x1817   :  { %6228 = vmatmul.msk.f32.vlgmr.msra.gmra.mxu2 %vm689_vm5, %v5202_v48  ;;  %v5200_v37 = vmul.f32 %v6725_v11, %v8942_v14  ;;  %v6727_v41 = vpop.eup %6726 }
0x1818   :  { %v5204_v10 = vmul.f32 %v6727_v41, %v8957_v31 }
0x1824   :  { %v5332_v25 = vpop.f32.mrf.mxu1 }
0x1825   :  { %5631 = vrot.lane.b32.xlu1 %v5332_v25, %s7164_s23  ;;  %v6426_v38 = vpop.permute.xlu1 %6425 }
0x1826   :  { %v6428_v54 = vunpack.i.h.bf16 %v6426_v38  ;;  %v6427_v52 = vunpack.i.l.bf16 %v6426_v38 }
0x1828   :  { %5512 = vmatpush.msrb.mxu0 %v6428_v54  ;;  %5538 = vmatpush.msra.mxu1 %v6427_v52 }
0x1829   :  { %6226 = vmatmul.msk.f32.vlgmr.msrb.gmra.mxu0 %vm689_vm5, %v5200_v37  ;;  %6227 = vmatmul.msk.f32.vlgmr.msra.gmra.mxu1 %vm689_vm5, %v5201_v57  ;;  %v5280_v44 = vpop.f32.mrf.mxu3 }
0x182a   :  { %5708 = vmatpush.msrb.mxu1 %v3244_v46 }
0x182c   :  { %5709 = vmatpush.msrb.mxu1 %v3243_v28 }
0x182d   :  { %5623 = vrot.lane.b32.xlu1 %v5280_v44, %s7156_s22  ;;  %v5596_v33 = vpop.permute.xlu1 %5595 }
0x182e   :  { %5616 = vmatpush.msra.mxu0 %v5596_v33  ;;  %5710 = vmatpush.msrb.mxu1 %v3242_v19 }
0x1830   :  { %5711 = vmatpush.msrb.mxu1 %v3241_v60 }
0x1831   :  { %6230 = vmatmul.msk.f32.vlgmr.msra.gmra.mxu0 %vm689_vm5, %v5204_v10 }
0x1832   :  { %5712 = vmatpush.msrb.mxu1 %v3240_v8  ;;  %v3270_v8 = vld [vmem:[%s9151_s17 + $0x78] sm:$0xff] }
0x1833   :  { %5816 = vmatpush.msrb.mxu3 %v3270_v8 }
0x1834   :  { %5713 = vmatpush.msrb.mxu1 %v3239_v15 }
0x1836   :  { %5714 = vmatpush.msrb.mxu1 %v3238_v29  ;;  %v3268_v29 = vld [vmem:[%s9151_s17 + $0x68] sm:$0xff] }
0x1838   :  { %5715 = vmatpush.msrb.mxu1 %v3237_v13 }
0x183f   :  { %v5384_v14 = vpop.f32.mrf.mxu3 }
0x1842   :  { %v5306_v62 = vpop.f32.mrf.mxu0 }
0x1843   :  { %5625 = vrot.lane.b32.xlu2 %v5306_v62, %s7156_s22 }
0x184f   :  { %v5358_v63 = vpop.f32.mrf.mxu2 }
0x1850   :  { %v5488_v12 = vpop.f32.mrf.mxu3 }
0x185f   :  { %v5410_v4 = vpop.f32.mrf.mxu0  ;;  %v5436_v21 = vpop.f32.mrf.mxu1 }
0x1860   :  { %5641 = vrot.lane.b32.xlu1 %v5410_v4, %s7180_s25  ;;  %5647 = vrot.lane.b32.xlu0 %v5436_v21, %s7182_s0 }
0x1868   :  { %5655 = vrot.lane.b32.xlu1 %v5488_v12, %s7181_s14  ;;  %5633 = vrot.lane.b32.xlu0 %v5358_v63, %s7164_s23  ;;  %s9150_s23 = sld [smem:[#allocation55_spill]]  ;;  %v3253_v63 = vld [vmem:[#allocation22 + $0x38] sm:$0xff]  ;;  %v3252_v12 = vld [vmem:[#allocation22 + $0x30] sm:$0xff] }
0x1869   :  { %v5592_v31 = vpop.f32.mrf.mxu3  ;;  %v5462_v24 = vpop.f32.mrf.mxu2  ;;  %5796 = vmatpush.msrb.mxu2 %v3253_v63 }
0x186b   :  { %5797 = vmatpush.msrb.mxu2 %v3252_v12 }
0x186e   :  { %v6446_v51 = vld [vmem:[%s9150_s23] ss:$0 sm:$0xff] }
0x1870   :  { %5671 = vrot.lane.b32.xlu1 %v5592_v31, %s7184_s12  ;;  %v3251_v31 = vld [vmem:[#allocation22 + $0x28] sm:$0xff] }
0x1871   :  { %5798 = vmatpush.msrb.mxu2 %v3251_v31 }
0x1897   :  { %v5632_v34 = vpop.permute.xlu1 %5631 }
0x189a   :  { %v5566_v30 = vpop.f32.mrf.mxu2 }
0x189b   :  { %5665 = vrot.lane.b32.xlu1 %v5566_v30, %s7183_s1  ;;  %v3249_v30 = vld [vmem:[#allocation22 + $0x18] sm:$0xff] }
0x189d   :  { %v5626_v9 = vpop.permute.xlu2 %5625 }
0x189e   :  { %v5678_v1 = vsel %vm689_vm5, %v5254_v49, %v5626_v9 }
0x189f   :  { %v5624_v3 = vpop.permute.xlu1 %5623 }
0x18a0   :  { %v5677_v23 = vsel %vm689_vm5, %v8993_v22, %v5624_v3 }
0x18a1   :  { %v5679_v35 = vsel %vm1706_vm6, %v5677_v23, %v5632_v34  ;;  %v3269_v34 = vld [vmem:[%s9151_s17 + $0x70] sm:$0xff]  ;;  %v3266_v23 = vld [vmem:[%s9151_s17 + $0x58] sm:$0xff] }
0x18a2   :  { %5817 = vmatpush.msrb.mxu3 %v3269_v34 }
0x18a4   :  { %5818 = vmatpush.msrb.mxu3 %v3268_v29  ;;  %v5902_v29 = vld [vmem:[#allocation2 + $0x38] sm:$0xff] }
0x18a5   :  { %5921 = vmatpush.msrb.mxu0 %v5902_v29 }
0x18a6   :  { %v5514_v18 = vpop.f32.mrf.mxu0  ;;  %v5540_v47 = vpop.f32.mrf.mxu1 }
0x18a7   :  { %5663 = vrot.lane.b32.xlu2 %v5540_v47, %s7183_s1  ;;  %5657 = vrot.lane.b32.xlu0 %v5514_v18, %s7181_s14  ;;  %v3248_v18 = vld [vmem:[#allocation22 + $0x10] sm:$0xff]  ;;  %v3247_v47 = vld [vmem:[#allocation22 + $0x8] sm:$0xff] }
0x18ae   :  { %v5618_v5 = vpop.f32.mrf.mxu0 }
0x18af   :  { %5639 = vrot.lane.b32.xlu2 %v5384_v14, %s7180_s25 }
0x18b7   :  { %5649 = vrot.lane.b32.xlu2 %v5462_v24, %s7182_s0  ;;  %v3250_v24 = vld [vmem:[#allocation22 + $0x20] sm:$0xff] }
0x18b8   :  { %5799 = vmatpush.msrb.mxu2 %v3250_v24 }
0x18ba   :  { %5800 = vmatpush.msrb.mxu2 %v3249_v30 }
0x18bc   :  { %5801 = vmatpush.msrb.mxu2 %v3248_v18 }
0x18be   :  { %5802 = vmatpush.msrb.mxu2 %v3247_v47 }
0x18bf   :  { %5673 = vrot.lane.b32.xlu2 %v5618_v5, %s7184_s12  ;;  %v3246_v5 = vld [vmem:[#allocation22] sm:$0xff] }
0x18c0   :  { %5803 = vmatpush.msrb.mxu2 %v3246_v5 }
0x18d2   :  { %v5642_v17 = vpop.permute.xlu1 %5641  ;;  %v5648_v26 = vpop.permute.xlu0 %5647 }
0x18da   :  { %v5656_v50 = vpop.permute.xlu1 %5655  ;;  %v5634_v59 = vpop.permute.xlu0 %5633 }
0x18db   :  { %v5680_v20 = vsel %vm1706_vm6, %v5678_v1, %v5634_v59  ;;  %v3262_v1 = vld [vmem:[%s9151_s17 + $0x38] sm:$0xff] }
0x18dc   :  { %v5682_v36 = vsel %vm1709_vm7, %v5680_v20, %v5642_v17  ;;  %v3267_v17 = vld [vmem:[%s9151_s17 + $0x60] sm:$0xff] }
0x18dd   :  { %5819 = vmatpush.msrb.mxu3 %v3267_v17  ;;  %v5898_v17 = vld [vmem:[#allocation2 + $0x18] sm:$0xff] }
0x18df   :  { %5820 = vmatpush.msrb.mxu3 %v3266_v23  ;;  %v5895_v23 = vld [vmem:[#allocation2] sm:$0xff] }
0x18e2   :  { %v5672_v2 = vpop.permute.xlu1 %5671 }
0x1901   :  { %v5664_v7 = vpop.permute.xlu2 %5663 }
0x1909   :  { %v5640_v39 = vpop.permute.xlu2 %5639 }
0x190a   :  { %v5681_v27 = vsel %vm1709_vm7, %v5679_v35, %v5640_v39  ;;  %v3265_v35 = vld [vmem:[%s9151_s17 + $0x50] sm:$0xff] }
0x190b   :  { %v5683_v16 = vsel %vm1712_vm8, %v5681_v27, %v5648_v26  ;;  %v6447_v27 = vld [vmem:[%s9152_s29] ss:$0 sm:$0xff]  ;;  %5821 = vmatpush.msrb.mxu3 %v3265_v35 }
0x190c   :  { %v5685_v40 = vsel %vm1715_vm9, %v5683_v16, %v5656_v50  ;;  %v3264_v16 = vld [vmem:[%s9151_s17 + $0x48] sm:$0xff] }
0x190d   :  { %v5687_v6 = vsel %vm1718_vm10, %v5685_v40, %v5664_v7  ;;  %v5666_v55 = vpop.permute.xlu1 %5665  ;;  %5822 = vmatpush.msrb.mxu3 %v3264_v16 }
0x190e   :  { %v5689_v0 = vsel %vm1721_vm11, %v5687_v6, %v5672_v2  ;;  %v6448_v2 = vld [vmem:[%s7415_s27] ss:$0 sm:$0xff]  ;;  %s9153_s27 = sld [smem:[#allocation56_spill]] }
0x190f   :  { %6231 = vmatmul.msk.f32.vlgmr.msrb.gmra.mxu1 %vm560_vm4, %v5689_v0  ;;  %v3263_v0 = vld [vmem:[%s9151_s17 + $0x40] sm:$0xff] }
0x1910   :  { %5823 = vmatpush.msrb.mxu3 %v3263_v0 }
0x1911   :  { %v5650_v45 = vpop.permute.xlu2 %5649 }
0x1912   :  { %v5684_v32 = vsel %vm1712_vm8, %v5682_v36, %v5650_v45  ;;  %5824 = vmatpush.msrb.mxu3 %v3262_v1 }
0x1919   :  { %v5658_v58 = vpop.permute.xlu0 %5657  ;;  %v5674_v48 = vpop.permute.xlu2 %5673 }
0x191a   :  { %v5686_v53 = vsel %vm1715_vm9, %v5684_v32, %v5658_v58  ;;  %v3261_v32 = vld [vmem:[%s9151_s17 + $0x30] sm:$0xff] }
0x191b   :  { %v5688_v22 = vsel %vm1718_vm10, %v5686_v53, %v5666_v55  ;;  %v3260_v55 = vld [vmem:[%s9151_s17 + $0x28] sm:$0xff]  ;;  %5825 = vmatpush.msrb.mxu3 %v3261_v32  ;;  %v6452_v32 = vld [vmem:[%s7425_s30] ss:$0 sm:$0xff] }
0x191c   :  { %v5690_v43 = vsel %vm1721_vm11, %v5688_v22, %v5674_v48  ;;  %v3259_v48 = vld [vmem:[%s9151_s17 + $0x20] sm:$0xff] }
0x191d   :  { %6232 = vmatmul.msk.f32.gmra.mxu1 %vm560_vm4, %v5690_v43  ;;  %5826 = vmatpush.msrb.mxu3 %v3260_v55  ;;  %v3258_v43 = vld [vmem:[%s9151_s17 + $0x18] sm:$0xff] }
0x191f   :  { %5827 = vmatpush.msrb.mxu3 %v3259_v48 }
0x1921   :  { %5828 = vmatpush.msrb.mxu3 %v3258_v43 }
0x198c   :  { %v5717_v11 = vpop.f32.mrf.mxu1 }
0x198d   :  { %v5718_v25 = vadd.f32 %v6446_v51, %v5717_v11 }
0x198f   :  { %v5723_v38 = vadd.f32 %v5718_v25, %v8699_v56 }
0x1991   :  { %v5725_v54 = vsel %vm560_vm4, %v5723_v38, 0.0 }
0x1992   :  { %5726 = vadd.xlane.f32.xlu0 %v5725_v54 }
0x199a   :  { %v5720_v52 = vpop.f32.mrf.mxu1 }
0x199b   :  { %v5721_v57 = vadd.f32 %v6446_v51, %v5720_v52  ;;  %v3257_v52 = vld [vmem:[%s9151_s17 + $0x10] sm:$0xff] }
0x199c   :  { %5829 = vmatpush.msrb.mxu3 %v3257_v52 }
0x199d   :  { %v5724_v37 = vadd.f32 %v5721_v57, %v8721_v61  ;;  %v3256_v57 = vld [vmem:[%s9151_s17 + $0x8] sm:$0xff] }
0x199e   :  { %5830 = vmatpush.msrb.mxu3 %v3256_v57  ;;  %v6453_v57 = vld [vmem:[#allocation5] ss:$0 sm:$0xff] }
0x199f   :  { %v5728_v41 = vsel %vm560_vm4, %v5724_v37, 0.0 }
0x19a0   :  { %5729 = vadd.xlane.f32.xlu1 %v5728_v41  ;;  %v6449_v41 = vld [vmem:[%s9153_s27] ss:$0 sm:$0xff] }
0x1a05   :  { %v5727_v44 = vpop.xlane.xlu0 %5726 }
0x1a06   :  { %v5731_v33 = vmul.f32 %v5727_v44, %v7914_v42 }
0x1a08   :  { %v5733_v10 = vsub.f32 %v5723_v38, %v5731_v33 }
0x1a0a   :  { %v5735_v62 = vmul.f32 %v5733_v10, %v5733_v10 }
0x1a0c   :  { %v5737_v49 = vsel %vm560_vm4, %v5735_v62, 0.0 }
0x1a0d   :  { %5738 = vadd.xlane.f32.xlu2 %v5737_v49 }
0x1a13   :  { %v5730_v14 = vpop.xlane.xlu1 %5729 }
0x1a14   :  { %v5732_v56 = vmul.f32 %v5730_v14, %v7914_v42 }
0x1a16   :  { %v9040_v4 = vsub.f32 %v5724_v37, %v5732_v56  ;;  %v3255_v37 = vld [vmem:[%s9151_s17] sm:$0xff] }
0x1a17   :  { %5831 = vmatpush.msrb.mxu3 %v3255_v37  ;;  %v6450_v56 = vld [vmem:[%s9154_s24] ss:$0 sm:$0xff] }
0x1a18   :  { %v5736_v21 = vmul.f32 %v9040_v4, %v9040_v4 }
0x1a1a   :  { %v5740_v61 = vsel %vm560_vm4, %v5736_v21, 0.0 }
0x1a1b   :  { %5741 = vadd.xlane.f32.xlu0 %v5740_v61 }
0x1a80   :  { %v5739_v46 = vpop.xlane.xlu2 %5738 }
0x1a81   :  { %v5743_v28 = vmul.f32 %v5739_v46, %v7914_v42 }
0x1a83   :  { %v5745_v19 = vadd.f32 1e-05, %v5743_v28 }
0x1a85   :  { %6728 = vrsqrt.f32 %v5745_v19  ;;  %vm5753_vm6 = vweird.f32 %v5745_v19 }
0x1a8b   :  { %v6729_v60 = vpop.eup %6728 }
0x1a8c   :  { %v5748_v15 = vmul.f32 %v6729_v60, %v5745_v19  ;;  %vm5754_vm5 = vweird.f32 %v6729_v60 }
0x1a8d   :  { %vm5755_vm7 = vmor %vm5753_vm6, %vm5754_vm5 }
0x1a8e   :  { %v5749_v13 = vmul.f32 %v6729_v60, %v5748_v15  ;;  %v5742_v3 = vpop.xlane.xlu0 %5741 }
0x1a8f   :  { %v5744_v9 = vmul.f32 %v5742_v3, %v7914_v42  ;;  %v5900_v3 = vld [vmem:[#allocation2 + $0x28] sm:$0xff] }
0x1a90   :  { %v5750_v7 = vmul.f32 0.5, %v5749_v13  ;;  %v5901_v13 = vld [vmem:[#allocation2 + $0x30] sm:$0xff] }
0x1a91   :  { %v5746_v50 = vadd.f32 1e-05, %v5744_v9  ;;  %5922 = vmatpush.msrb.mxu0 %v5901_v13  ;;  %v5899_v9 = vld [vmem:[#allocation2 + $0x20] sm:$0xff] }
0x1a92   :  { %v5751_v26 = vsub.f32 1.5, %v5750_v7  ;;  %v5897_v7 = vld [vmem:[#allocation2 + $0x10] sm:$0xff] }
0x1a93   :  { %6730 = vrsqrt.f32 %v5746_v50  ;;  %vm5763_vm9 = vweird.f32 %v5746_v50  ;;  %5923 = vmatpush.msrb.mxu0 %v5900_v3 }
0x1a94   :  { %v5752_v39 = vmul.f32 %v6729_v60, %v5751_v26 }
0x1a95   :  { %5924 = vmatpush.msrb.mxu0 %v5899_v9 }
0x1a96   :  { %v5756_v40 = vsel %vm5755_vm7, %v6729_v60, %v5752_v39 }
0x1a97   :  { %v5767_v6 = vmul.f32 %v5756_v40, %v5733_v10  ;;  %5925 = vmatpush.msrb.mxu0 %v5898_v17 }
0x1a99   :  { %v6731_v59 = vpop.eup %6730  ;;  %v5772_v45 = vmul.f32 %v6447_v27, %v5767_v6  ;;  %5926 = vmatpush.msrb.mxu0 %v5897_v7 }
0x1a9a   :  { %v5758_v20 = vmul.f32 %v6731_v59, %v5746_v50  ;;  %vm5764_vm8 = vweird.f32 %v6731_v59  ;;  %v5896_v50 = vld [vmem:[#allocation2 + $0x8] sm:$0xff] }
0x1a9b   :  { %v5777_v36 = vadd.f32 %v6448_v2, %v5772_v45  ;;  %vm5765_vm10 = vmor %vm5763_vm9, %vm5764_vm8  ;;  %5927 = vmatpush.msrb.mxu0 %v5896_v50 }
0x1a9c   :  { %v5759_v58 = vmul.f32 %v6731_v59, %v5758_v20  ;;  %v6451_v20 = vld [vmem:[%s7420_s9] ss:$0 sm:$0xff]  ;;  %s7186_s9 = smov [#allocation23]  }
0x1a9d   :  { %6233 = vmatmul.msk.f32.vlgmr.msrb.gmra.mxu2 %vm560_vm4, %v5777_v36  ;;  %5928 = vmatpush.msrb.mxu0 %v5895_v23  ;;  %s5942_s30 = sshll.u32 %s7186_s9, 4  ;;  %s5943_s30 = int_to_ptr.vmem [resolvable:$true] %s5942_s30 }
0x1a9e   :  { %v5760_v53 = vmul.f32 0.5, %v5759_v58 }
0x1aa0   :  { %v5761_v22 = vsub.f32 1.5, %v5760_v53 }
0x1aa2   :  { %v5762_v51 = vmul.f32 %v6731_v59, %v5761_v22 }
0x1aa4   :  { %v5766_v11 = vsel %vm5765_vm10, %v6731_v59, %v5762_v51 }
0x1aa5   :  { %v5768_v25 = vmul.f32 %v5766_v11, %v9040_v4 }
0x1aa7   :  { %v5773_v38 = vmul.f32 %v6447_v27, %v5768_v25 }
0x1aa9   :  { %v5778_v54 = vadd.f32 %v6448_v2, %v5773_v38 }
0x1aab   :  { %6234 = vmatmul.msk.f32.gmra.mxu2 %vm560_vm4, %v5778_v54 }
0x1b20   :  { %v5805_v44 = vpop.f32.mrf.mxu2 }
0x1b21   :  { %v5806_v33 = vadd.f32 %v6449_v41, %v5805_v44 }
0x1b23   :  { %v5811_v10 = vmax.f32 %v5806_v33, 0.0 }
0x1b25   :  { %5832 = vmatmul.f32.vlgmr.msrb.gmra.mxu3 %v5811_v10 }
0x1b2e   :  { %v5808_v62 = vpop.f32.mrf.mxu2 }
0x1b2f   :  { %v5809_v49 = vadd.f32 %v6449_v41, %v5808_v62 }
0x1b31   :  { %v5812_v14 = vmax.f32 %v5809_v49, 0.0 }
0x1b33   :  { %5835 = vmatmul.f32.gmra.mxu3 %v5812_v14 }
0x1ba8   :  { %v5833_v4 = vpop.f32.mrf.mxu3 }
0x1ba9   :  { %v5834_v21 = vadd.f32 %v6450_v56, %v5833_v4 }
0x1bab   :  { %v5839_v61 = vadd.f32 %v5834_v21, %v5777_v36 }
0x1bad   :  { %v5841_v63 = vsel %vm560_vm4, %v5839_v61, 0.0 }
0x1bae   :  { %5842 = vadd.xlane.f32.xlu1 %v5841_v63 }
0x1bb6   :  { %v5836_v12 = vpop.f32.mrf.mxu3 }
0x1bb7   :  { %v5837_v31 = vadd.f32 %v6450_v56, %v5836_v12 }
0x1bb9   :  { %v5840_v24 = vadd.f32 %v5837_v31, %v5778_v54 }
0x1bbb   :  { %v5844_v30 = vsel %vm560_vm4, %v5840_v24, 0.0 }
0x1bbc   :  { %5845 = vadd.xlane.f32.xlu2 %v5844_v30 }
0x1c21   :  { %v5843_v18 = vpop.xlane.xlu1 %5842 }
0x1c22   :  { %v5847_v47 = vmul.f32 %v5843_v18, %v7914_v42 }
0x1c24   :  { %v5849_v5 = vsub.f32 %v5839_v61, %v5847_v47 }
0x1c26   :  { %v5851_v46 = vmul.f32 %v5849_v5, %v5849_v5 }
0x1c28   :  { %v5853_v28 = vsel %vm560_vm4, %v5851_v46, 0.0 }
0x1c29   :  { %5854 = vadd.xlane.f32.xlu0 %v5853_v28 }
0x1c2f   :  { %v5846_v19 = vpop.xlane.xlu2 %5845 }
0x1c30   :  { %v5848_v60 = vmul.f32 %v5846_v19, %v7914_v42 }
0x1c32   :  { %v5850_v8 = vsub.f32 %v5840_v24, %v5848_v60 }
0x1c34   :  { %v5852_v34 = vmul.f32 %v5850_v8, %v5850_v8 }
0x1c36   :  { %v5856_v15 = vsel %vm560_vm4, %v5852_v34, 0.0 }
0x1c37   :  { %5857 = vadd.xlane.f32.xlu1 %v5856_v15 }
0x1c9c   :  { %v5855_v26 = vpop.xlane.xlu0 %5854 }
0x1c9d   :  { %v5859_v35 = vmul.f32 %v5855_v26, %v7914_v42 }
0x1c9f   :  { %v5861_v39 = vadd.f32 1e-05, %v5859_v35 }
0x1ca1   :  { %6732 = vrsqrt.f32 %v5861_v39  ;;  %vm5869_vm13 = vweird.f32 %v5861_v39 }
0x1ca7   :  { %v6733_v27 = vpop.eup %6732 }
0x1ca8   :  { %v5864_v16 = vmul.f32 %v6733_v27, %v5861_v39  ;;  %vm5870_vm11 = vweird.f32 %v6733_v27 }
0x1ca9   :  { %vm5871_vm14 = vmor %vm5869_vm13, %vm5870_vm11 }
0x1caa   :  { %v5865_v40 = vmul.f32 %v6733_v27, %v5864_v16  ;;  %v5858_v2 = vpop.xlane.xlu1 %5857 }
0x1cab   :  { %v5860_v6 = vmul.f32 %v5858_v2, %v7914_v42 }
0x1cac   :  { %v5866_v0 = vmul.f32 0.5, %v5865_v40 }
0x1cad   :  { %v5862_v59 = vadd.f32 1e-05, %v5860_v6 }
0x1cae   :  { %v5867_v45 = vsub.f32 1.5, %v5866_v0 }
0x1caf   :  { %6734 = vrsqrt.f32 %v5862_v59  ;;  %vm5879_vm0 = vweird.f32 %v5862_v59 }
0x1cb0   :  { %v5868_v1 = vmul.f32 %v6733_v27, %v5867_v45 }
0x1cb2   :  { %v5872_v36 = vsel %vm5871_vm14, %v6733_v27, %v5868_v1 }
0x1cb3   :  { %v5883_v58 = vmul.f32 %v5872_v36, %v5849_v5 }
0x1cb5   :  { %v6735_v55 = vpop.eup %6734  ;;  %v5888_v53 = vmul.f32 %v6451_v20, %v5883_v58 }
0x1cb6   :  { %v5874_v48 = vmul.f32 %v6735_v55, %v5862_v59  ;;  %vm5880_vm15 = vweird.f32 %v6735_v55 }
0x1cb7   :  { %v5893_v22 = vadd.f32 %v6452_v32, %v5888_v53  ;;  %vm5881_vm1 = vmor %vm5879_vm0, %vm5880_vm15 }
0x1cb8   :  { %v5875_v43 = vmul.f32 %v6735_v55, %v5874_v48 }
0x1cb9   :  { %6235 = vmatmul.msk.f32.vlgmr.msrb.gmra.mxu0 %vm560_vm4, %v5893_v22 }
0x1cba   :  { %v5876_v42 = vmul.f32 0.5, %v5875_v43 }
0x1cbc   :  { %v5877_v51 = vsub.f32 1.5, %v5876_v42 }
0x1cbe   :  { %v5878_v11 = vmul.f32 %v6735_v55, %v5877_v51 }
0x1cc0   :  { %v5882_v25 = vsel %vm5881_vm1, %v6735_v55, %v5878_v11 }
0x1cc1   :  { %v5884_v38 = vmul.f32 %v5882_v25, %v5850_v8 }
0x1cc3   :  { %v5889_v54 = vmul.f32 %v6451_v20, %v5884_v38 }
0x1cc5   :  { %v5894_v52 = vadd.f32 %v6452_v32, %v5889_v54 }
0x1cc7   :  { %6236 = vmatmul.msk.f32.gmra.mxu0 %vm560_vm4, %v5894_v52 }
0x1d36   :  { %v5930_v37 = vpop.f32.mrf.mxu0 }
0x1d37   :  { %v5931_v41 = vadd.f32 %v6453_v57, %v5930_v37 }
0x1d39   :  { %5936 = vst [vmem:[#allocation23] sm:$0xff] %v5931_v41 }
0x1d44   :  { %v5933_v44 = vpop.f32.mrf.mxu0 }
0x1d45   :  { %v5934_v33 = vadd.f32 %v6453_v57, %v5933_v44 }
0x1d47   :  { %5937 = vst [vmem:[#allocation23 + $0x8] sm:$0xff] %v5934_v33 }
0x1d48   :  { %7089 = shalt.err (!%p7086_p13)
}
0x1d49   :  { %5950 = dma.vmem_to_hbm [thread:$0]  %s5943_s30, 256, %s5945_s16, [#allocation4], %s7155_s18, %s7155_s18, %s7156_s22  }
0x1d4a   :  { %7104 = dma.done.wait [#allocation4], 256  }
0x1d4b   :  { %7105 = vsyncadd [#allocation4], 4294967040 }
0x1d4c   :  { %5955 = vsyncpa [#allocation3], 1 }
0x1d4d   :  { %5956 = vsyncpa [#allocation6], 1 }
0x1d4e   :  { %5957 = vsyncpa [#allocation9], 1 }
0x1d4f   :  { %5958 = vsyncpa [#allocation12], 1 }
0x1d50   :  { %5959 = vsyncpa [#allocation15], 1 }
0x1d51   :  { %5960 = vsyncpa [#allocation18], 1 }
0x1d52   :  { %5961 = vsyncpa [#allocation21], 1 }
0x1d53   :  { %5962 = vsyncpa [#allocation4], 1 }

</bundles_post_ra>
